<compile_context>
chip_gen: v7x
topology: tpu7x:2x2x1
jax: 0.10.0
libtpu: 0.0.40
codegen_flags: <defaults>
</compile_context>

<pallas_src>
import math

import jax
import jax.numpy as jnp
import numpy as np
from jax.experimental import pallas as pl
from jax.experimental.pallas import tpu as pltpu

INIT_DIM = 12          # 12x12 base grid -> 24x24 after layer 1 -> 48x48 output
KSIZE = 3
BN_EPS = 1e-5

# sub-pixel table for a k=3, s=2, p=1, op=1 transposed conv:
#   out[2*i + q] += x[i + d] * W[..., k]  for every (d, k) in _T_STRIDE2[q]
_T_STRIDE2 = {0: ((0, 1),), 1: ((0, 2), (1, 0))}
# distinct (phase'', shift) pairs needed per axis by the phase-blocked layers
_D2 = ((0, 0), (0, 1), (1, 0), (1, -1))   # layer 2 (stride-1 conv on 24-grid)
_D3 = ((0, 0), (1, 0), (0, 1))            # layer 3 (stride-2 up to 48-grid)

_COMPILER_PARAMS = pltpu.CompilerParams(vmem_limit_bytes=16 * 1024 * 1024)


def _vmem_specs(n):
    return [pl.BlockSpec(memory_space=pltpu.MemorySpace.VMEM) for _ in range(n)]


# --------------------------------------------------------------------------
# in-kernel math helpers
# --------------------------------------------------------------------------
def _gelu_tanh(x):
    # tanh-formulation GELU: goes to the (otherwise idle) EUP slot.
    c = 0.7978845608028654  # sqrt(2/pi)
    return 0.5 * x * (1.0 + jnp.tanh(c * (x + 0.044715 * x * x * x)))


def _boundary_mask(di, dj, masks):
    """Zero-out lanes whose source (i+di, j+dj) falls outside the 12x12 grid."""
    mask = None
    if di == 1:
        mask = masks[1:2, :]
    elif di == -1:
        mask = masks[0:1, :]
    if dj == 1:
        mask = masks[3:4, :] if mask is None else mask * masks[3:4, :]
    elif dj == -1:
        mask = masks[2:3, :] if mask is None else mask * masks[2:3, :]
    return mask


def _shift_val(x, di, dj, masks):
    """out[:, l(b,i,j)] = x[:, l(b,i+di,j+dj)] (lane shift + boundary mask).

    Value-returning version, used only for the tiny layer-1 slab (32 x n).
    """
    if di == 0 and dj == 0:
        return x
    c, n = x.shape
    delta = di * INIT_DIM + dj
    mask = _boundary_mask(di, dj, masks)
    if delta > 0:
        shifted = jnp.concatenate(
            [x[:, delta:], jnp.zeros((c, delta), x.dtype)], axis=1)
    else:
        shifted = jnp.concatenate(
            [jnp.zeros((c, -delta), x.dtype), x[:, :n + delta]], axis=1)
    return shifted * mask


def _shift_store(dst_ref, row0, x, di, dj, masks, out_dtype):
    """Write the shifted+masked slab straight into VMEM scratch (no concat).

    Two stores: the valid body (shifted source * boundary mask) plus a tiny
    (<=13 lane) zero tail for the lanes with no in-bounds source.
    """
    c, n = x.shape
    rows = pl.ds(row0, c)
    if di == 0 and dj == 0:
        dst_ref[rows, :] = x.astype(out_dtype)
        return
    delta = di * INIT_DIM + dj
    mask = _boundary_mask(di, dj, masks)
    if delta > 0:
        body = x[:, delta:] * mask[:, :n - delta]
        dst_ref[rows, pl.ds(0, n - delta)] = body.astype(out_dtype)
        dst_ref[rows, pl.ds(n - delta, delta)] = jnp.zeros((c, delta), out_dtype)
    else:
        d = -delta
        body = x[:, :n - d] * mask[:, d:]
        dst_ref[rows, pl.ds(d, n - d)] = body.astype(out_dtype)
        dst_ref[rows, pl.ds(0, d)] = jnp.zeros((c, d), out_dtype)


def _bn_gelu_blocks(p, n_phase, ch, gamma, beta, count):
    """Training-mode BatchNorm2d (one-pass stats) + tanh-GELU.

    `p` is the phase-blocked (n_phase*ch, n) matmul result; returns a list of
    n_phase (ch, n) f32 blocks (consumed block-wise by the next layer), so no
    scale/shift replication or re-concat is ever materialized.
    """
    blocks = [p[q * ch:(q + 1) * ch, :] for q in range(n_phase)]
    s1 = blocks[0]
    s2 = blocks[0] * blocks[0]
    for q in range(1, n_phase):
        s1 = s1 + blocks[q]
        s2 = s2 + blocks[q] * blocks[q]
    inv = 1.0 / count
    mean = jnp.sum(s1, axis=1, keepdims=True) * inv                      # (ch, 1)
    var = jnp.maximum(jnp.sum(s2, axis=1, keepdims=True) * inv - mean * mean, 0.0)
    scale = gamma * jax.lax.rsqrt(var + BN_EPS)                          # (ch, 1)
    shift = beta - mean * scale                                          # (ch, 1)
    return [_gelu_tanh(b * scale + shift) for b in blocks]


# --------------------------------------------------------------------------
# the single fused kernel
# --------------------------------------------------------------------------
def _generator_kernel(xt_ref, aux_ref, bn_ref, w1_ref, w2_ref, w3_ref,
                      o_ref, u2_ref, u3_ref):
    # static dims from ref shapes
    c_bits, batch = xt_ref.shape
    c1 = w1_ref.shape[0] // 4           # ns*4
    c0 = w1_ref.shape[1] // 4           # c_weight
    c2 = w2_ref.shape[0] // 4           # ns*2
    n = aux_ref.shape[1]                # batch * 144 lanes

    # aux layout: [ w0 (c_bits*c0) | b0 (c0) | e (batch) | masks (4) ] x n
    xt = xt_ref[...]
    tail = aux_ref[pl.ds(c_bits * c0, c0 + batch + 4), :]
    b0 = tail[0:c0, :]
    masks = tail[c0 + batch:c0 + batch + 4, :]
    bn = bn_ref[...]                    # (2*c1 + 2*c2, 1): [g1 | be1 | g2 | be2]

    # ---- challenge Linear, produced directly in (channel, batch*12*12) layout
    xe = xt[:, 0:1] * tail[c0:c0 + 1, :]
    for b in range(1, batch):
        xe = xe + xt[:, b:b + 1] * tail[c0 + b:c0 + b + 1, :]    # (c_bits, n)
    a0 = b0
    for k in range(c_bits):                                      # tiny K -> VPU FMAs
        a0 = a0 + aux_ref[pl.ds(k * c0, c0), :] * xe[k:k + 1, :]  # (c0, n)

    # ---- layer 1: ConvT(s=2) via sub-pixel phases, ONE bf16 matmul (K = 4*c0)
    u1 = jnp.concatenate(
        [_shift_val(a0, di, dj, masks) for di in (0, 1) for dj in (0, 1)],
        axis=0).astype(jnp.bfloat16)                             # (4*c0, n)
    p1 = jnp.dot(w1_ref[...], u1, preferred_element_type=jnp.float32)   # (4*c1, n)
    x1 = _bn_gelu_blocks(p1, 4, c1, bn[0:c1, :], bn[c1:2 * c1, :], 4.0 * n)

    # ---- layer 2: ConvT(s=1) on the phase-blocked 24-grid, ONE bf16 matmul (K = 16*c1)
    s = 0
    for (pi2, di) in _D2:
        for (pj2, dj) in _D2:
            _shift_store(u2_ref, s * c1, x1[pi2 * 2 + pj2], di, dj, masks,
                         jnp.bfloat16)
            s += 1
    p2 = jnp.dot(w2_ref[...], u2_ref[...], preferred_element_type=jnp.float32)  # (4*c2, n)
    x2 = _bn_gelu_blocks(p2, 4, c2, bn[2 * c1:2 * c1 + c2, :],
                         bn[2 * c1 + c2:2 * c1 + 2 * c2, :], 4.0 * n)

    # ---- layer 3: ConvT(s=2) + tanh, ONE bf16 matmul (K = 9*c2), 16 output phases
    s = 0
    for (pi2, di) in _D3:
        for (pj2, dj) in _D3:
            _shift_store(u3_ref, s * c2, x2[pi2 * 2 + pj2], di, dj, masks,
                         jnp.bfloat16)
            s += 1
    p3 = jnp.dot(w3_ref[...], u3_ref[...], preferred_element_type=jnp.float32)  # (16, n)
    o_ref[...] = jnp.tanh(p3)                                    # lane-dense store


# --------------------------------------------------------------------------
# wrapper
# --------------------------------------------------------------------------
def generator_forward(c_input, params):
    c_bits = c_input.shape[-1]
    x = c_input.reshape(-1, c_bits).astype(jnp.float32)
    batch = x.shape[0]
    n = batch * INIT_DIM * INIT_DIM
    assert params["aux"].shape[1] == n, "params were prepared for a different batch"

    c1 = params["w1"].shape[0] // 4
    c2 = params["w2"].shape[0] // 4

    out16 = pl.pallas_call(
        _generator_kernel,
        out_shape=jax.ShapeDtypeStruct((16, n), jnp.float32),
        in_specs=_vmem_specs(6),
        out_specs=pl.BlockSpec(memory_space=pltpu.MemorySpace.VMEM),
        scratch_shapes=[pltpu.VMEM((16 * c1, n), jnp.bfloat16),   # u2 slab
                        pltpu.VMEM((9 * c2, n), jnp.bfloat16)],   # u3 slab
        compiler_params=_COMPILER_PARAMS,
    )(x.T, params["aux"], params["bn"], params["w1"], params["w2"], params["w3"])

    # undo the two-level sub-pixel phase blocking (18 KB, one tiny XLA op):
    #   row = ((pi*2+qi)*2+pj)*2+qj, lane = b*144+i*12+j
    #   -> output[b, 4i+2pi+qi, 4j+2pj+qj]
    out = out16.reshape(2, 2, 2, 2, batch, INIT_DIM, INIT_DIM)
    out = jnp.transpose(out, (4, 5, 0, 1, 6, 2, 3))
    out = out.reshape(batch, 4 * INIT_DIM, 4 * INIT_DIM)
    return jnp.squeeze(out)


# --------------------------------------------------------------------------
# deterministic synthetic parameters (PyTorch layouts) + init-time re-layouts
# --------------------------------------------------------------------------
def init_raw_params(key, ns, c_bits, c_weight):
    ks = jax.random.split(key, 8)
    d_out = INIT_DIM * INIT_DIM * c_weight
    return {
        "lin_w": jax.random.normal(ks[0], (d_out, c_bits), jnp.float32) / math.sqrt(c_bits),
        "lin_b": 0.01 * jax.random.normal(ks[1], (d_out,), jnp.float32),
        "w1": 0.1 * jax.random.normal(ks[2], (c_weight, ns * 4, KSIZE, KSIZE), jnp.float32),
        "w2": 0.1 * jax.random.normal(ks[3], (ns * 4, ns * 2, KSIZE, KSIZE), jnp.float32),
        "w3": 0.1 * jax.random.normal(ks[4], (ns * 2, 1, KSIZE, KSIZE), jnp.float32),
        "bn1_g": 1.0 + 0.1 * jax.random.normal(ks[5], (ns * 4,), jnp.float32),
        "bn1_b": 0.1 * jax.random.normal(ks[6], (ns * 4,), jnp.float32),
        "bn2_g": 1.0 + 0.1 * jax.random.normal(ks[7], (ns * 2,), jnp.float32),
        "bn2_b": jnp.zeros((ns * 2,), jnp.float32),
    }


def prepare_params(raw, ns, c_bits, c_weight, batch):
    """Precompute (once) every weight re-layout the fused kernel needs."""
    hw = INIT_DIM * INIT_DIM
    n = batch * hw
    c0, c1, c2 = c_weight, ns * 4, ns * 2

    # block-replication matrix for the challenge input: e[b, b*144 + s] = 1
    e = np.kron(np.eye(batch, dtype=np.float32), np.ones((1, hw), np.float32))

    # boundary masks on the flattened (b, i, j) lane index
    idx = np.arange(n)
    jj = idx % INIT_DIM
    ii = (idx // INIT_DIM) % INIT_DIM
    masks = np.stack([(ii >= 1), (ii <= INIT_DIM - 2),
                      (jj >= 1), (jj <= INIT_DIM - 2)]).astype(np.float32)

    # Linear weights with the NCHW .view() baked into the lane layout:
    #   w0[k, c, b*144 + i*12 + j] = lin_w[c*144 + i*12 + j, k]
    lin_w = np.asarray(raw["lin_w"], np.float32)
    lin_b = np.asarray(raw["lin_b"], np.float32)
    w0 = lin_w.reshape(c0, INIT_DIM, INIT_DIM, c_bits).transpose(3, 0, 1, 2)
    w0 = np.tile(w0.reshape(c_bits, c0, hw), (1, 1, batch))     # (c_bits, c0, n)
    b0 = np.tile(lin_b.reshape(c0, hw), (1, batch))             # (c0, n)

    # pack all lane-width-n f32 aux data into ONE operand (fewer tiny DMAs):
    #   [ w0 flattened | b0 | e | masks ]
    aux = np.concatenate(
        [w0.reshape(c_bits * c0, n), b0, e, masks], axis=0).astype(np.float32)

    # pack the BN vectors into ONE operand: [g1 | be1 | g2 | be2]
    bn = np.concatenate(
        [np.asarray(raw["bn1_g"], np.float32).reshape(c1, 1),
         np.asarray(raw["bn1_b"], np.float32).reshape(c1, 1),
         np.asarray(raw["bn2_g"], np.float32).reshape(c2, 1),
         np.asarray(raw["bn2_b"], np.float32).reshape(c2, 1)], axis=0)

    # layer 1: stride-2 sub-pixel weight blocks -> (4*c1, 4*c0)
    w1_t = np.asarray(raw["w1"], np.float32)                 # (c0, c1, 3, 3)
    w1 = np.zeros((4 * c1, 4 * c0), np.float32)
    for qi in (0, 1):
        for qj in (0, 1):
            p = qi * 2 + qj
            for (d_i, kh) in _T_STRIDE2[qi]:
                for (d_j, kw) in _T_STRIDE2[qj]:
                    s = d_i * 2 + d_j
                    w1[p * c1:(p + 1) * c1, s * c0:(s + 1) * c0] += w1_t[:, :, kh, kw].T

    # layer 2: stride-1 conv on the phase-blocked 24-grid -> (4*c2, 16*c1)
    w2_t = np.asarray(raw["w2"], np.float32)                 # (c1, c2, 3, 3)
    w2 = np.zeros((4 * c2, 16 * c1), np.float32)
    for pi in (0, 1):
        for pj in (0, 1):
            p = pi * 2 + pj
            for kh in range(KSIZE):
                u = pi + 1 - kh
                a_i = _D2.index((u % 2, u // 2))
                for kw in range(KSIZE):
                    v = pj + 1 - kw
                    a_j = _D2.index((v % 2, v // 2))
                    s = a_i * 4 + a_j
                    w2[p * c2:(p + 1) * c2, s * c1:(s + 1) * c1] += w2_t[:, :, kh, kw].T

    # layer 3: stride-2 sub-pixel on the phase-blocked 24-grid -> (16, 9*c2)
    w3_t = np.asarray(raw["w3"], np.float32)                 # (c2, 1, 3, 3)
    w3 = np.zeros((16, 9 * c2), np.float32)
    for pi in (0, 1):
        for qi in (0, 1):
            for pj in (0, 1):
                for qj in (0, 1):
                    r = pi * 8 + qi * 4 + pj * 2 + qj
                    for (d_i, kh) in _T_STRIDE2[qi]:
                        u = pi + d_i
                        a_i = _D3.index((u % 2, u // 2))
                        for (d_j, kw) in _T_STRIDE2[qj]:
                            v = pj + d_j
                            a_j = _D3.index((v % 2, v // 2))
                            s = a_i * 3 + a_j
                            w3[r, s * c2:(s + 1) * c2] += w3_t[:, 0, kh, kw]

    return {
        "aux": jnp.asarray(aux),
        "bn": jnp.asarray(bn),
        # bf16 matmul operands (MXU-native on all generations)
        "w1": jnp.asarray(w1, dtype=jnp.bfloat16),
        "w2": jnp.asarray(w2, dtype=jnp.bfloat16),
        "w3": jnp.asarray(w3, dtype=jnp.bfloat16),
    }


# --------------------------------------------------------------------------
# pure-JAX reference (mirrors the PyTorch module; used only for verification)
# --------------------------------------------------------------------------
def reference_forward(c_input, raw, ns, c_bits, c_weight):
    hp = jax.lax.Precision.HIGHEST
    x = c_input.reshape(-1, c_bits).astype(jnp.float32)
    h = jnp.dot(x, raw["lin_w"].T, precision=hp) + raw["lin_b"]
    h = h.reshape(-1, c_weight, INIT_DIM, INIT_DIM)

    def convt(v, w, stride, pad, out_pad):
        w_eq = jnp.transpose(jnp.flip(w, (2, 3)), (1, 0, 2, 3))   # (Cout, Cin, kh, kw)
        lo = KSIZE - 1 - pad
        hi = KSIZE - 1 - pad + out_pad
        return jax.lax.conv_general_dilated(
            v, w_eq, window_strides=(1, 1), padding=((lo, hi), (lo, hi)),
            lhs_dilation=(stride, stride),
            dimension_numbers=("NCHW", "OIHW", "NCHW"), precision=hp)

    def bn(v, g, b):
        mean = jnp.mean(v, axis=(0, 2, 3), keepdims=True)
        var = jnp.mean(jnp.square(v - mean), axis=(0, 2, 3), keepdims=True)
        return ((v - mean) * jax.lax.rsqrt(var + BN_EPS)
                * g.reshape(1, -1, 1, 1) + b.reshape(1, -1, 1, 1))

    h = convt(h, raw["w1"], 2, 1, 1)
    h = jax.nn.gelu(bn(h, raw["bn1_g"], raw["bn1_b"]), approximate=False)
    h = convt(h, raw["w2"], 1, 1, 0)
    h = jax.nn.gelu(bn(h, raw["bn2_g"], raw["bn2_b"]), approximate=False)
    h = convt(h, raw["w3"], 2, 1, 1)
    return jnp.squeeze(jnp.tanh(h))


# --------------------------------------------------------------------------
if __name__ == "__main__":
    ns, c_bits, c_weight, batch = 8, 16, 8, 2
    key = jax.random.PRNGKey(0)
    pkey, xkey = jax.random.split(key)

    raw = init_raw_params(pkey, ns, c_bits, c_weight)
    params = prepare_params(raw, ns=ns, c_bits=c_bits, c_weight=c_weight, batch=batch)
    c_input = jax.random.normal(xkey, (batch, c_bits), jnp.float32)

    fwd = jax.jit(generator_forward)
    out = jax.block_until_ready(fwd(c_input, params))
    assert out.shape == (batch, 4 * INIT_DIM, 4 * INIT_DIM), out.shape
    assert bool(jnp.all(jnp.isfinite(out)))

    # verify against the plain-JAX reference of the PyTorch module.
    # tolerance is loosened vs the all-f32 version to absorb the bf16 MXU
    # operands and the tanh-GELU approximation (both per the perf review).
    ref = reference_forward(c_input, raw, ns=ns, c_bits=c_bits, c_weight=c_weight)
    np.testing.assert_allclose(np.asarray(out), np.asarray(ref), rtol=4e-2, atol=4e-2)

    print("KERNEL_OK")
</pallas_src>

<mosaic_0001>
module attributes {stable_mosaic.version = 11 : i64} {
  func.func @_generator_kernel(%arg0: memref<16x2xf32, #tpu.memory_space<vmem>>, %arg1: memref<142x288xf32, #tpu.memory_space<vmem>>, %arg2: memref<96x1xf32, #tpu.memory_space<vmem>>, %arg3: memref<128x32xbf16, #tpu.memory_space<vmem>>, %arg4: memref<64x512xbf16, #tpu.memory_space<vmem>>, %arg5: memref<16x144xbf16, #tpu.memory_space<vmem>>, %arg6: memref<16x288xf32, #tpu.memory_space<vmem>>, %arg7: memref<512x288xbf16, #tpu.memory_space<vmem>>, %arg8: memref<144x288xbf16, #tpu.memory_space<vmem>>) attributes {dimension_semantics = [], scalar_prefetch = 0 : i64, scratch_operands = 2 : i64, tpu.core_type = #tpu.core_type<tc>} {
    %c0 = arith.constant 0 : index
    %c0_0 = arith.constant 0 : index
    %0 = vector.load %arg0[%c0, %c0_0] : memref<16x2xf32, #tpu.memory_space<vmem>>, vector<16x2xf32>
    %c128 = arith.constant 128 : index
    %c0_1 = arith.constant 0 : index
    %1 = vector.load %arg1[%c128, %c0_1] : memref<142x288xf32, #tpu.memory_space<vmem>>, vector<14x288xf32>
    %2 = vector.extract_strided_slice %1 {offsets = [0, 0], sizes = [8, 288], strides = [1, 1]} : vector<14x288xf32> to vector<8x288xf32>
    %3 = vector.extract_strided_slice %1 {offsets = [10, 0], sizes = [4, 288], strides = [1, 1]} : vector<14x288xf32> to vector<4x288xf32>
    %c0_2 = arith.constant 0 : index
    %c0_3 = arith.constant 0 : index
    %4 = vector.load %arg2[%c0_2, %c0_3] : memref<96x1xf32, #tpu.memory_space<vmem>>, vector<96x1xf32>
    %5 = vector.extract_strided_slice %0 {offsets = [0, 0], sizes = [16, 1], strides = [1, 1]} : vector<16x2xf32> to vector<16x1xf32>
    %6 = vector.extract_strided_slice %1 {offsets = [8, 0], sizes = [1, 288], strides = [1, 1]} : vector<14x288xf32> to vector<1x288xf32>
    %7 = vector.broadcast %5 : vector<16x1xf32> to vector<16x288xf32>
    %8 = vector.broadcast %6 : vector<1x288xf32> to vector<16x288xf32>
    %9 = arith.mulf %7, %8 : vector<16x288xf32>
    %10 = vector.extract_strided_slice %0 {offsets = [0, 1], sizes = [16, 1], strides = [1, 1]} : vector<16x2xf32> to vector<16x1xf32>
    %11 = vector.extract_strided_slice %1 {offsets = [9, 0], sizes = [1, 288], strides = [1, 1]} : vector<14x288xf32> to vector<1x288xf32>
    %12 = vector.broadcast %10 : vector<16x1xf32> to vector<16x288xf32>
    %13 = vector.broadcast %11 : vector<1x288xf32> to vector<16x288xf32>
    %14 = arith.mulf %12, %13 : vector<16x288xf32>
    %15 = arith.addf %9, %14 : vector<16x288xf32>
    %c0_4 = arith.constant 0 : index
    %c0_5 = arith.constant 0 : index
    %16 = vector.load %arg1[%c0_4, %c0_5] : memref<142x288xf32, #tpu.memory_space<vmem>>, vector<8x288xf32>
    %17 = vector.extract_strided_slice %15 {offsets = [0, 0], sizes = [1, 288], strides = [1, 1]} : vector<16x288xf32> to vector<1x288xf32>
    %18 = vector.broadcast %17 : vector<1x288xf32> to vector<8x288xf32>
    %19 = arith.mulf %16, %18 : vector<8x288xf32>
    %20 = arith.addf %2, %19 : vector<8x288xf32>
    %c8 = arith.constant 8 : index
    %c0_6 = arith.constant 0 : index
    %21 = vector.load %arg1[%c8, %c0_6] : memref<142x288xf32, #tpu.memory_space<vmem>>, vector<8x288xf32>
    %22 = vector.extract_strided_slice %15 {offsets = [1, 0], sizes = [1, 288], strides = [1, 1]} : vector<16x288xf32> to vector<1x288xf32>
    %23 = vector.broadcast %22 : vector<1x288xf32> to vector<8x288xf32>
    %24 = arith.mulf %21, %23 : vector<8x288xf32>
    %25 = arith.addf %20, %24 : vector<8x288xf32>
    %c16 = arith.constant 16 : index
    %c0_7 = arith.constant 0 : index
    %26 = vector.load %arg1[%c16, %c0_7] : memref<142x288xf32, #tpu.memory_space<vmem>>, vector<8x288xf32>
    %27 = vector.extract_strided_slice %15 {offsets = [2, 0], sizes = [1, 288], strides = [1, 1]} : vector<16x288xf32> to vector<1x288xf32>
    %28 = vector.broadcast %27 : vector<1x288xf32> to vector<8x288xf32>
    %29 = arith.mulf %26, %28 : vector<8x288xf32>
    %30 = arith.addf %25, %29 : vector<8x288xf32>
    %c24 = arith.constant 24 : index
    %c0_8 = arith.constant 0 : index
    %31 = vector.load %arg1[%c24, %c0_8] : memref<142x288xf32, #tpu.memory_space<vmem>>, vector<8x288xf32>
    %32 = vector.extract_strided_slice %15 {offsets = [3, 0], sizes = [1, 288], strides = [1, 1]} : vector<16x288xf32> to vector<1x288xf32>
    %33 = vector.broadcast %32 : vector<1x288xf32> to vector<8x288xf32>
    %34 = arith.mulf %31, %33 : vector<8x288xf32>
    %35 = arith.addf %30, %34 : vector<8x288xf32>
    %c32 = arith.constant 32 : index
    %c0_9 = arith.constant 0 : index
    %36 = vector.load %arg1[%c32, %c0_9] : memref<142x288xf32, #tpu.memory_space<vmem>>, vector<8x288xf32>
    %37 = vector.extract_strided_slice %15 {offsets = [4, 0], sizes = [1, 288], strides = [1, 1]} : vector<16x288xf32> to vector<1x288xf32>
    %38 = vector.broadcast %37 : vector<1x288xf32> to vector<8x288xf32>
    %39 = arith.mulf %36, %38 : vector<8x288xf32>
    %40 = arith.addf %35, %39 : vector<8x288xf32>
    %c40 = arith.constant 40 : index
    %c0_10 = arith.constant 0 : index
    %41 = vector.load %arg1[%c40, %c0_10] : memref<142x288xf32, #tpu.memory_space<vmem>>, vector<8x288xf32>
    %42 = vector.extract_strided_slice %15 {offsets = [5, 0], sizes = [1, 288], strides = [1, 1]} : vector<16x288xf32> to vector<1x288xf32>
    %43 = vector.broadcast %42 : vector<1x288xf32> to vector<8x288xf32>
    %44 = arith.mulf %41, %43 : vector<8x288xf32>
    %45 = arith.addf %40, %44 : vector<8x288xf32>
    %c48 = arith.constant 48 : index
    %c0_11 = arith.constant 0 : index
    %46 = vector.load %arg1[%c48, %c0_11] : memref<142x288xf32, #tpu.memory_space<vmem>>, vector<8x288xf32>
    %47 = vector.extract_strided_slice %15 {offsets = [6, 0], sizes = [1, 288], strides = [1, 1]} : vector<16x288xf32> to vector<1x288xf32>
    %48 = vector.broadcast %47 : vector<1x288xf32> to vector<8x288xf32>
    %49 = arith.mulf %46, %48 : vector<8x288xf32>
    %50 = arith.addf %45, %49 : vector<8x288xf32>
    %c56 = arith.constant 56 : index
    %c0_12 = arith.constant 0 : index
    %51 = vector.load %arg1[%c56, %c0_12] : memref<142x288xf32, #tpu.memory_space<vmem>>, vector<8x288xf32>
    %52 = vector.extract_strided_slice %15 {offsets = [7, 0], sizes = [1, 288], strides = [1, 1]} : vector<16x288xf32> to vector<1x288xf32>
    %53 = vector.broadcast %52 : vector<1x288xf32> to vector<8x288xf32>
    %54 = arith.mulf %51, %53 : vector<8x288xf32>
    %55 = arith.addf %50, %54 : vector<8x288xf32>
    %c64 = arith.constant 64 : index
    %c0_13 = arith.constant 0 : index
    %56 = vector.load %arg1[%c64, %c0_13] : memref<142x288xf32, #tpu.memory_space<vmem>>, vector<8x288xf32>
    %57 = vector.extract_strided_slice %15 {offsets = [8, 0], sizes = [1, 288], strides = [1, 1]} : vector<16x288xf32> to vector<1x288xf32>
    %58 = vector.broadcast %57 : vector<1x288xf32> to vector<8x288xf32>
    %59 = arith.mulf %56, %58 : vector<8x288xf32>
    %60 = arith.addf %55, %59 : vector<8x288xf32>
    %c72 = arith.constant 72 : index
    %c0_14 = arith.constant 0 : index
    %61 = vector.load %arg1[%c72, %c0_14] : memref<142x288xf32, #tpu.memory_space<vmem>>, vector<8x288xf32>
    %62 = vector.extract_strided_slice %15 {offsets = [9, 0], sizes = [1, 288], strides = [1, 1]} : vector<16x288xf32> to vector<1x288xf32>
    %63 = vector.broadcast %62 : vector<1x288xf32> to vector<8x288xf32>
    %64 = arith.mulf %61, %63 : vector<8x288xf32>
    %65 = arith.addf %60, %64 : vector<8x288xf32>
    %c80 = arith.constant 80 : index
    %c0_15 = arith.constant 0 : index
    %66 = vector.load %arg1[%c80, %c0_15] : memref<142x288xf32, #tpu.memory_space<vmem>>, vector<8x288xf32>
    %67 = vector.extract_strided_slice %15 {offsets = [10, 0], sizes = [1, 288], strides = [1, 1]} : vector<16x288xf32> to vector<1x288xf32>
    %68 = vector.broadcast %67 : vector<1x288xf32> to vector<8x288xf32>
    %69 = arith.mulf %66, %68 : vector<8x288xf32>
    %70 = arith.addf %65, %69 : vector<8x288xf32>
    %c88 = arith.constant 88 : index
    %c0_16 = arith.constant 0 : index
    %71 = vector.load %arg1[%c88, %c0_16] : memref<142x288xf32, #tpu.memory_space<vmem>>, vector<8x288xf32>
    %72 = vector.extract_strided_slice %15 {offsets = [11, 0], sizes = [1, 288], strides = [1, 1]} : vector<16x288xf32> to vector<1x288xf32>
    %73 = vector.broadcast %72 : vector<1x288xf32> to vector<8x288xf32>
    %74 = arith.mulf %71, %73 : vector<8x288xf32>
    %75 = arith.addf %70, %74 : vector<8x288xf32>
    %c96 = arith.constant 96 : index
    %c0_17 = arith.constant 0 : index
    %76 = vector.load %arg1[%c96, %c0_17] : memref<142x288xf32, #tpu.memory_space<vmem>>, vector<8x288xf32>
    %77 = vector.extract_strided_slice %15 {offsets = [12, 0], sizes = [1, 288], strides = [1, 1]} : vector<16x288xf32> to vector<1x288xf32>
    %78 = vector.broadcast %77 : vector<1x288xf32> to vector<8x288xf32>
    %79 = arith.mulf %76, %78 : vector<8x288xf32>
    %80 = arith.addf %75, %79 : vector<8x288xf32>
    %c104 = arith.constant 104 : index
    %c0_18 = arith.constant 0 : index
    %81 = vector.load %arg1[%c104, %c0_18] : memref<142x288xf32, #tpu.memory_space<vmem>>, vector<8x288xf32>
    %82 = vector.extract_strided_slice %15 {offsets = [13, 0], sizes = [1, 288], strides = [1, 1]} : vector<16x288xf32> to vector<1x288xf32>
    %83 = vector.broadcast %82 : vector<1x288xf32> to vector<8x288xf32>
    %84 = arith.mulf %81, %83 : vector<8x288xf32>
    %85 = arith.addf %80, %84 : vector<8x288xf32>
    %c112 = arith.constant 112 : index
    %c0_19 = arith.constant 0 : index
    %86 = vector.load %arg1[%c112, %c0_19] : memref<142x288xf32, #tpu.memory_space<vmem>>, vector<8x288xf32>
    %87 = vector.extract_strided_slice %15 {offsets = [14, 0], sizes = [1, 288], strides = [1, 1]} : vector<16x288xf32> to vector<1x288xf32>
    %88 = vector.broadcast %87 : vector<1x288xf32> to vector<8x288xf32>
    %89 = arith.mulf %86, %88 : vector<8x288xf32>
    %90 = arith.addf %85, %89 : vector<8x288xf32>
    %c120 = arith.constant 120 : index
    %c0_20 = arith.constant 0 : index
    %91 = vector.load %arg1[%c120, %c0_20] : memref<142x288xf32, #tpu.memory_space<vmem>>, vector<8x288xf32>
    %92 = vector.extract_strided_slice %15 {offsets = [15, 0], sizes = [1, 288], strides = [1, 1]} : vector<16x288xf32> to vector<1x288xf32>
    %93 = vector.broadcast %92 : vector<1x288xf32> to vector<8x288xf32>
    %94 = arith.mulf %91, %93 : vector<8x288xf32>
    %95 = arith.addf %90, %94 : vector<8x288xf32>
    %96 = vector.extract_strided_slice %3 {offsets = [3, 0], sizes = [1, 288], strides = [1, 1]} : vector<4x288xf32> to vector<1x288xf32>
    %97 = vector.extract_strided_slice %95 {offsets = [0, 1], sizes = [8, 287], strides = [1, 1]} : vector<8x288xf32> to vector<8x287xf32>
    %cst = arith.constant 0.000000e+00 : f32
    %98 = vector.broadcast %cst : f32 to vector<8x1xf32>
    %99 = tpu.concatenate %97, %98 in 1 : vector<8x287xf32>, vector<8x1xf32> -> vector<8x288xf32>
    %100 = vector.broadcast %96 : vector<1x288xf32> to vector<8x288xf32>
    %101 = arith.mulf %99, %100 : vector<8x288xf32>
    %102 = vector.extract_strided_slice %3 {offsets = [1, 0], sizes = [1, 288], strides = [1, 1]} : vector<4x288xf32> to vector<1x288xf32>
    %103 = vector.extract_strided_slice %95 {offsets = [0, 12], sizes = [8, 276], strides = [1, 1]} : vector<8x288xf32> to vector<8x276xf32>
    %cst_21 = arith.constant 0.000000e+00 : f32
    %104 = vector.broadcast %cst_21 : f32 to vector<8x12xf32>
    %105 = tpu.concatenate %103, %104 in 1 : vector<8x276xf32>, vector<8x12xf32> -> vector<8x288xf32>
    %106 = vector.broadcast %102 : vector<1x288xf32> to vector<8x288xf32>
    %107 = arith.mulf %105, %106 : vector<8x288xf32>
    %108 = vector.extract_strided_slice %3 {offsets = [1, 0], sizes = [1, 288], strides = [1, 1]} : vector<4x288xf32> to vector<1x288xf32>
    %109 = vector.extract_strided_slice %3 {offsets = [3, 0], sizes = [1, 288], strides = [1, 1]} : vector<4x288xf32> to vector<1x288xf32>
    %110 = arith.mulf %108, %109 : vector<1x288xf32>
    %111 = vector.extract_strided_slice %95 {offsets = [0, 13], sizes = [8, 275], strides = [1, 1]} : vector<8x288xf32> to vector<8x275xf32>
    %cst_22 = arith.constant 0.000000e+00 : f32
    %112 = vector.broadcast %cst_22 : f32 to vector<8x13xf32>
    %113 = tpu.concatenate %111, %112 in 1 : vector<8x275xf32>, vector<8x13xf32> -> vector<8x288xf32>
    %114 = vector.broadcast %110 : vector<1x288xf32> to vector<8x288xf32>
    %115 = arith.mulf %113, %114 : vector<8x288xf32>
    %116 = tpu.concatenate %95, %101, %107, %115 in 0 : vector<8x288xf32>, vector<8x288xf32>, vector<8x288xf32>, vector<8x288xf32> -> vector<32x288xf32>
    %117 = arith.truncf %116 : vector<32x288xf32> to vector<32x288xbf16>
    %c0_23 = arith.constant 0 : index
    %c0_24 = arith.constant 0 : index
    %118 = vector.load %arg3[%c0_23, %c0_24] : memref<128x32xbf16, #tpu.memory_space<vmem>>, vector<128x32xbf16>
    %cst_25 = arith.constant dense<0.000000e+00> : vector<128x288xf32>
    %119 = tpu.matmul %118, %117, %cst_25 {dimension_numbers = #tpu.dot_dimension_numbers<[1], [0], [0], [1], [0, 0, 1, 1], [], []>} : vector<128x32xbf16>, vector<32x288xbf16>, vector<128x288xf32> -> vector<128x288xf32>
    %120 = vector.extract_strided_slice %4 {offsets = [0, 0], sizes = [32, 1], strides = [1, 1]} : vector<96x1xf32> to vector<32x1xf32>
    %121 = vector.extract_strided_slice %4 {offsets = [32, 0], sizes = [32, 1], strides = [1, 1]} : vector<96x1xf32> to vector<32x1xf32>
    %122 = vector.extract_strided_slice %119 {offsets = [0, 0], sizes = [32, 288], strides = [1, 1]} : vector<128x288xf32> to vector<32x288xf32>
    %123 = vector.extract_strided_slice %119 {offsets = [32, 0], sizes = [32, 288], strides = [1, 1]} : vector<128x288xf32> to vector<32x288xf32>
    %124 = vector.extract_strided_slice %119 {offsets = [64, 0], sizes = [32, 288], strides = [1, 1]} : vector<128x288xf32> to vector<32x288xf32>
    %125 = vector.extract_strided_slice %119 {offsets = [96, 0], sizes = [32, 288], strides = [1, 1]} : vector<128x288xf32> to vector<32x288xf32>
    %126 = arith.mulf %122, %122 : vector<32x288xf32>
    %127 = arith.addf %122, %123 : vector<32x288xf32>
    %128 = arith.mulf %123, %123 : vector<32x288xf32>
    %129 = arith.addf %126, %128 : vector<32x288xf32>
    %130 = arith.addf %127, %124 : vector<32x288xf32>
    %131 = arith.mulf %124, %124 : vector<32x288xf32>
    %132 = arith.addf %129, %131 : vector<32x288xf32>
    %133 = arith.addf %130, %125 : vector<32x288xf32>
    %134 = arith.mulf %125, %125 : vector<32x288xf32>
    %135 = arith.addf %132, %134 : vector<32x288xf32>
    %cst_26 = arith.constant dense<0.000000e+00> : vector<32xf32>
    %136 = vector.multi_reduction <add>, %133, %cst_26 [1] : vector<32x288xf32> to vector<32xf32>
    %137 = vector.shape_cast %136 : vector<32xf32> to vector<32x1xf32>
    %cst_27 = arith.constant 8.68055562E-4 : f32
    %138 = vector.broadcast %cst_27 : f32 to vector<32x1xf32>
    %139 = arith.mulf %137, %138 : vector<32x1xf32>
    %cst_28 = arith.constant dense<0.000000e+00> : vector<32xf32>
    %140 = vector.multi_reduction <add>, %135, %cst_28 [1] : vector<32x288xf32> to vector<32xf32>
    %141 = vector.shape_cast %140 : vector<32xf32> to vector<32x1xf32>
    %cst_29 = arith.constant 8.68055562E-4 : f32
    %142 = vector.broadcast %cst_29 : f32 to vector<32x1xf32>
    %143 = arith.mulf %141, %142 : vector<32x1xf32>
    %144 = arith.mulf %139, %139 : vector<32x1xf32>
    %145 = arith.subf %143, %144 : vector<32x1xf32>
    %cst_30 = arith.constant 0.000000e+00 : f32
    %146 = vector.broadcast %cst_30 : f32 to vector<32x1xf32>
    %147 = arith.maximumf %145, %146 : vector<32x1xf32>
    %cst_31 = arith.constant 9.99999974E-6 : f32
    %148 = vector.broadcast %cst_31 : f32 to vector<32x1xf32>
    %149 = arith.addf %147, %148 : vector<32x1xf32>
    %150 = math.rsqrt %149 : vector<32x1xf32>
    %151 = arith.mulf %120, %150 : vector<32x1xf32>
    %152 = arith.mulf %139, %151 : vector<32x1xf32>
    %153 = arith.subf %121, %152 : vector<32x1xf32>
    %154 = vector.broadcast %151 : vector<32x1xf32> to vector<32x288xf32>
    %155 = arith.mulf %122, %154 : vector<32x288xf32>
    %156 = vector.broadcast %153 : vector<32x1xf32> to vector<32x288xf32>
    %157 = arith.addf %155, %156 : vector<32x288xf32>
    %cst_32 = arith.constant 5.000000e-01 : f32
    %158 = vector.broadcast %cst_32 : f32 to vector<32x288xf32>
    %159 = arith.mulf %158, %157 : vector<32x288xf32>
    %cst_33 = arith.constant 4.471500e-02 : f32
    %160 = vector.broadcast %cst_33 : f32 to vector<32x288xf32>
    %161 = arith.mulf %160, %157 : vector<32x288xf32>
    %162 = arith.mulf %161, %157 : vector<32x288xf32>
    %163 = arith.mulf %162, %157 : vector<32x288xf32>
    %164 = arith.addf %157, %163 : vector<32x288xf32>
    %cst_34 = arith.constant 0.797884583 : f32
    %165 = vector.broadcast %cst_34 : f32 to vector<32x288xf32>
    %166 = arith.mulf %165, %164 : vector<32x288xf32>
    %167 = math.tanh %166 : vector<32x288xf32>
    %cst_35 = arith.constant 1.000000e+00 : f32
    %168 = vector.broadcast %cst_35 : f32 to vector<32x288xf32>
    %169 = arith.addf %168, %167 : vector<32x288xf32>
    %170 = arith.mulf %159, %169 : vector<32x288xf32>
    %171 = vector.broadcast %151 : vector<32x1xf32> to vector<32x288xf32>
    %172 = arith.mulf %123, %171 : vector<32x288xf32>
    %173 = vector.broadcast %153 : vector<32x1xf32> to vector<32x288xf32>
    %174 = arith.addf %172, %173 : vector<32x288xf32>
    %cst_36 = arith.constant 5.000000e-01 : f32
    %175 = vector.broadcast %cst_36 : f32 to vector<32x288xf32>
    %176 = arith.mulf %175, %174 : vector<32x288xf32>
    %cst_37 = arith.constant 4.471500e-02 : f32
    %177 = vector.broadcast %cst_37 : f32 to vector<32x288xf32>
    %178 = arith.mulf %177, %174 : vector<32x288xf32>
    %179 = arith.mulf %178, %174 : vector<32x288xf32>
    %180 = arith.mulf %179, %174 : vector<32x288xf32>
    %181 = arith.addf %174, %180 : vector<32x288xf32>
    %cst_38 = arith.constant 0.797884583 : f32
    %182 = vector.broadcast %cst_38 : f32 to vector<32x288xf32>
    %183 = arith.mulf %182, %181 : vector<32x288xf32>
    %184 = math.tanh %183 : vector<32x288xf32>
    %cst_39 = arith.constant 1.000000e+00 : f32
    %185 = vector.broadcast %cst_39 : f32 to vector<32x288xf32>
    %186 = arith.addf %185, %184 : vector<32x288xf32>
    %187 = arith.mulf %176, %186 : vector<32x288xf32>
    %188 = vector.broadcast %151 : vector<32x1xf32> to vector<32x288xf32>
    %189 = arith.mulf %124, %188 : vector<32x288xf32>
    %190 = vector.broadcast %153 : vector<32x1xf32> to vector<32x288xf32>
    %191 = arith.addf %189, %190 : vector<32x288xf32>
    %cst_40 = arith.constant 5.000000e-01 : f32
    %192 = vector.broadcast %cst_40 : f32 to vector<32x288xf32>
    %193 = arith.mulf %192, %191 : vector<32x288xf32>
    %cst_41 = arith.constant 4.471500e-02 : f32
    %194 = vector.broadcast %cst_41 : f32 to vector<32x288xf32>
    %195 = arith.mulf %194, %191 : vector<32x288xf32>
    %196 = arith.mulf %195, %191 : vector<32x288xf32>
    %197 = arith.mulf %196, %191 : vector<32x288xf32>
    %198 = arith.addf %191, %197 : vector<32x288xf32>
    %cst_42 = arith.constant 0.797884583 : f32
    %199 = vector.broadcast %cst_42 : f32 to vector<32x288xf32>
    %200 = arith.mulf %199, %198 : vector<32x288xf32>
    %201 = math.tanh %200 : vector<32x288xf32>
    %cst_43 = arith.constant 1.000000e+00 : f32
    %202 = vector.broadcast %cst_43 : f32 to vector<32x288xf32>
    %203 = arith.addf %202, %201 : vector<32x288xf32>
    %204 = arith.mulf %193, %203 : vector<32x288xf32>
    %205 = vector.broadcast %151 : vector<32x1xf32> to vector<32x288xf32>
    %206 = arith.mulf %125, %205 : vector<32x288xf32>
    %207 = vector.broadcast %153 : vector<32x1xf32> to vector<32x288xf32>
    %208 = arith.addf %206, %207 : vector<32x288xf32>
    %cst_44 = arith.constant 5.000000e-01 : f32
    %209 = vector.broadcast %cst_44 : f32 to vector<32x288xf32>
    %210 = arith.mulf %209, %208 : vector<32x288xf32>
    %cst_45 = arith.constant 4.471500e-02 : f32
    %211 = vector.broadcast %cst_45 : f32 to vector<32x288xf32>
    %212 = arith.mulf %211, %208 : vector<32x288xf32>
    %213 = arith.mulf %212, %208 : vector<32x288xf32>
    %214 = arith.mulf %213, %208 : vector<32x288xf32>
    %215 = arith.addf %208, %214 : vector<32x288xf32>
    %cst_46 = arith.constant 0.797884583 : f32
    %216 = vector.broadcast %cst_46 : f32 to vector<32x288xf32>
    %217 = arith.mulf %216, %215 : vector<32x288xf32>
    %218 = math.tanh %217 : vector<32x288xf32>
    %cst_47 = arith.constant 1.000000e+00 : f32
    %219 = vector.broadcast %cst_47 : f32 to vector<32x288xf32>
    %220 = arith.addf %219, %218 : vector<32x288xf32>
    %221 = arith.mulf %210, %220 : vector<32x288xf32>
    %222 = arith.truncf %170 : vector<32x288xf32> to vector<32x288xbf16>
    %c0_48 = arith.constant 0 : index
    %c0_49 = arith.constant 0 : index
    %223 = vector.load %arg7[%c0_48, %c0_49] : memref<512x288xbf16, #tpu.memory_space<vmem>>, vector<32x288xbf16>
    tpu.vector_store %arg7[%c0_48, %c0_49], %222 {strides = array<i32>} : memref<512x288xbf16, #tpu.memory_space<vmem>>, vector<32x288xbf16>,
    %224 = vector.extract_strided_slice %3 {offsets = [3, 0], sizes = [1, 288], strides = [1, 1]} : vector<4x288xf32> to vector<1x288xf32>
    %225 = vector.extract_strided_slice %170 {offsets = [0, 1], sizes = [32, 287], strides = [1, 1]} : vector<32x288xf32> to vector<32x287xf32>
    %226 = vector.extract_strided_slice %224 {offsets = [0, 0], sizes = [1, 287], strides = [1, 1]} : vector<1x288xf32> to vector<1x287xf32>
    %227 = vector.broadcast %226 : vector<1x287xf32> to vector<32x287xf32>
    %228 = arith.mulf %225, %227 : vector<32x287xf32>
    %229 = arith.truncf %228 : vector<32x287xf32> to vector<32x287xbf16>
    %c32_50 = arith.constant 32 : index
    %c0_51 = arith.constant 0 : index
    %230 = vector.load %arg7[%c32_50, %c0_51] : memref<512x288xbf16, #tpu.memory_space<vmem>>, vector<32x287xbf16>
    tpu.vector_store %arg7[%c32_50, %c0_51], %229 {strides = array<i32>} : memref<512x288xbf16, #tpu.memory_space<vmem>>, vector<32x287xbf16>,
    %cst_52 = arith.constant 0.000000e+00 : bf16
    %231 = vector.broadcast %cst_52 : bf16 to vector<32x1xbf16>
    %c32_53 = arith.constant 32 : index
    %c287 = arith.constant 287 : index
    %232 = vector.load %arg7[%c32_53, %c287] : memref<512x288xbf16, #tpu.memory_space<vmem>>, vector<32x1xbf16>
    tpu.vector_store %arg7[%c32_53, %c287], %231 {strides = array<i32>} : memref<512x288xbf16, #tpu.memory_space<vmem>>, vector<32x1xbf16>,
    %233 = arith.truncf %187 : vector<32x288xf32> to vector<32x288xbf16>
    %c64_54 = arith.constant 64 : index
    %c0_55 = arith.constant 0 : index
    %234 = vector.load %arg7[%c64_54, %c0_55] : memref<512x288xbf16, #tpu.memory_space<vmem>>, vector<32x288xbf16>
    tpu.vector_store %arg7[%c64_54, %c0_55], %233 {strides = array<i32>} : memref<512x288xbf16, #tpu.memory_space<vmem>>, vector<32x288xbf16>,
    %235 = vector.extract_strided_slice %3 {offsets = [2, 0], sizes = [1, 288], strides = [1, 1]} : vector<4x288xf32> to vector<1x288xf32>
    %236 = vector.extract_strided_slice %187 {offsets = [0, 0], sizes = [32, 287], strides = [1, 1]} : vector<32x288xf32> to vector<32x287xf32>
    %237 = vector.extract_strided_slice %235 {offsets = [0, 1], sizes = [1, 287], strides = [1, 1]} : vector<1x288xf32> to vector<1x287xf32>
    %238 = vector.broadcast %237 : vector<1x287xf32> to vector<32x287xf32>
    %239 = arith.mulf %236, %238 : vector<32x287xf32>
    %240 = arith.truncf %239 : vector<32x287xf32> to vector<32x287xbf16>
    %c96_56 = arith.constant 96 : index
    %c1 = arith.constant 1 : index
    %241 = vector.load %arg7[%c96_56, %c1] : memref<512x288xbf16, #tpu.memory_space<vmem>>, vector<32x287xbf16>
    tpu.vector_store %arg7[%c96_56, %c1], %240 {strides = array<i32>} : memref<512x288xbf16, #tpu.memory_space<vmem>>, vector<32x287xbf16>,
    %cst_57 = arith.constant 0.000000e+00 : bf16
    %242 = vector.broadcast %cst_57 : bf16 to vector<32x1xbf16>
    %c96_58 = arith.constant 96 : index
    %c0_59 = arith.constant 0 : index
    %243 = vector.load %arg7[%c96_58, %c0_59] : memref<512x288xbf16, #tpu.memory_space<vmem>>, vector<32x1xbf16>
    tpu.vector_store %arg7[%c96_58, %c0_59], %242 {strides = array<i32>} : memref<512x288xbf16, #tpu.memory_space<vmem>>, vector<32x1xbf16>,
    %244 = vector.extract_strided_slice %3 {offsets = [1, 0], sizes = [1, 288], strides = [1, 1]} : vector<4x288xf32> to vector<1x288xf32>
    %245 = vector.extract_strided_slice %170 {offsets = [0, 12], sizes = [32, 276], strides = [1, 1]} : vector<32x288xf32> to vector<32x276xf32>
    %246 = vector.extract_strided_slice %244 {offsets = [0, 0], sizes = [1, 276], strides = [1, 1]} : vector<1x288xf32> to vector<1x276xf32>
    %247 = vector.broadcast %246 : vector<1x276xf32> to vector<32x276xf32>
    %248 = arith.mulf %245, %247 : vector<32x276xf32>
    %249 = arith.truncf %248 : vector<32x276xf32> to vector<32x276xbf16>
    %c128_60 = arith.constant 128 : index
    %c0_61 = arith.constant 0 : index
    %250 = vector.load %arg7[%c128_60, %c0_61] : memref<512x288xbf16, #tpu.memory_space<vmem>>, vector<32x276xbf16>
    tpu.vector_store %arg7[%c128_60, %c0_61], %249 {strides = array<i32>} : memref<512x288xbf16, #tpu.memory_space<vmem>>, vector<32x276xbf16>,
    %cst_62 = arith.constant 0.000000e+00 : bf16
    %251 = vector.broadcast %cst_62 : bf16 to vector<32x12xbf16>
    %c128_63 = arith.constant 128 : index
    %c276 = arith.constant 276 : index
    %252 = vector.load %arg7[%c128_63, %c276] : memref<512x288xbf16, #tpu.memory_space<vmem>>, vector<32x12xbf16>
    tpu.vector_store %arg7[%c128_63, %c276], %251 {strides = array<i32>} : memref<512x288xbf16, #tpu.memory_space<vmem>>, vector<32x12xbf16>,
    %253 = vector.extract_strided_slice %3 {offsets = [1, 0], sizes = [1, 288], strides = [1, 1]} : vector<4x288xf32> to vector<1x288xf32>
    %254 = vector.extract_strided_slice %3 {offsets = [3, 0], sizes = [1, 288], strides = [1, 1]} : vector<4x288xf32> to vector<1x288xf32>
    %255 = arith.mulf %253, %254 : vector<1x288xf32>
    %256 = vector.extract_strided_slice %170 {offsets = [0, 13], sizes = [32, 275], strides = [1, 1]} : vector<32x288xf32> to vector<32x275xf32>
    %257 = vector.extract_strided_slice %255 {offsets = [0, 0], sizes = [1, 275], strides = [1, 1]} : vector<1x288xf32> to vector<1x275xf32>
    %258 = vector.broadcast %257 : vector<1x275xf32> to vector<32x275xf32>
    %259 = arith.mulf %256, %258 : vector<32x275xf32>
    %260 = arith.truncf %259 : vector<32x275xf32> to vector<32x275xbf16>
    %c160 = arith.constant 160 : index
    %c0_64 = arith.constant 0 : index
    %261 = vector.load %arg7[%c160, %c0_64] : memref<512x288xbf16, #tpu.memory_space<vmem>>, vector<32x275xbf16>
    tpu.vector_store %arg7[%c160, %c0_64], %260 {strides = array<i32>} : memref<512x288xbf16, #tpu.memory_space<vmem>>, vector<32x275xbf16>,
    %cst_65 = arith.constant 0.000000e+00 : bf16
    %262 = vector.broadcast %cst_65 : bf16 to vector<32x13xbf16>
    %c160_66 = arith.constant 160 : index
    %c275 = arith.constant 275 : index
    %263 = vector.load %arg7[%c160_66, %c275] : memref<512x288xbf16, #tpu.memory_space<vmem>>, vector<32x13xbf16>
    tpu.vector_store %arg7[%c160_66, %c275], %262 {strides = array<i32>} : memref<512x288xbf16, #tpu.memory_space<vmem>>, vector<32x13xbf16>,
    %264 = vector.extract_strided_slice %3 {offsets = [1, 0], sizes = [1, 288], strides = [1, 1]} : vector<4x288xf32> to vector<1x288xf32>
    %265 = vector.extract_strided_slice %187 {offsets = [0, 12], sizes = [32, 276], strides = [1, 1]} : vector<32x288xf32> to vector<32x276xf32>
    %266 = vector.extract_strided_slice %264 {offsets = [0, 0], sizes = [1, 276], strides = [1, 1]} : vector<1x288xf32> to vector<1x276xf32>
    %267 = vector.broadcast %266 : vector<1x276xf32> to vector<32x276xf32>
    %268 = arith.mulf %265, %267 : vector<32x276xf32>
    %269 = arith.truncf %268 : vector<32x276xf32> to vector<32x276xbf16>
    %c192 = arith.constant 192 : index
    %c0_67 = arith.constant 0 : index
    %270 = vector.load %arg7[%c192, %c0_67] : memref<512x288xbf16, #tpu.memory_space<vmem>>, vector<32x276xbf16>
    tpu.vector_store %arg7[%c192, %c0_67], %269 {strides = array<i32>} : memref<512x288xbf16, #tpu.memory_space<vmem>>, vector<32x276xbf16>,
    %cst_68 = arith.constant 0.000000e+00 : bf16
    %271 = vector.broadcast %cst_68 : bf16 to vector<32x12xbf16>
    %c192_69 = arith.constant 192 : index
    %c276_70 = arith.constant 276 : index
    %272 = vector.load %arg7[%c192_69, %c276_70] : memref<512x288xbf16, #tpu.memory_space<vmem>>, vector<32x12xbf16>
    tpu.vector_store %arg7[%c192_69, %c276_70], %271 {strides = array<i32>} : memref<512x288xbf16, #tpu.memory_space<vmem>>, vector<32x12xbf16>,
    %273 = vector.extract_strided_slice %3 {offsets = [1, 0], sizes = [1, 288], strides = [1, 1]} : vector<4x288xf32> to vector<1x288xf32>
    %274 = vector.extract_strided_slice %3 {offsets = [2, 0], sizes = [1, 288], strides = [1, 1]} : vector<4x288xf32> to vector<1x288xf32>
    %275 = arith.mulf %273, %274 : vector<1x288xf32>
    %276 = vector.extract_strided_slice %187 {offsets = [0, 11], sizes = [32, 277], strides = [1, 1]} : vector<32x288xf32> to vector<32x277xf32>
    %277 = vector.extract_strided_slice %275 {offsets = [0, 0], sizes = [1, 277], strides = [1, 1]} : vector<1x288xf32> to vector<1x277xf32>
    %278 = vector.broadcast %277 : vector<1x277xf32> to vector<32x277xf32>
    %279 = arith.mulf %276, %278 : vector<32x277xf32>
    %280 = arith.truncf %279 : vector<32x277xf32> to vector<32x277xbf16>
    %c224 = arith.constant 224 : index
    %c0_71 = arith.constant 0 : index
    %281 = vector.load %arg7[%c224, %c0_71] : memref<512x288xbf16, #tpu.memory_space<vmem>>, vector<32x277xbf16>
    tpu.vector_store %arg7[%c224, %c0_71], %280 {strides = array<i32>} : memref<512x288xbf16, #tpu.memory_space<vmem>>, vector<32x277xbf16>,
    %cst_72 = arith.constant 0.000000e+00 : bf16
    %282 = vector.broadcast %cst_72 : bf16 to vector<32x11xbf16>
    %c224_73 = arith.constant 224 : index
    %c277 = arith.constant 277 : index
    %283 = vector.load %arg7[%c224_73, %c277] : memref<512x288xbf16, #tpu.memory_space<vmem>>, vector<32x11xbf16>
    tpu.vector_store %arg7[%c224_73, %c277], %282 {strides = array<i32>} : memref<512x288xbf16, #tpu.memory_space<vmem>>, vector<32x11xbf16>,
    %284 = arith.truncf %204 : vector<32x288xf32> to vector<32x288xbf16>
    %c256 = arith.constant 256 : index
    %c0_74 = arith.constant 0 : index
    %285 = vector.load %arg7[%c256, %c0_74] : memref<512x288xbf16, #tpu.memory_space<vmem>>, vector<32x288xbf16>
    tpu.vector_store %arg7[%c256, %c0_74], %284 {strides = array<i32>} : memref<512x288xbf16, #tpu.memory_space<vmem>>, vector<32x288xbf16>,
    %286 = vector.extract_strided_slice %3 {offsets = [3, 0], sizes = [1, 288], strides = [1, 1]} : vector<4x288xf32> to vector<1x288xf32>
    %287 = vector.extract_strided_slice %204 {offsets = [0, 1], sizes = [32, 287], strides = [1, 1]} : vector<32x288xf32> to vector<32x287xf32>
    %288 = vector.extract_strided_slice %286 {offsets = [0, 0], sizes = [1, 287], strides = [1, 1]} : vector<1x288xf32> to vector<1x287xf32>
    %289 = vector.broadcast %288 : vector<1x287xf32> to vector<32x287xf32>
    %290 = arith.mulf %287, %289 : vector<32x287xf32>
    %291 = arith.truncf %290 : vector<32x287xf32> to vector<32x287xbf16>
    %c288 = arith.constant 288 : index
    %c0_75 = arith.constant 0 : index
    %292 = vector.load %arg7[%c288, %c0_75] : memref<512x288xbf16, #tpu.memory_space<vmem>>, vector<32x287xbf16>
    tpu.vector_store %arg7[%c288, %c0_75], %291 {strides = array<i32>} : memref<512x288xbf16, #tpu.memory_space<vmem>>, vector<32x287xbf16>,
    %cst_76 = arith.constant 0.000000e+00 : bf16
    %293 = vector.broadcast %cst_76 : bf16 to vector<32x1xbf16>
    %c288_77 = arith.constant 288 : index
    %c287_78 = arith.constant 287 : index
    %294 = vector.load %arg7[%c288_77, %c287_78] : memref<512x288xbf16, #tpu.memory_space<vmem>>, vector<32x1xbf16>
    tpu.vector_store %arg7[%c288_77, %c287_78], %293 {strides = array<i32>} : memref<512x288xbf16, #tpu.memory_space<vmem>>, vector<32x1xbf16>,
    %295 = arith.truncf %221 : vector<32x288xf32> to vector<32x288xbf16>
    %c320 = arith.constant 320 : index
    %c0_79 = arith.constant 0 : index
    %296 = vector.load %arg7[%c320, %c0_79] : memref<512x288xbf16, #tpu.memory_space<vmem>>, vector<32x288xbf16>
    tpu.vector_store %arg7[%c320, %c0_79], %295 {strides = array<i32>} : memref<512x288xbf16, #tpu.memory_space<vmem>>, vector<32x288xbf16>,
    %297 = vector.extract_strided_slice %3 {offsets = [2, 0], sizes = [1, 288], strides = [1, 1]} : vector<4x288xf32> to vector<1x288xf32>
    %298 = vector.extract_strided_slice %221 {offsets = [0, 0], sizes = [32, 287], strides = [1, 1]} : vector<32x288xf32> to vector<32x287xf32>
    %299 = vector.extract_strided_slice %297 {offsets = [0, 1], sizes = [1, 287], strides = [1, 1]} : vector<1x288xf32> to vector<1x287xf32>
    %300 = vector.broadcast %299 : vector<1x287xf32> to vector<32x287xf32>
    %301 = arith.mulf %298, %300 : vector<32x287xf32>
    %302 = arith.truncf %301 : vector<32x287xf32> to vector<32x287xbf16>
    %c352 = arith.constant 352 : index
    %c1_80 = arith.constant 1 : index
    %303 = vector.load %arg7[%c352, %c1_80] : memref<512x288xbf16, #tpu.memory_space<vmem>>, vector<32x287xbf16>
    tpu.vector_store %arg7[%c352, %c1_80], %302 {strides = array<i32>} : memref<512x288xbf16, #tpu.memory_space<vmem>>, vector<32x287xbf16>,
    %cst_81 = arith.constant 0.000000e+00 : bf16
    %304 = vector.broadcast %cst_81 : bf16 to vector<32x1xbf16>
    %c352_82 = arith.constant 352 : index
    %c0_83 = arith.constant 0 : index
    %305 = vector.load %arg7[%c352_82, %c0_83] : memref<512x288xbf16, #tpu.memory_space<vmem>>, vector<32x1xbf16>
    tpu.vector_store %arg7[%c352_82, %c0_83], %304 {strides = array<i32>} : memref<512x288xbf16, #tpu.memory_space<vmem>>, vector<32x1xbf16>,
    %306 = vector.extract_strided_slice %3 {offsets = [0, 0], sizes = [1, 288], strides = [1, 1]} : vector<4x288xf32> to vector<1x288xf32>
    %307 = vector.extract_strided_slice %204 {offsets = [0, 0], sizes = [32, 276], strides = [1, 1]} : vector<32x288xf32> to vector<32x276xf32>
    %308 = vector.extract_strided_slice %306 {offsets = [0, 12], sizes = [1, 276], strides = [1, 1]} : vector<1x288xf32> to vector<1x276xf32>
    %309 = vector.broadcast %308 : vector<1x276xf32> to vector<32x276xf32>
    %310 = arith.mulf %307, %309 : vector<32x276xf32>
    %311 = arith.truncf %310 : vector<32x276xf32> to vector<32x276xbf16>
    %c384 = arith.constant 384 : index
    %c12 = arith.constant 12 : index
    %312 = vector.load %arg7[%c384, %c12] : memref<512x288xbf16, #tpu.memory_space<vmem>>, vector<32x276xbf16>
    tpu.vector_store %arg7[%c384, %c12], %311 {strides = array<i32>} : memref<512x288xbf16, #tpu.memory_space<vmem>>, vector<32x276xbf16>,
    %cst_84 = arith.constant 0.000000e+00 : bf16
    %313 = vector.broadcast %cst_84 : bf16 to vector<32x12xbf16>
    %c384_85 = arith.constant 384 : index
    %c0_86 = arith.constant 0 : index
    %314 = vector.load %arg7[%c384_85, %c0_86] : memref<512x288xbf16, #tpu.memory_space<vmem>>, vector<32x12xbf16>
    tpu.vector_store %arg7[%c384_85, %c0_86], %313 {strides = array<i32>} : memref<512x288xbf16, #tpu.memory_space<vmem>>, vector<32x12xbf16>,
    %315 = vector.extract_strided_slice %3 {offsets = [0, 0], sizes = [1, 288], strides = [1, 1]} : vector<4x288xf32> to vector<1x288xf32>
    %316 = vector.extract_strided_slice %3 {offsets = [3, 0], sizes = [1, 288], strides = [1, 1]} : vector<4x288xf32> to vector<1x288xf32>
    %317 = arith.mulf %315, %316 : vector<1x288xf32>
    %318 = vector.extract_strided_slice %204 {offsets = [0, 0], sizes = [32, 277], strides = [1, 1]} : vector<32x288xf32> to vector<32x277xf32>
    %319 = vector.extract_strided_slice %317 {offsets = [0, 11], sizes = [1, 277], strides = [1, 1]} : vector<1x288xf32> to vector<1x277xf32>
    %320 = vector.broadcast %319 : vector<1x277xf32> to vector<32x277xf32>
    %321 = arith.mulf %318, %320 : vector<32x277xf32>
    %322 = arith.truncf %321 : vector<32x277xf32> to vector<32x277xbf16>
    %c416 = arith.constant 416 : index
    %c11 = arith.constant 11 : index
    %323 = vector.load %arg7[%c416, %c11] : memref<512x288xbf16, #tpu.memory_space<vmem>>, vector<32x277xbf16>
    tpu.vector_store %arg7[%c416, %c11], %322 {strides = array<i32>} : memref<512x288xbf16, #tpu.memory_space<vmem>>, vector<32x277xbf16>,
    %cst_87 = arith.constant 0.000000e+00 : bf16
    %324 = vector.broadcast %cst_87 : bf16 to vector<32x11xbf16>
    %c416_88 = arith.constant 416 : index
    %c0_89 = arith.constant 0 : index
    %325 = vector.load %arg7[%c416_88, %c0_89] : memref<512x288xbf16, #tpu.memory_space<vmem>>, vector<32x11xbf16>
    tpu.vector_store %arg7[%c416_88, %c0_89], %324 {strides = array<i32>} : memref<512x288xbf16, #tpu.memory_space<vmem>>, vector<32x11xbf16>,
    %326 = vector.extract_strided_slice %3 {offsets = [0, 0], sizes = [1, 288], strides = [1, 1]} : vector<4x288xf32> to vector<1x288xf32>
    %327 = vector.extract_strided_slice %221 {offsets = [0, 0], sizes = [32, 276], strides = [1, 1]} : vector<32x288xf32> to vector<32x276xf32>
    %328 = vector.extract_strided_slice %326 {offsets = [0, 12], sizes = [1, 276], strides = [1, 1]} : vector<1x288xf32> to vector<1x276xf32>
    %329 = vector.broadcast %328 : vector<1x276xf32> to vector<32x276xf32>
    %330 = arith.mulf %327, %329 : vector<32x276xf32>
    %331 = arith.truncf %330 : vector<32x276xf32> to vector<32x276xbf16>
    %c448 = arith.constant 448 : index
    %c12_90 = arith.constant 12 : index
    %332 = vector.load %arg7[%c448, %c12_90] : memref<512x288xbf16, #tpu.memory_space<vmem>>, vector<32x276xbf16>
    tpu.vector_store %arg7[%c448, %c12_90], %331 {strides = array<i32>} : memref<512x288xbf16, #tpu.memory_space<vmem>>, vector<32x276xbf16>,
    %cst_91 = arith.constant 0.000000e+00 : bf16
    %333 = vector.broadcast %cst_91 : bf16 to vector<32x12xbf16>
    %c448_92 = arith.constant 448 : index
    %c0_93 = arith.constant 0 : index
    %334 = vector.load %arg7[%c448_92, %c0_93] : memref<512x288xbf16, #tpu.memory_space<vmem>>, vector<32x12xbf16>
    tpu.vector_store %arg7[%c448_92, %c0_93], %333 {strides = array<i32>} : memref<512x288xbf16, #tpu.memory_space<vmem>>, vector<32x12xbf16>,
    %335 = vector.extract_strided_slice %3 {offsets = [0, 0], sizes = [1, 288], strides = [1, 1]} : vector<4x288xf32> to vector<1x288xf32>
    %336 = vector.extract_strided_slice %3 {offsets = [2, 0], sizes = [1, 288], strides = [1, 1]} : vector<4x288xf32> to vector<1x288xf32>
    %337 = arith.mulf %335, %336 : vector<1x288xf32>
    %338 = vector.extract_strided_slice %221 {offsets = [0, 0], sizes = [32, 275], strides = [1, 1]} : vector<32x288xf32> to vector<32x275xf32>
    %339 = vector.extract_strided_slice %337 {offsets = [0, 13], sizes = [1, 275], strides = [1, 1]} : vector<1x288xf32> to vector<1x275xf32>
    %340 = vector.broadcast %339 : vector<1x275xf32> to vector<32x275xf32>
    %341 = arith.mulf %338, %340 : vector<32x275xf32>
    %342 = arith.truncf %341 : vector<32x275xf32> to vector<32x275xbf16>
    %c480 = arith.constant 480 : index
    %c13 = arith.constant 13 : index
    %343 = vector.load %arg7[%c480, %c13] : memref<512x288xbf16, #tpu.memory_space<vmem>>, vector<32x275xbf16>
    tpu.vector_store %arg7[%c480, %c13], %342 {strides = array<i32>} : memref<512x288xbf16, #tpu.memory_space<vmem>>, vector<32x275xbf16>,
    %cst_94 = arith.constant 0.000000e+00 : bf16
    %344 = vector.broadcast %cst_94 : bf16 to vector<32x13xbf16>
    %c480_95 = arith.constant 480 : index
    %c0_96 = arith.constant 0 : index
    %345 = vector.load %arg7[%c480_95, %c0_96] : memref<512x288xbf16, #tpu.memory_space<vmem>>, vector<32x13xbf16>
    tpu.vector_store %arg7[%c480_95, %c0_96], %344 {strides = array<i32>} : memref<512x288xbf16, #tpu.memory_space<vmem>>, vector<32x13xbf16>,
    %c0_97 = arith.constant 0 : index
    %c0_98 = arith.constant 0 : index
    %346 = vector.load %arg4[%c0_97, %c0_98] : memref<64x512xbf16, #tpu.memory_space<vmem>>, vector<64x512xbf16>
    %c0_99 = arith.constant 0 : index
    %c0_100 = arith.constant 0 : index
    %347 = vector.load %arg7[%c0_99, %c0_100] : memref<512x288xbf16, #tpu.memory_space<vmem>>, vector<512x288xbf16>
    %cst_101 = arith.constant dense<0.000000e+00> : vector<64x288xf32>
    %348 = tpu.matmul %346, %347, %cst_101 {dimension_numbers = #tpu.dot_dimension_numbers<[1], [0], [0], [1], [0, 0, 1, 1], [], []>} : vector<64x512xbf16>, vector<512x288xbf16>, vector<64x288xf32> -> vector<64x288xf32>
    %349 = vector.extract_strided_slice %4 {offsets = [64, 0], sizes = [16, 1], strides = [1, 1]} : vector<96x1xf32> to vector<16x1xf32>
    %350 = vector.extract_strided_slice %4 {offsets = [80, 0], sizes = [16, 1], strides = [1, 1]} : vector<96x1xf32> to vector<16x1xf32>
    %351 = vector.extract_strided_slice %348 {offsets = [0, 0], sizes = [16, 288], strides = [1, 1]} : vector<64x288xf32> to vector<16x288xf32>
    %352 = vector.extract_strided_slice %348 {offsets = [16, 0], sizes = [16, 288], strides = [1, 1]} : vector<64x288xf32> to vector<16x288xf32>
    %353 = vector.extract_strided_slice %348 {offsets = [32, 0], sizes = [16, 288], strides = [1, 1]} : vector<64x288xf32> to vector<16x288xf32>
    %354 = vector.extract_strided_slice %348 {offsets = [48, 0], sizes = [16, 288], strides = [1, 1]} : vector<64x288xf32> to vector<16x288xf32>
    %355 = arith.mulf %351, %351 : vector<16x288xf32>
    %356 = arith.addf %351, %352 : vector<16x288xf32>
    %357 = arith.mulf %352, %352 : vector<16x288xf32>
    %358 = arith.addf %355, %357 : vector<16x288xf32>
    %359 = arith.addf %356, %353 : vector<16x288xf32>
    %360 = arith.mulf %353, %353 : vector<16x288xf32>
    %361 = arith.addf %358, %360 : vector<16x288xf32>
    %362 = arith.addf %359, %354 : vector<16x288xf32>
    %363 = arith.mulf %354, %354 : vector<16x288xf32>
    %364 = arith.addf %361, %363 : vector<16x288xf32>
    %cst_102 = arith.constant dense<0.000000e+00> : vector<16xf32>
    %365 = vector.multi_reduction <add>, %362, %cst_102 [1] : vector<16x288xf32> to vector<16xf32>
    %366 = vector.shape_cast %365 : vector<16xf32> to vector<16x1xf32>
    %cst_103 = arith.constant 8.68055562E-4 : f32
    %367 = vector.broadcast %cst_103 : f32 to vector<16x1xf32>
    %368 = arith.mulf %366, %367 : vector<16x1xf32>
    %cst_104 = arith.constant dense<0.000000e+00> : vector<16xf32>
    %369 = vector.multi_reduction <add>, %364, %cst_104 [1] : vector<16x288xf32> to vector<16xf32>
    %370 = vector.shape_cast %369 : vector<16xf32> to vector<16x1xf32>
    %cst_105 = arith.constant 8.68055562E-4 : f32
    %371 = vector.broadcast %cst_105 : f32 to vector<16x1xf32>
    %372 = arith.mulf %370, %371 : vector<16x1xf32>
    %373 = arith.mulf %368, %368 : vector<16x1xf32>
    %374 = arith.subf %372, %373 : vector<16x1xf32>
    %cst_106 = arith.constant 0.000000e+00 : f32
    %375 = vector.broadcast %cst_106 : f32 to vector<16x1xf32>
    %376 = arith.maximumf %374, %375 : vector<16x1xf32>
    %cst_107 = arith.constant 9.99999974E-6 : f32
    %377 = vector.broadcast %cst_107 : f32 to vector<16x1xf32>
    %378 = arith.addf %376, %377 : vector<16x1xf32>
    %379 = math.rsqrt %378 : vector<16x1xf32>
    %380 = arith.mulf %349, %379 : vector<16x1xf32>
    %381 = arith.mulf %368, %380 : vector<16x1xf32>
    %382 = arith.subf %350, %381 : vector<16x1xf32>
    %383 = vector.broadcast %380 : vector<16x1xf32> to vector<16x288xf32>
    %384 = arith.mulf %351, %383 : vector<16x288xf32>
    %385 = vector.broadcast %382 : vector<16x1xf32> to vector<16x288xf32>
    %386 = arith.addf %384, %385 : vector<16x288xf32>
    %cst_108 = arith.constant 5.000000e-01 : f32
    %387 = vector.broadcast %cst_108 : f32 to vector<16x288xf32>
    %388 = arith.mulf %387, %386 : vector<16x288xf32>
    %cst_109 = arith.constant 4.471500e-02 : f32
    %389 = vector.broadcast %cst_109 : f32 to vector<16x288xf32>
    %390 = arith.mulf %389, %386 : vector<16x288xf32>
    %391 = arith.mulf %390, %386 : vector<16x288xf32>
    %392 = arith.mulf %391, %386 : vector<16x288xf32>
    %393 = arith.addf %386, %392 : vector<16x288xf32>
    %cst_110 = arith.constant 0.797884583 : f32
    %394 = vector.broadcast %cst_110 : f32 to vector<16x288xf32>
    %395 = arith.mulf %394, %393 : vector<16x288xf32>
    %396 = math.tanh %395 : vector<16x288xf32>
    %cst_111 = arith.constant 1.000000e+00 : f32
    %397 = vector.broadcast %cst_111 : f32 to vector<16x288xf32>
    %398 = arith.addf %397, %396 : vector<16x288xf32>
    %399 = arith.mulf %388, %398 : vector<16x288xf32>
    %400 = vector.broadcast %380 : vector<16x1xf32> to vector<16x288xf32>
    %401 = arith.mulf %352, %400 : vector<16x288xf32>
    %402 = vector.broadcast %382 : vector<16x1xf32> to vector<16x288xf32>
    %403 = arith.addf %401, %402 : vector<16x288xf32>
    %cst_112 = arith.constant 5.000000e-01 : f32
    %404 = vector.broadcast %cst_112 : f32 to vector<16x288xf32>
    %405 = arith.mulf %404, %403 : vector<16x288xf32>
    %cst_113 = arith.constant 4.471500e-02 : f32
    %406 = vector.broadcast %cst_113 : f32 to vector<16x288xf32>
    %407 = arith.mulf %406, %403 : vector<16x288xf32>
    %408 = arith.mulf %407, %403 : vector<16x288xf32>
    %409 = arith.mulf %408, %403 : vector<16x288xf32>
    %410 = arith.addf %403, %409 : vector<16x288xf32>
    %cst_114 = arith.constant 0.797884583 : f32
    %411 = vector.broadcast %cst_114 : f32 to vector<16x288xf32>
    %412 = arith.mulf %411, %410 : vector<16x288xf32>
    %413 = math.tanh %412 : vector<16x288xf32>
    %cst_115 = arith.constant 1.000000e+00 : f32
    %414 = vector.broadcast %cst_115 : f32 to vector<16x288xf32>
    %415 = arith.addf %414, %413 : vector<16x288xf32>
    %416 = arith.mulf %405, %415 : vector<16x288xf32>
    %417 = vector.broadcast %380 : vector<16x1xf32> to vector<16x288xf32>
    %418 = arith.mulf %353, %417 : vector<16x288xf32>
    %419 = vector.broadcast %382 : vector<16x1xf32> to vector<16x288xf32>
    %420 = arith.addf %418, %419 : vector<16x288xf32>
    %cst_116 = arith.constant 5.000000e-01 : f32
    %421 = vector.broadcast %cst_116 : f32 to vector<16x288xf32>
    %422 = arith.mulf %421, %420 : vector<16x288xf32>
    %cst_117 = arith.constant 4.471500e-02 : f32
    %423 = vector.broadcast %cst_117 : f32 to vector<16x288xf32>
    %424 = arith.mulf %423, %420 : vector<16x288xf32>
    %425 = arith.mulf %424, %420 : vector<16x288xf32>
    %426 = arith.mulf %425, %420 : vector<16x288xf32>
    %427 = arith.addf %420, %426 : vector<16x288xf32>
    %cst_118 = arith.constant 0.797884583 : f32
    %428 = vector.broadcast %cst_118 : f32 to vector<16x288xf32>
    %429 = arith.mulf %428, %427 : vector<16x288xf32>
    %430 = math.tanh %429 : vector<16x288xf32>
    %cst_119 = arith.constant 1.000000e+00 : f32
    %431 = vector.broadcast %cst_119 : f32 to vector<16x288xf32>
    %432 = arith.addf %431, %430 : vector<16x288xf32>
    %433 = arith.mulf %422, %432 : vector<16x288xf32>
    %434 = vector.broadcast %380 : vector<16x1xf32> to vector<16x288xf32>
    %435 = arith.mulf %354, %434 : vector<16x288xf32>
    %436 = vector.broadcast %382 : vector<16x1xf32> to vector<16x288xf32>
    %437 = arith.addf %435, %436 : vector<16x288xf32>
    %cst_120 = arith.constant 5.000000e-01 : f32
    %438 = vector.broadcast %cst_120 : f32 to vector<16x288xf32>
    %439 = arith.mulf %438, %437 : vector<16x288xf32>
    %cst_121 = arith.constant 4.471500e-02 : f32
    %440 = vector.broadcast %cst_121 : f32 to vector<16x288xf32>
    %441 = arith.mulf %440, %437 : vector<16x288xf32>
    %442 = arith.mulf %441, %437 : vector<16x288xf32>
    %443 = arith.mulf %442, %437 : vector<16x288xf32>
    %444 = arith.addf %437, %443 : vector<16x288xf32>
    %cst_122 = arith.constant 0.797884583 : f32
    %445 = vector.broadcast %cst_122 : f32 to vector<16x288xf32>
    %446 = arith.mulf %445, %444 : vector<16x288xf32>
    %447 = math.tanh %446 : vector<16x288xf32>
    %cst_123 = arith.constant 1.000000e+00 : f32
    %448 = vector.broadcast %cst_123 : f32 to vector<16x288xf32>
    %449 = arith.addf %448, %447 : vector<16x288xf32>
    %450 = arith.mulf %439, %449 : vector<16x288xf32>
    %451 = arith.truncf %399 : vector<16x288xf32> to vector<16x288xbf16>
    %c0_124 = arith.constant 0 : index
    %c0_125 = arith.constant 0 : index
    %452 = vector.load %arg8[%c0_124, %c0_125] : memref<144x288xbf16, #tpu.memory_space<vmem>>, vector<16x288xbf16>
    tpu.vector_store %arg8[%c0_124, %c0_125], %451 {strides = array<i32>} : memref<144x288xbf16, #tpu.memory_space<vmem>>, vector<16x288xbf16>,
    %453 = arith.truncf %416 : vector<16x288xf32> to vector<16x288xbf16>
    %c16_126 = arith.constant 16 : index
    %c0_127 = arith.constant 0 : index
    %454 = vector.load %arg8[%c16_126, %c0_127] : memref<144x288xbf16, #tpu.memory_space<vmem>>, vector<16x288xbf16>
    tpu.vector_store %arg8[%c16_126, %c0_127], %453 {strides = array<i32>} : memref<144x288xbf16, #tpu.memory_space<vmem>>, vector<16x288xbf16>,
    %455 = vector.extract_strided_slice %3 {offsets = [3, 0], sizes = [1, 288], strides = [1, 1]} : vector<4x288xf32> to vector<1x288xf32>
    %456 = vector.extract_strided_slice %399 {offsets = [0, 1], sizes = [16, 287], strides = [1, 1]} : vector<16x288xf32> to vector<16x287xf32>
    %457 = vector.extract_strided_slice %455 {offsets = [0, 0], sizes = [1, 287], strides = [1, 1]} : vector<1x288xf32> to vector<1x287xf32>
    %458 = vector.broadcast %457 : vector<1x287xf32> to vector<16x287xf32>
    %459 = arith.mulf %456, %458 : vector<16x287xf32>
    %460 = arith.truncf %459 : vector<16x287xf32> to vector<16x287xbf16>
    %c32_128 = arith.constant 32 : index
    %c0_129 = arith.constant 0 : index
    %461 = vector.load %arg8[%c32_128, %c0_129] : memref<144x288xbf16, #tpu.memory_space<vmem>>, vector<16x287xbf16>
    tpu.vector_store %arg8[%c32_128, %c0_129], %460 {strides = array<i32>} : memref<144x288xbf16, #tpu.memory_space<vmem>>, vector<16x287xbf16>,
    %cst_130 = arith.constant 0.000000e+00 : bf16
    %462 = vector.broadcast %cst_130 : bf16 to vector<16x1xbf16>
    %c32_131 = arith.constant 32 : index
    %c287_132 = arith.constant 287 : index
    %463 = vector.load %arg8[%c32_131, %c287_132] : memref<144x288xbf16, #tpu.memory_space<vmem>>, vector<16x1xbf16>
    tpu.vector_store %arg8[%c32_131, %c287_132], %462 {strides = array<i32>} : memref<144x288xbf16, #tpu.memory_space<vmem>>, vector<16x1xbf16>,
    %464 = arith.truncf %433 : vector<16x288xf32> to vector<16x288xbf16>
    %c48_133 = arith.constant 48 : index
    %c0_134 = arith.constant 0 : index
    %465 = vector.load %arg8[%c48_133, %c0_134] : memref<144x288xbf16, #tpu.memory_space<vmem>>, vector<16x288xbf16>
    tpu.vector_store %arg8[%c48_133, %c0_134], %464 {strides = array<i32>} : memref<144x288xbf16, #tpu.memory_space<vmem>>, vector<16x288xbf16>,
    %466 = arith.truncf %450 : vector<16x288xf32> to vector<16x288xbf16>
    %c64_135 = arith.constant 64 : index
    %c0_136 = arith.constant 0 : index
    %467 = vector.load %arg8[%c64_135, %c0_136] : memref<144x288xbf16, #tpu.memory_space<vmem>>, vector<16x288xbf16>
    tpu.vector_store %arg8[%c64_135, %c0_136], %466 {strides = array<i32>} : memref<144x288xbf16, #tpu.memory_space<vmem>>, vector<16x288xbf16>,
    %468 = vector.extract_strided_slice %3 {offsets = [3, 0], sizes = [1, 288], strides = [1, 1]} : vector<4x288xf32> to vector<1x288xf32>
    %469 = vector.extract_strided_slice %433 {offsets = [0, 1], sizes = [16, 287], strides = [1, 1]} : vector<16x288xf32> to vector<16x287xf32>
    %470 = vector.extract_strided_slice %468 {offsets = [0, 0], sizes = [1, 287], strides = [1, 1]} : vector<1x288xf32> to vector<1x287xf32>
    %471 = vector.broadcast %470 : vector<1x287xf32> to vector<16x287xf32>
    %472 = arith.mulf %469, %471 : vector<16x287xf32>
    %473 = arith.truncf %472 : vector<16x287xf32> to vector<16x287xbf16>
    %c80_137 = arith.constant 80 : index
    %c0_138 = arith.constant 0 : index
    %474 = vector.load %arg8[%c80_137, %c0_138] : memref<144x288xbf16, #tpu.memory_space<vmem>>, vector<16x287xbf16>
    tpu.vector_store %arg8[%c80_137, %c0_138], %473 {strides = array<i32>} : memref<144x288xbf16, #tpu.memory_space<vmem>>, vector<16x287xbf16>,
    %cst_139 = arith.constant 0.000000e+00 : bf16
    %475 = vector.broadcast %cst_139 : bf16 to vector<16x1xbf16>
    %c80_140 = arith.constant 80 : index
    %c287_141 = arith.constant 287 : index
    %476 = vector.load %arg8[%c80_140, %c287_141] : memref<144x288xbf16, #tpu.memory_space<vmem>>, vector<16x1xbf16>
    tpu.vector_store %arg8[%c80_140, %c287_141], %475 {strides = array<i32>} : memref<144x288xbf16, #tpu.memory_space<vmem>>, vector<16x1xbf16>,
    %477 = vector.extract_strided_slice %3 {offsets = [1, 0], sizes = [1, 288], strides = [1, 1]} : vector<4x288xf32> to vector<1x288xf32>
    %478 = vector.extract_strided_slice %399 {offsets = [0, 12], sizes = [16, 276], strides = [1, 1]} : vector<16x288xf32> to vector<16x276xf32>
    %479 = vector.extract_strided_slice %477 {offsets = [0, 0], sizes = [1, 276], strides = [1, 1]} : vector<1x288xf32> to vector<1x276xf32>
    %480 = vector.broadcast %479 : vector<1x276xf32> to vector<16x276xf32>
    %481 = arith.mulf %478, %480 : vector<16x276xf32>
    %482 = arith.truncf %481 : vector<16x276xf32> to vector<16x276xbf16>
    %c96_142 = arith.constant 96 : index
    %c0_143 = arith.constant 0 : index
    %483 = vector.load %arg8[%c96_142, %c0_143] : memref<144x288xbf16, #tpu.memory_space<vmem>>, vector<16x276xbf16>
    tpu.vector_store %arg8[%c96_142, %c0_143], %482 {strides = array<i32>} : memref<144x288xbf16, #tpu.memory_space<vmem>>, vector<16x276xbf16>,
    %cst_144 = arith.constant 0.000000e+00 : bf16
    %484 = vector.broadcast %cst_144 : bf16 to vector<16x12xbf16>
    %c96_145 = arith.constant 96 : index
    %c276_146 = arith.constant 276 : index
    %485 = vector.load %arg8[%c96_145, %c276_146] : memref<144x288xbf16, #tpu.memory_space<vmem>>, vector<16x12xbf16>
    tpu.vector_store %arg8[%c96_145, %c276_146], %484 {strides = array<i32>} : memref<144x288xbf16, #tpu.memory_space<vmem>>, vector<16x12xbf16>,
    %486 = vector.extract_strided_slice %3 {offsets = [1, 0], sizes = [1, 288], strides = [1, 1]} : vector<4x288xf32> to vector<1x288xf32>
    %487 = vector.extract_strided_slice %416 {offsets = [0, 12], sizes = [16, 276], strides = [1, 1]} : vector<16x288xf32> to vector<16x276xf32>
    %488 = vector.extract_strided_slice %486 {offsets = [0, 0], sizes = [1, 276], strides = [1, 1]} : vector<1x288xf32> to vector<1x276xf32>
    %489 = vector.broadcast %488 : vector<1x276xf32> to vector<16x276xf32>
    %490 = arith.mulf %487, %489 : vector<16x276xf32>
    %491 = arith.truncf %490 : vector<16x276xf32> to vector<16x276xbf16>
    %c112_147 = arith.constant 112 : index
    %c0_148 = arith.constant 0 : index
    %492 = vector.load %arg8[%c112_147, %c0_148] : memref<144x288xbf16, #tpu.memory_space<vmem>>, vector<16x276xbf16>
    tpu.vector_store %arg8[%c112_147, %c0_148], %491 {strides = array<i32>} : memref<144x288xbf16, #tpu.memory_space<vmem>>, vector<16x276xbf16>,
    %cst_149 = arith.constant 0.000000e+00 : bf16
    %493 = vector.broadcast %cst_149 : bf16 to vector<16x12xbf16>
    %c112_150 = arith.constant 112 : index
    %c276_151 = arith.constant 276 : index
    %494 = vector.load %arg8[%c112_150, %c276_151] : memref<144x288xbf16, #tpu.memory_space<vmem>>, vector<16x12xbf16>
    tpu.vector_store %arg8[%c112_150, %c276_151], %493 {strides = array<i32>} : memref<144x288xbf16, #tpu.memory_space<vmem>>, vector<16x12xbf16>,
    %495 = vector.extract_strided_slice %3 {offsets = [1, 0], sizes = [1, 288], strides = [1, 1]} : vector<4x288xf32> to vector<1x288xf32>
    %496 = vector.extract_strided_slice %3 {offsets = [3, 0], sizes = [1, 288], strides = [1, 1]} : vector<4x288xf32> to vector<1x288xf32>
    %497 = arith.mulf %495, %496 : vector<1x288xf32>
    %498 = vector.extract_strided_slice %399 {offsets = [0, 13], sizes = [16, 275], strides = [1, 1]} : vector<16x288xf32> to vector<16x275xf32>
    %499 = vector.extract_strided_slice %497 {offsets = [0, 0], sizes = [1, 275], strides = [1, 1]} : vector<1x288xf32> to vector<1x275xf32>
    %500 = vector.broadcast %499 : vector<1x275xf32> to vector<16x275xf32>
    %501 = arith.mulf %498, %500 : vector<16x275xf32>
    %502 = arith.truncf %501 : vector<16x275xf32> to vector<16x275xbf16>
    %c128_152 = arith.constant 128 : index
    %c0_153 = arith.constant 0 : index
    %503 = vector.load %arg8[%c128_152, %c0_153] : memref<144x288xbf16, #tpu.memory_space<vmem>>, vector<16x275xbf16>
    tpu.vector_store %arg8[%c128_152, %c0_153], %502 {strides = array<i32>} : memref<144x288xbf16, #tpu.memory_space<vmem>>, vector<16x275xbf16>,
    %cst_154 = arith.constant 0.000000e+00 : bf16
    %504 = vector.broadcast %cst_154 : bf16 to vector<16x13xbf16>
    %c128_155 = arith.constant 128 : index
    %c275_156 = arith.constant 275 : index
    %505 = vector.load %arg8[%c128_155, %c275_156] : memref<144x288xbf16, #tpu.memory_space<vmem>>, vector<16x13xbf16>
    tpu.vector_store %arg8[%c128_155, %c275_156], %504 {strides = array<i32>} : memref<144x288xbf16, #tpu.memory_space<vmem>>, vector<16x13xbf16>,
    %c0_157 = arith.constant 0 : index
    %c0_158 = arith.constant 0 : index
    %506 = vector.load %arg5[%c0_157, %c0_158] : memref<16x144xbf16, #tpu.memory_space<vmem>>, vector<16x144xbf16>
    %c0_159 = arith.constant 0 : index
    %c0_160 = arith.constant 0 : index
    %507 = vector.load %arg8[%c0_159, %c0_160] : memref<144x288xbf16, #tpu.memory_space<vmem>>, vector<144x288xbf16>
    %cst_161 = arith.constant dense<0.000000e+00> : vector<16x288xf32>
    %508 = tpu.matmul %506, %507, %cst_161 {dimension_numbers = #tpu.dot_dimension_numbers<[1], [0], [0], [1], [0, 0, 1, 1], [], []>} : vector<16x144xbf16>, vector<144x288xbf16>, vector<16x288xf32> -> vector<16x288xf32>
    %509 = math.tanh %508 : vector<16x288xf32>
    %c0_162 = arith.constant 0 : index
    %c0_163 = arith.constant 0 : index
    %510 = vector.load %arg6[%c0_162, %c0_163] : memref<16x288xf32, #tpu.memory_space<vmem>>, vector<16x288xf32>
    tpu.vector_store %arg6[%c0_162, %c0_163], %509 {strides = array<i32>} : memref<16x288xf32, #tpu.memory_space<vmem>>, vector<16x288xf32>,
    return
  }
}

</mosaic_0001>

<bundles_post_ra>
// kernel: generator_forward.1
= control target key start
LH: loop header
LB: loop body
LE: loop exit
PB: predicated region body
PF: predicated region fallthrough
CT: control target
= control target key end

     0   :  { %11 = vsyncpa [#allocation5], 0  ;;  %s7043_s0 = inlined_call_operand.vmem [shape: f32[16,2], index: 0, kind: input, shape index: {}]   ;;  %s7044_s1 = inlined_call_operand.hbm [shape: f32[142,288], index: 1, kind: input, shape index: {}]   ;;  %s7045_s2 = inlined_call_operand.vmem [shape: f32[96,1], index: 2, kind: input, shape index: {}]   ;;  %s7046_s3 = inlined_call_operand.vmem [shape: bf16[128,32], index: 3, kind: input, shape index: {}]   ;;  %s7047_s4 = inlined_call_operand.hbm [shape: bf16[64,512], index: 4, kind: input, shape index: {}]   ;;  %s7048_s5 = inlined_call_operand.hbm [shape: bf16[16,144], index: 5, kind: input, shape index: {}]   ;;  %s7049_s6 = inlined_call_operand.vmem [shape: f32[16,288], index: 6, kind: output, shape index: {}]  }
   0x1   :  { %12 = vsyncpa [#allocation7], 0  ;;  %s4180_s21 = smov [#allocation6]   ;;  %s4110_s25 = scalar_lea.hbm %s7047_s4, 2048 }
   0x2   :  { %s36_s22 = sshll.u32 %s4180_s21, 4  ;;  %p4111_p0 = scmp.ne.s32.totalorder %s7047_s4, %s4110_s25  ;;  %s37_s22 = int_to_ptr.vmem [resolvable:$true] %s36_s22 }
   0x3   :  { %p4114_p1 = scmp.lt.u32.totalorder %s4110_s25, %s7047_s4 }
   0x5   :  { %p4116_p2 = pnand %p4114_p1, %p4111_p0 }
   0x7   :  { %4119 = shalt.err (!%p4116_p2)
}
   0x8   :  { %s4120_s30 = scalar_lea.vmem %s37_s22, 2048  ;;  %p4125_p4 = scmp.lt.s32.totalorder %s37_s22, %s37_s22 }
   0x9   :  { %p4121_p3 = scmp.ne.s32.totalorder %s37_s22, %s4120_s30  ;;  %p4126_p5 = scmp.lt.s32.totalorder %s4120_s30, %s4120_s30 }
   0xb   :  { %p4127_p6 = por %p4126_p5, %p4125_p4 }
   0xd   :  { %p4128_p7 = pnand %p4127_p6, %p4121_p3 }
   0xf   :  { %4131 = shalt.err (!%p4128_p7)
}
  0x10   :  { %s4181_s7 = smov 256   ;;  %s4182_s8 = smov 16  }
  0x11   :  { %42 = dma.hbm_to_vmem [thread:$0]  %s7047_s4, 2048, %s37_s22, [#allocation7], %s4181_s7, %s4181_s7, %s4182_s8  }
  0x12   :  { %s4183_s11 = smov [#allocation4]   ;;  %s4132_s15 = scalar_lea.hbm %s7044_s1, 6912 }
  0x13   :  { %s20_s12 = sshll.u32 %s4183_s11, 4  ;;  %p4133_p8 = scmp.ne.s32.totalorder %s7044_s1, %s4132_s15  ;;  %s21_s12 = int_to_ptr.vmem [resolvable:$true] %s20_s12 }
  0x14   :  { %p4136_p9 = scmp.lt.u32.totalorder %s4132_s15, %s7044_s1 }
  0x16   :  { %p4138_p10 = pnand %p4136_p9, %p4133_p8 }
  0x18   :  { %4141 = shalt.err (!%p4138_p10)
}
  0x19   :  { %s4142_s20 = scalar_lea.vmem %s21_s12, 6912  ;;  %p4147_p12 = scmp.lt.s32.totalorder %s21_s12, %s21_s12 }
  0x1a   :  { %p4143_p11 = scmp.ne.s32.totalorder %s21_s12, %s4142_s20  ;;  %p4148_p13 = scmp.lt.s32.totalorder %s4142_s20, %s4142_s20 }
  0x1c   :  { %p4149_p0 = por %p4148_p13, %p4147_p12 }
  0x1e   :  { %p4150_p1 = pnand %p4149_p0, %p4143_p11 }
  0x20   :  { %4153 = shalt.err (!%p4150_p1)
}
  0x21   :  { %s4184_s4 = smov 384   ;;  %s4185_s21 = smov 24  }
  0x22   :  { %26 = dma.hbm_to_vmem [thread:$0]  %s7044_s1, 6912, %s21_s12, [#allocation5], %s4184_s4, %s4184_s4, %s4185_s21  }
  0x23   :  { %s4186_s24 = smov [#allocation8]   ;;  %s4154_s28 = scalar_lea.hbm %s7048_s5, 256 }
  0x24   :  { %s48_s25 = sshll.u32 %s4186_s24, 4  ;;  %p4155_p2 = scmp.ne.s32.totalorder %s7048_s5, %s4154_s28  ;;  %s49_s25 = int_to_ptr.vmem [resolvable:$true] %s48_s25 }
  0x25   :  { %p4158_p3 = scmp.lt.u32.totalorder %s4154_s28, %s7048_s5 }
  0x27   :  { %p4160_p4 = pnand %p4158_p3, %p4155_p2 }
  0x29   :  { %4163 = shalt.err (!%p4160_p4)
}
  0x2a   :  { %s4164_s9 = scalar_lea.vmem %s49_s25, 256  ;;  %p4169_p6 = scmp.lt.s32.totalorder %s49_s25, %s49_s25 }
  0x2b   :  { %p4165_p5 = scmp.ne.s32.totalorder %s49_s25, %s4164_s9  ;;  %p4170_p7 = scmp.lt.s32.totalorder %s4164_s9, %s4164_s9 }
  0x2d   :  { %p4171_p8 = por %p4170_p7, %p4169_p6 }
  0x2f   :  { %p4172_p9 = pnand %p4171_p8, %p4165_p5 }
  0x31   :  { %4175 = shalt.err (!%p4172_p9)
}
  0x32   :  { %s4187_s1 = smov 128   ;;  %s4188_s10 = smov 8  }
  0x33   :  { %54 = dma.hbm_to_vmem [thread:$0]  %s7048_s5, 256, %s49_s25, [#allocation7], %s4187_s1, %s4187_s1, %s4188_s10  }
  0x34   :  { %4176 = dma.done.wait [#allocation5], 6912  }
  0x35   :  { %4177 = vsyncadd [#allocation5], 4294960384 }
  0x36   :  { %4178 = dma.done.wait [#allocation7], 2304  }
  0x37   :  { %4179 = vsyncadd [#allocation7], 4294964992  ;;  %v7050_v0 = vmov 0   ;;  %v65_v1 = vld [vmem:[%s7043_s0] sm:$0xff]  ;;  %v66_v2 = vld [vmem:[%s7043_s0 + $0x8] sm:$0xff]  ;;  %v4190_v3 = vmov 1   ;;  %v95_v4 = vlaneseq }
  0x38   :  { %3900 = vset.pattern.permute.xlu0 %v7050_v0  ;;  %3902 = vset.pattern.permute.xlu1 %v7050_v0  ;;  %v4285_v8 = vld [vmem:[#allocation4 + $0x1a8] sm:$0x3f]  ;;  %v4287_v10 = vld [vmem:[#allocation4 + $0x1a0] sm:$0x3f]  ;;  %v4297_v19 = vld [vmem:[#allocation4 + $0x198] sm:$0x3f] }
  0x39   :  { %702 = vmatprep.mubr.bf16.mxu0 %v7050_v0  ;;  %87 = vperm.xlu0 %3900, %v65_v1   ;;  %v96_v5 = vshrl.u32 %v95_v4, 7  ;;  %v147_v25 = vld [vmem:[#allocation4 + $0x10] sm:$0xff]  ;;  %v168_v33 = vld [vmem:[#allocation4 + $0x28] sm:$0xff]  ;;  %v189_v42 = vld [vmem:[#allocation4 + $0x40] sm:$0xff]  ;;  %s4191_s0 = smov 127   ;;  %s4192_s5 = smov 116  }
  0x3a   :  { %92 = vperm.xlu1 %3902, %v66_v2   ;;  %v69_v32 = vld [vmem:[#allocation4 + $0x190] sm:$0xff]  ;;  %v210_v52 = vld [vmem:[#allocation4 + $0x58] sm:$0xff]  ;;  %v146_v57 = vld [vmem:[#allocation4 + $0x8] sm:$0xff]  ;;  %s4193_s17 = smov 115   ;;  %vm645_vm0 = vcmask 261120   ;;  %vm496_vm1 = vcmask 252928  }
  0x3b   :  { %v4281_v6 = vsub.s32 0, %v96_v5  ;;  %v4283_v7 = vsub.s32 1, %v96_v5  ;;  %v4299_v21 = vsub.s32 2, %v96_v5  ;;  %v4307_v27 = vsub.s32 3, %v96_v5  ;;  %v231_v60 = vld [vmem:[#allocation4 + $0x70] sm:$0xff]  ;;  %s4194_s18 = smov 1  }
  0x3c   :  { %v4315_v34 = vsub.s32 4, %v96_v5  ;;  %v4319_v37 = vsub.s32 5, %v96_v5  ;;  %v4321_v38 = vsub.s32 6, %v96_v5  ;;  %v4323_v43 = vsub.s32 7, %v96_v5  ;;  %v252_v5 = vld [vmem:[#allocation4 + $0x88] sm:$0xff]  ;;  %s4195_s22 = smov 12  }
  0x3d   :  { %3901 = vset.pattern.permute.xlu0 %v4190_v3  ;;  %v106_v11 = vrot.slane %v4285_v8, %v4281_v6  ;;  %v132_v12 = vrot.slane %v4285_v8, %v4283_v7  ;;  %v128_v13 = vrot.slane %v4287_v10, %v4283_v7  ;;  %v102_v15 = vrot.slane %v4287_v10, %v4281_v6  ;;  %s4196_s25 = smov 13   ;;  %s4197_s26 = smov 11  }
  0x3e   :  { %3903 = vset.pattern.permute.xlu1 %v4190_v3  ;;  %114 = vperm.xlu0 %3901, %v65_v1   ;;  %v124_v24 = vrot.slane %v4297_v19, %v4283_v7  ;;  %v98_v26 = vrot.slane %v4297_v19, %v4281_v6  ;;  %v167_v3 = vld [vmem:[#allocation4 + $0x20] sm:$0xff]  ;;  %vm490_vm2 = vcmask 1039360   ;;  %vm519_vm3 = vcmask 949248   ;;  %s4198_s27 = smov 117  }
  0x3f   :  { %118 = vperm.xlu1 %3903, %v66_v2   ;;  %v68_v2 = vld [vmem:[#allocation4 + $0x188] sm:$0xff]  ;;  %vm525_vm4 = vcmask 162816   ;;  %vm7155_vm5 = vcmask 941056   ;;  %vm566_vm6 = vcmask 154624   ;;  %vm1669_vm7 = vcmask 7168  }
  0x40   :  { %vm1834_vm8 = vcmask 97280   ;;  %vm7153_vm9 = vcmask 105472   ;;  %vm7154_vm10 = vcmask 89088   ;;  %vm2093_vm11 = vcmask 957440  }
  0x41   :  { %vm1728_vm12 = vcmask 261368   ;;  %vm1893_vm13 = vcmask 261280   ;;  %vm1816_vm14 = vcmask 1047560   ;;  %vm1964_vm15 = vcmask 261272  }
  0x42   :  { %3905 = vset.pattern.permute.xlu0 %v7050_v0 }
  0x43   :  { %3904 = vset.pattern.permute.xlu1 %v7050_v0 }
  0xb8   :  { %v88_v9 = vpop.permute.xlu0 %87 }
  0xb9   :  { %v93_v14 = vpop.permute.xlu1 %92  ;;  %v109_v17 = vmul.f32 %v106_v11, %v88_v9  ;;  %v108_v23 = vmul.f32 %v102_v15, %v88_v9  ;;  %v107_v44 = vmul.f32 %v98_v26, %v88_v9  ;;  %v273_v9 = vld [vmem:[#allocation4 + $0xa0] sm:$0xff] }
  0xba   :  { %v112_v40 = vmul.f32 %v106_v11, %v93_v14  ;;  %v110_v49 = vmul.f32 %v98_v26, %v93_v14  ;;  %v111_v50 = vmul.f32 %v102_v15, %v93_v14 }
  0xbd   :  { %v115_v16 = vpop.permute.xlu0 %114 }
  0xbe   :  { %v135_v18 = vmul.f32 %v132_v12, %v115_v16  ;;  %v134_v20 = vmul.f32 %v128_v13, %v115_v16  ;;  %v119_v29 = vpop.permute.xlu1 %118  ;;  %v133_v39 = vmul.f32 %v124_v24, %v115_v16 }
  0xbf   :  { %v138_v41 = vmul.f32 %v132_v12, %v119_v29  ;;  %v136_v51 = vmul.f32 %v124_v24, %v119_v29  ;;  %v137_v53 = vmul.f32 %v128_v13, %v119_v29 }
  0xc0   :  { %v4301_v22 = vadd.f32 %v135_v18, %v109_v17  ;;  %v4313_v31 = vadd.f32 %v134_v20, %v108_v23  ;;  %v4331_v58 = vadd.f32 %v133_v39, %v107_v44  ;;  %v188_v18 = vld [vmem:[#allocation4 + $0x38] sm:$0xff]  ;;  %v336_v44 = vld [vmem:[#allocation4 + $0xe8] sm:$0xff] }
  0xc1   :  { %v4333_v59 = vadd.f32 %v138_v41, %v112_v40  ;;  %v4339_v4 = vadd.f32 %v136_v51, %v110_v49  ;;  %v4345_v14 = vadd.f32 %v137_v53, %v111_v50  ;;  %v294_v23 = vld [vmem:[#allocation4 + $0xb8] sm:$0xff]  ;;  %v145_v53 = vld [vmem:[#allocation4] sm:$0xff] }
  0xc2   :  { %v159_v28 = vrot.slane %v4301_v22, %v4281_v6  ;;  %v180_v30 = vrot.slane %v4301_v22, %v4283_v7  ;;  %v201_v36 = vrot.slane %v4301_v22, %v4299_v21  ;;  %v222_v47 = vrot.slane %v4301_v22, %v4307_v27 }
  0xc3   :  { %v155_v48 = vrot.slane %v4313_v31, %v4281_v6  ;;  %v243_v56 = vrot.slane %v4301_v22, %v4315_v34  ;;  %v264_v63 = vrot.slane %v4301_v22, %v4319_v37  ;;  %v285_v1 = vrot.slane %v4301_v22, %v4321_v38 }
  0xc4   :  { %v162_v35 = vmul.f32 %v159_v28, %v147_v25  ;;  %v183_v46 = vmul.f32 %v180_v30, %v168_v33  ;;  %v204_v55 = vmul.f32 %v201_v36, %v189_v42  ;;  %v225_v62 = vmul.f32 %v222_v47, %v210_v52  ;;  %v209_v33 = vld [vmem:[#allocation4 + $0x50] sm:$0xff]  ;;  %v230_v47 = vld [vmem:[#allocation4 + $0x68] sm:$0xff] }
  0xc5   :  { %v161_v11 = vmul.f32 %v155_v48, %v146_v57  ;;  %v176_v12 = vrot.slane %v4313_v31, %v4283_v7  ;;  %v197_v13 = vrot.slane %v4313_v31, %v4299_v21  ;;  %v246_v16 = vmul.f32 %v243_v56, %v231_v60  ;;  %v357_v48 = vld [vmem:[#allocation4 + $0x100] sm:$0xff]  ;;  %v378_v56 = vld [vmem:[#allocation4 + $0x118] sm:$0xff] }
  0xc6   :  { %v165_v45 = vadd.f32 %v162_v35, %v69_v32  ;;  %v306_v17 = vrot.slane %v4301_v22, %v4323_v43  ;;  %v151_v20 = vrot.slane %v4331_v58, %v4281_v6  ;;  %v218_v26 = vrot.slane %v4313_v31, %v4307_v27  ;;  %v315_v35 = vld [vmem:[#allocation4 + $0xd0] sm:$0xff] }
  0xc7   :  { %v164_v24 = vadd.f32 %v161_v11, %v68_v2  ;;  %v182_v25 = vmul.f32 %v176_v12, %v167_v3  ;;  %v267_v29 = vmul.f32 %v264_v63, %v252_v5  ;;  %v288_v30 = vmul.f32 %v285_v1, %v273_v9  ;;  %v67_v3 = vld [vmem:[#allocation4 + $0x180] sm:$0xff]  ;;  %v166_v5 = vld [vmem:[#allocation4 + $0x18] sm:$0xff] }
  0xc8   :  { %v186_v54 = vadd.f32 %v183_v46, %v165_v45  ;;  %v327_v32 = vrot.slane %v4333_v59, %v4281_v6  ;;  %v348_v22 = vrot.slane %v4333_v59, %v4283_v7  ;;  %v203_v39 = vmul.f32 %v197_v13, %v188_v18  ;;  %v272_v12 = vld [vmem:[#allocation4 + $0x98] sm:$0xff] }
  0xc9   :  { %v185_v36 = vadd.f32 %v182_v25, %v164_v24  ;;  %v239_v40 = vrot.slane %v4313_v31, %v4315_v34  ;;  %v309_v42 = vmul.f32 %v306_v17, %v294_v23  ;;  %v369_v45 = vrot.slane %v4333_v59, %v4299_v21  ;;  %v187_v24 = vld [vmem:[#allocation4 + $0x30] sm:$0xff] }
  0xca   :  { %v207_v61 = vadd.f32 %v204_v55, %v186_v54  ;;  %v390_v46 = vrot.slane %v4333_v59, %v4307_v27  ;;  %v411_v49 = vrot.slane %v4333_v59, %v4315_v34  ;;  %v224_v51 = vmul.f32 %v218_v26, %v209_v33  ;;  %v399_v26 = vld [vmem:[#allocation4 + $0x130] sm:$0xff] }
  0xcb   :  { %v206_v50 = vadd.f32 %v203_v39, %v185_v36  ;;  %v260_v52 = vrot.slane %v4313_v31, %v4319_v37  ;;  %v330_v55 = vmul.f32 %v327_v32, %v315_v35  ;;  %v432_v57 = vrot.slane %v4333_v59, %v4319_v37 }
  0xcc   :  { %v228_v15 = vadd.f32 %v225_v62, %v207_v61  ;;  %v453_v60 = vrot.slane %v4333_v59, %v4321_v38  ;;  %v251_v61 = vld [vmem:[#allocation4 + $0x80] sm:$0xff]  ;;  %v351_v62 = vmul.f32 %v348_v22, %v336_v44  ;;  %v245_v1 = vmul.f32 %v239_v40, %v230_v47  ;;  %v208_v22 = vld [vmem:[#allocation4 + $0x48] sm:$0xff] }
  0xcd   :  { %v227_v63 = vadd.f32 %v224_v51, %v206_v50  ;;  %v281_v2 = vrot.slane %v4313_v31, %v4321_v38  ;;  %v372_v11 = vmul.f32 %v369_v45, %v357_v48  ;;  %v160_v13 = vmul.f32 %v151_v20, %v145_v53  ;;  %v314_v40 = vld [vmem:[#allocation4 + $0xc8] sm:$0xff]  ;;  %v229_v50 = vld [vmem:[#allocation4 + $0x60] sm:$0xff] }
  0xce   :  { %v249_v28 = vadd.f32 %v246_v16, %v228_v15  ;;  %v172_v15 = vrot.slane %v4331_v58, %v4283_v7  ;;  %v393_v16 = vmul.f32 %v390_v46, %v378_v56  ;;  %v266_v18 = vmul.f32 %v260_v52, %v251_v61  ;;  %v335_v52 = vld [vmem:[#allocation4 + $0xe0] sm:$0xff] }
  0xcf   :  { %v248_v17 = vadd.f32 %v245_v1, %v227_v63  ;;  %v302_v23 = vrot.slane %v4313_v31, %v4323_v43  ;;  %v193_v32 = vrot.slane %v4331_v58, %v4299_v21  ;;  %v287_v20 = vmul.f32 %v281_v2, %v272_v12  ;;  %v420_v31 = vld [vmem:[#allocation4 + $0x148] sm:$0xff]  ;;  %v441_v2 = vld [vmem:[#allocation4 + $0x160] sm:$0xff] }
  0xd0   :  { %v270_v41 = vadd.f32 %v267_v29, %v249_v28  ;;  %v293_v28 = vld [vmem:[#allocation4 + $0xb0] sm:$0xff]  ;;  %v163_v29 = vadd.f32 %v160_v13, %v67_v3  ;;  %v323_v35 = vrot.slane %v4345_v14, %v4281_v6  ;;  %v214_v36 = vrot.slane %v4331_v58, %v4307_v27  ;;  %v356_v3 = vld [vmem:[#allocation4 + $0xf8] sm:$0xff] }
  0xd1   :  { %v269_v33 = vadd.f32 %v266_v18, %v248_v17  ;;  %v235_v44 = vrot.slane %v4331_v58, %v4315_v34  ;;  %v414_v45 = vmul.f32 %v411_v49, %v399_v26  ;;  %v308_v47 = vmul.f32 %v302_v23, %v293_v28  ;;  %v250_v49 = vld [vmem:[#allocation4 + $0x78] sm:$0xff]  ;;  %v271_v17 = vld [vmem:[#allocation4 + $0x90] sm:$0xff] }
  0xd2   :  { %v291_v54 = vadd.f32 %v288_v30, %v270_v41  ;;  %v181_v30 = vmul.f32 %v172_v15, %v166_v5  ;;  %v344_v48 = vrot.slane %v4345_v14, %v4283_v7  ;;  %v435_v56 = vmul.f32 %v432_v57, %v420_v31  ;;  %v462_v23 = vld [vmem:[#allocation4 + $0x178] sm:$0xff] }
  0xd3   :  { %v290_v46 = vadd.f32 %v287_v20, %v269_v33  ;;  %v365_v63 = vrot.slane %v4345_v14, %v4299_v21  ;;  %v474_v12 = vrot.slane %v4333_v59, %v4323_v43  ;;  %v386_v57 = vrot.slane %v4345_v14, %v4307_v27  ;;  %v292_v33 = vld [vmem:[#allocation4 + $0xa8] sm:$0xff] }
  0xd4   :  { %v312_v9 = vadd.f32 %v309_v42, %v291_v54  ;;  %v184_v41 = vadd.f32 %v181_v30, %v163_v29  ;;  %v202_v42 = vmul.f32 %v193_v32, %v187_v24  ;;  %v223_v54 = vmul.f32 %v214_v36, %v208_v22  ;;  %v377_v24 = vld [vmem:[#allocation4 + $0x110] sm:$0xff] }
  0xd5   :  { %v311_v61 = vadd.f32 %v308_v47, %v290_v46  ;;  %v350_v15 = vmul.f32 %v344_v48, %v335_v52  ;;  %v298_v26 = vrot.slane %v4331_v58, %v4323_v43  ;;  %v456_v28 = vmul.f32 %v453_v60, %v441_v2  ;;  %v313_v60 = vld [vmem:[#allocation4 + $0xc0] sm:$0xff]  ;;  %v440_v52 = vld [vmem:[#allocation4 + $0x158] sm:$0xff] }
  0xd6   :  { %v333_v25 = vadd.f32 %v330_v55, %v312_v9  ;;  %v205_v53 = vadd.f32 %v202_v42, %v184_v41  ;;  %v256_v55 = vrot.slane %v4331_v58, %v4319_v37  ;;  %v244_v9 = vmul.f32 %v235_v44, %v229_v50  ;;  %v419_v42 = vld [vmem:[#allocation4 + $0x140] sm:$0xff] }
  0xd7   :  { %v371_v30 = vmul.f32 %v365_v63, %v356_v3  ;;  %v407_v32 = vrot.slane %v4345_v14, %v4315_v34  ;;  %v477_v31 = vmul.f32 %v474_v12, %v462_v23  ;;  %v428_v59 = vrot.slane %v4345_v14, %v4319_v37  ;;  %v355_v63 = vld [vmem:[#allocation4 + $0xf0] sm:$0xff] }
  0xd8   :  { %v354_v39 = vadd.f32 %v351_v62, %v333_v25  ;;  %v329_v62 = vmul.f32 %v323_v35, %v314_v40  ;;  %v226_v5 = vadd.f32 %v223_v54, %v205_v53  ;;  %v265_v25 = vmul.f32 %v256_v55, %v250_v49  ;;  %v398_v35 = vld [vmem:[#allocation4 + $0x128] sm:$0xff] }
  0xd9   :  { %v340_v46 = vrot.slane %v4339_v4, %v4283_v7  ;;  %v413_v48 = vmul.f32 %v407_v32, %v398_v35  ;;  %v449_v50 = vrot.slane %v4345_v14, %v4321_v38  ;;  %v361_v55 = vrot.slane %v4339_v4, %v4299_v21  ;;  %v461_v7 = vld [vmem:[#allocation4 + $0x170] sm:$0xff] }
  0xda   :  { %v375_v51 = vadd.f32 %v372_v11, %v354_v39  ;;  %v277_v11 = vrot.slane %v4331_v58, %v4321_v38  ;;  %v332_v13 = vadd.f32 %v329_v62, %v311_v61  ;;  %v319_v39 = vrot.slane %v4339_v4, %v4281_v6  ;;  %v334_v6 = vld [vmem:[#allocation4 + $0xd8] sm:$0xff] }
  0xdb   :  { %v392_v58 = vmul.f32 %v386_v57, %v377_v24  ;;  %v434_v61 = vmul.f32 %v428_v59, %v419_v42  ;;  %v470_v62 = vrot.slane %v4345_v14, %v4323_v43  ;;  %v382_v2 = vrot.slane %v4339_v4, %v4307_v27  ;;  %v397_v57 = vld [vmem:[#allocation4 + $0x120] sm:$0xff] }
  0xdc   :  { %v396_v1 = vadd.f32 %v393_v16, %v375_v51  ;;  %v247_v16 = vadd.f32 %v244_v9, %v226_v5  ;;  %v353_v29 = vadd.f32 %v350_v15, %v332_v13  ;;  %v286_v36 = vmul.f32 %v277_v11, %v271_v17  ;;  %v376_v9 = vld [vmem:[#allocation4 + $0x108] sm:$0xff] }
  0xdd   :  { %v328_v54 = vmul.f32 %v319_v39, %v313_v60  ;;  %v455_v5 = vmul.f32 %v449_v50, %v440_v52  ;;  %v370_v12 = vmul.f32 %v361_v55, %v355_v63  ;;  %v403_v13 = vrot.slane %v4339_v4, %v4315_v34 }
  0xde   :  { %v417_v18 = vadd.f32 %v414_v45, %v396_v1  ;;  %v268_v22 = vadd.f32 %v265_v25, %v247_v16  ;;  %v374_v40 = vadd.f32 %v371_v30, %v353_v29  ;;  %v307_v45 = vmul.f32 %v298_v26, %v292_v33  ;;  %v418_v16 = vld [vmem:[#allocation4 + $0x138] sm:$0xff]  ;;  %v439_v29 = vld [vmem:[#allocation4 + $0x150] sm:$0xff] }
  0xdf   :  { %v349_v1 = vmul.f32 %v340_v46, %v334_v6  ;;  %v476_v14 = vmul.f32 %v470_v62, %v461_v7  ;;  %v424_v23 = vrot.slane %v4339_v4, %v4319_v37  ;;  %v412_v26 = vmul.f32 %v403_v13, %v397_v57 }
  0xe0   :  { %v438_v20 = vadd.f32 %v435_v56, %v417_v18  ;;  %v289_v44 = vadd.f32 %v286_v36, %v268_v22  ;;  %v395_v47 = vadd.f32 %v392_v58, %v374_v40  ;;  %v391_v18 = vmul.f32 %v382_v2, %v376_v9 }
  0xe1   :  { %v433_v32 = vmul.f32 %v424_v23, %v418_v16  ;;  %v466_v33 = vrot.slane %v4339_v4, %v4323_v43  ;;  %v4444_v43 = vrot.slane %v4285_v8, %v4319_v37  ;;  %v4450_v60 = vrot.slane %v4287_v10, %v4319_v37 }
  0xe2   :  { %v459_v41 = vadd.f32 %v456_v28, %v438_v20  ;;  %v310_v53 = vadd.f32 %v307_v45, %v289_v44  ;;  %v416_v56 = vadd.f32 %v413_v48, %v395_v47  ;;  %v445_v28 = vrot.slane %v4339_v4, %v4321_v38  ;;  %v460_v20 = vld [vmem:[#allocation4 + $0x168] sm:$0xff] }
  0xe3   :  { %v475_v39 = vmul.f32 %v466_v33, %v460_v20  ;;  %v4456_v47 = vrot.slane %v4297_v19, %v4319_v37  ;;  %v546_v48 = vrot.slane %v4287_v10, 2  ;;  %v547_v50 = vrot.slane %v4285_v8, 2  ;;  %v3911_v33 = vld [vmem:[%s7046_s3 + $0x28] sm:$0xff]   ;;  %v3912_v20 = vld [vmem:[%s7046_s3 + $0x30] sm:$0xff]  }
  0xe4   :  { %v480_v51 = vadd.f32 %v477_v31, %v459_v41  ;;  %v331_v49 = vadd.f32 %v328_v54, %v310_v53  ;;  %v437_v3 = vadd.f32 %v434_v61, %v416_v56  ;;  %v454_v22 = vmul.f32 %v445_v28, %v439_v29  ;;  %v4436_v31 = vld [vmem:[%s7046_s3] sm:$0xff]   ;;  %v3908_v28 = vld [vmem:[%s7046_s3 + $0x10] sm:$0xff]  }
  0xe5   :  { %3849 = vmatprep.mubr.msk.bf16.mxu1 %vm645_vm0, %v4436_v31  ;;  %v545_v52 = vrot.slane %v4297_v19, 2  ;;  %v4464_v55 = vmul.f32 %v546_v48, %v4287_v10  ;;  %v4467_v56 = vmul.f32 %v547_v50, %v4285_v8  ;;  %v4471_v62 = vrot.slane %v4287_v10, %v4307_v27 }
  0xe6   :  { %488 = vrot.lane.b32.xlu0 %v480_v51, %s4191_s0  ;;  %v352_v11 = vadd.f32 %v349_v1, %v331_v49  ;;  %v458_v15 = vadd.f32 %v455_v5, %v437_v3  ;;  %v4475_v63 = vrot.slane %v4285_v8, %v4307_v27  ;;  %v4492_v5 = vrot.slane %v4297_v19, %v4307_v27 }
  0xe7   :  { %v4478_v7 = vmul.f32 %v545_v52, %v4297_v19  ;;  %v4482_v49 = vrot.slane %v4464_v55, %v4307_v27  ;;  %v4486_v1 = vrot.slane %v4467_v56, %v4307_v27 }
  0xe8   :  { %v373_v17 = vadd.f32 %v370_v12, %v352_v11  ;;  %v479_v24 = vadd.f32 %v476_v14, %v458_v15 }
  0xe9   :  { %7156 = vst [vmem:[#allocation11_spill] sm:$0xff] %v4478_v7  ;;  %v4498_v12 = vrot.slane %v4478_v7, %v4307_v27 }
  0xea   :  { %v394_v25 = vadd.f32 %v391_v18, %v373_v17  ;;  %486 = vrot.lane.b32.xlu1 %v479_v24, %s4191_s0  ;;  %515 = vrot.lane.b32.xlu0 %v479_v24, %s4192_s5 }
  0xec   :  { %v415_v30 = vadd.f32 %v412_v26, %v394_v25  ;;  %v3907_v26 = vld [vmem:[%s7046_s3 + $0x8] sm:$0xff]  }
  0xee   :  { %v436_v35 = vadd.f32 %v433_v32, %v415_v30  ;;  %556 = vrot.lane.b32.xlu0 %v479_v24, %s4193_s17  ;;  %v3909_v30 = vld [vmem:[%s7046_s3 + $0x18] sm:$0xff]   ;;  %v3910_v32 = vld [vmem:[%s7046_s3 + $0x20] sm:$0xff]  }
  0xf0   :  { %v457_v36 = vadd.f32 %v454_v22, %v436_v35  ;;  %v3913_v35 = vld [vmem:[%s7046_s3 + $0x38] sm:$0xff]  }
  0xf2   :  { %v478_v38 = vadd.f32 %v475_v39, %v457_v36 }
  0xf4   :  { %484 = vrot.lane.b32.xlu1 %v478_v38, %s4191_s0  ;;  %513 = vrot.lane.b32.xlu0 %v478_v38, %s4192_s5 }
  0xf8   :  { %517 = vrot.lane.b32.xlu1 %v480_v51, %s4192_s5 }
  0xfc   :  { %558 = vrot.lane.b32.xlu1 %v480_v51, %s4193_s17 }
 0x100   :  { %554 = vrot.lane.b32.xlu1 %v478_v38, %s4193_s17 }
 0x158   :  { %v489_v4 = vpop.permute.xlu0 %488 }
 0x159   :  { %v497_v40 = vsel %vm496_vm1, %v489_v4, 0.0 }
 0x15a   :  { %v512_v58 = vmul.f32 %v4444_v43, %v497_v40 }
 0x15c   :  { %v585_v59 = vpack.c.bf16 %v512_v58, %v480_v51  ;;  %v487_v41 = vpop.permute.xlu1 %486  ;;  %v516_v46 = vpop.permute.xlu0 %515 }
 0x15d   :  { %v492_v42 = vsel %vm490_vm2, %v487_v41, %v489_v4 }
 0x15e   :  { %3845 = vmatprep.subr.bf16.mxu1 %v585_v59  ;;  %v511_v44 = vmul.f32 %v4450_v60, %v492_v42 }
 0x15f   :  { %3846 = vmatpush3.bf16.msra.mxu1 %v585_v59 }
 0x160   :  { %v584_v45 = vpack.c.bf16 %v511_v44, %v479_v24  ;;  %v557_v54 = vpop.permute.xlu0 %556 }
 0x162   :  { %670 = vmatprep.subr.bf16.mxu0 %v584_v45 }
 0x166   :  { %v485_v6 = vpop.permute.xlu1 %484  ;;  %v514_v8 = vpop.permute.xlu0 %513 }
 0x167   :  { %v491_v51 = vsel %vm490_vm2, %v485_v6, %v487_v41  ;;  %v520_v17 = vsel %vm519_vm3, %v514_v8, %v516_v46 }
 0x168   :  { %v510_v53 = vmul.f32 %v4456_v47, %v491_v51  ;;  %v539_v16 = vmul.f32 %v4492_v5, %v520_v17 }
 0x16a   :  { %v518_v37 = vpop.permute.xlu1 %517  ;;  %v583_v61 = vpack.c.bf16 %v510_v53, %v478_v38 }
 0x16b   :  { %v521_v10 = vsel %vm519_vm3, %v516_v46, %v518_v37  ;;  %v526_v2 = vsel %vm525_vm4, %v518_v37, 0.0 }
 0x16c   :  { %671 = vmatpush1.bf16.msra.mxu0 %v583_v61  ;;  %v540_v13 = vmul.f32 %v4471_v62, %v521_v10  ;;  %v541_v15 = vmul.f32 %v4475_v63, %v526_v2 }
 0x16e   :  { %v559_v3 = vpop.permute.xlu1 %558 }
 0x16f   :  { %v562_v9 = vsel %vm7155_vm5, %v557_v54, %v559_v3  ;;  %v567_v11 = vsel %vm566_vm6, %v559_v3, 0.0 }
 0x170   :  { %v581_v14 = vmul.f32 %v4482_v49, %v562_v9  ;;  %v582_v57 = vmul.f32 %v4486_v1, %v567_v11 }
 0x172   :  { %v555_v19 = vpop.permute.xlu1 %554  ;;  %v587_v18 = vpack.c.bf16 %v581_v14, %v540_v13  ;;  %v588_v23 = vpack.c.bf16 %v582_v57, %v541_v15 }
 0x173   :  { %v561_v24 = vsel %vm7155_vm5, %v555_v19, %v557_v54 }
 0x174   :  { %v580_v25 = vmul.f32 %v4498_v12, %v561_v24  ;;  %672 = vmatprep.subr.bf16.mxu0 %v587_v18  ;;  %3847 = vmatprep.subr.bf16.mxu1 %v588_v23 }
 0x175   :  { %3848 = vmatpush3.bf16.msra.mxu1 %v588_v23 }
 0x176   :  { %v586_v29 = vpack.c.bf16 %v580_v25, %v539_v16 }
 0x178   :  { %673 = vmatpush1.bf16.msra.mxu0 %v586_v29  ;;  %3850 = vmatmul.mubr.msk.bf16.vlgmr.msra.gmra.mrb[0].mxu1 %vm645_vm0, %v3907_v26 }
 0x179   :  { %3853 = vmatprep.mubr.msk.bf16.mxu1 %vm645_vm0, %v3908_v28 }
 0x17b   :  { %3719 = vmatmul.mubr.msk.bf16.vlgmr.msra.gmra.mrb[0].mxu0 %vm645_vm0, %v4436_v31 }
 0x17c   :  { %712 = vmatprep.mubr.bf16.mxu0 %v7050_v0 }
 0x180   :  { %3854 = vmatmul.mubr.msk.bf16.gmra.mrb[4].mxu1 %vm645_vm0, %v3909_v30 }
 0x181   :  { %3857 = vmatprep.mubr.msk.bf16.mxu1 %vm645_vm0, %v3910_v32 }
 0x183   :  { %3720 = vmatmul.mubr.msk.bf16.gmra.mrb[4].mxu0 %vm645_vm0, %v3907_v26 }
 0x184   :  { %722 = vmatprep.mubr.bf16.mxu0 %v7050_v0 }
 0x188   :  { %3858 = vmatmul.mubr.msk.bf16.gmra.mrb[8].mxu1 %vm645_vm0, %v3911_v33 }
 0x189   :  { %3861 = vmatprep.mubr.msk.bf16.mxu1 %vm645_vm0, %v3912_v20 }
 0x18b   :  { %3721 = vmatmul.mubr.msk.bf16.gmra.mrb[8].mxu0 %vm645_vm0, %v3908_v28 }
 0x18c   :  { %732 = vmatprep.mubr.bf16.mxu0 %v7050_v0 }
 0x190   :  { %3862 = vmatmul.mubr.msk.bf16.gmra.mrb[12].mxu1 %vm645_vm0, %v3913_v35 }
 0x193   :  { %3722 = vmatmul.mubr.msk.bf16.gmra.mrb[12].mxu0 %vm645_vm0, %v3909_v30 }
 0x194   :  { %742 = vmatprep.mubr.bf16.mxu0 %v7050_v0 }
 0x19b   :  { %3723 = vmatmul.mubr.msk.bf16.gmra.mrb[16].mxu0 %vm645_vm0, %v3910_v32 }
 0x19c   :  { %752 = vmatprep.mubr.bf16.mxu0 %v7050_v0 }
 0x1a3   :  { %3724 = vmatmul.mubr.msk.bf16.gmra.mrb[20].mxu0 %vm645_vm0, %v3911_v33 }
 0x1a4   :  { %762 = vmatprep.mubr.bf16.mxu0 %v7050_v0 }
 0x1ab   :  { %3725 = vmatmul.mubr.msk.bf16.gmra.mrb[24].mxu0 %vm645_vm0, %v3912_v20 }
 0x1ac   :  { %772 = vmatprep.mubr.bf16.mxu0 %v7050_v0 }
 0x1b3   :  { %3726 = vmatmul.mubr.msk.bf16.gmra.mrb[28].mxu0 %vm645_vm0, %v3913_v35 }
 0x24b   :  { %v4552_v22 = vpop.f32.mrb[0].mxu1 }
 0x24c   :  { %7157 = vst [vmem:[#allocation12_spill] sm:$0xff] %v4552_v22  ;;  %v4554_v36 = vpop.f32.mrb[1].mxu1  ;;  %v888_v59 = vmul.f32 %v4552_v22, %v4552_v22 }
 0x24d   :  { %v4556_v39 = vpop.f32.mrb[2].mxu1  ;;  %v882_v41 = vmul.f32 %v4554_v36, %v4554_v36 }
 0x24e   :  { %7158 = vst [vmem:[#allocation13_spill] sm:$0xff] %v4556_v39  ;;  %v4558_v38 = vpop.f32.mrb[0].mxu0  ;;  %v4560_v31 = vpop.f32.mrb[3].mxu1  ;;  %v891_v44 = vmul.f32 %v4556_v39, %v4556_v39 }
 0x24f   :  { %v4562_v4 = vpop.f32.mrb[1].mxu0  ;;  %v885_v50 = vmul.f32 %v4560_v31, %v4560_v31  ;;  %v880_v23 = vmul.f32 %v4558_v38, %v4558_v38 }
 0x250   :  { %v4564_v40 = vpop.f32.mrb[2].mxu0  ;;  %v881_v24 = vmul.f32 %v4562_v4, %v4562_v4 }
 0x251   :  { %v4566_v58 = vpop.f32.mrb[3].mxu0  ;;  %v883_v28 = vmul.f32 %v4564_v40, %v4564_v40 }
 0x253   :  { %v4572_v42 = vpop.f32.mrb[4].mxu1 }
 0x254   :  { %7159 = vst [vmem:[#allocation14_spill] sm:$0xff] %v4572_v42  ;;  %v900_v45 = vadd.f32 %v4572_v42, %v4552_v22  ;;  %v912_v46 = vmul.f32 %v4572_v42, %v4572_v42  ;;  %v4580_v48 = vpop.f32.mrb[5].mxu1 }
 0x255   :  { %7160 = vst [vmem:[#allocation15_spill] sm:$0xff] %v4580_v48  ;;  %v894_v6 = vadd.f32 %v4580_v48, %v4554_v36  ;;  %v906_v51 = vmul.f32 %v4580_v48, %v4580_v48  ;;  %v4588_v52 = vpop.f32.mrb[6].mxu1 }
 0x256   :  { %7161 = vst [vmem:[#allocation16_spill] sm:$0xff] %v4588_v52  ;;  %v4590_v53 = vpop.f32.mrb[4].mxu0  ;;  %v924_v54 = vadd.f32 %v912_v46, %v888_v59  ;;  %v903_v37 = vadd.f32 %v4588_v52, %v4556_v39  ;;  %v915_v61 = vmul.f32 %v4588_v52, %v4588_v52  ;;  %v4596_v10 = vpop.f32.mrb[7].mxu1 }
 0x257   :  { %7162 = vst [vmem:[#allocation17_spill] sm:$0xff] %v4590_v53  ;;  %7163 = vst [vmem:[#allocation18_spill] sm:$0xff] %v4596_v10  ;;  %v4598_v2 = vpop.f32.mrb[5].mxu0  ;;  %v918_v8 = vadd.f32 %v906_v51, %v882_v41  ;;  %v897_v3 = vadd.f32 %v4596_v10, %v4560_v31  ;;  %v909_v9 = vmul.f32 %v4596_v10, %v4596_v10 }
 0x258   :  { %7164 = vst [vmem:[#allocation19_spill] sm:$0xff] %v4598_v2  ;;  %v4604_v11 = vpop.f32.mrb[6].mxu0  ;;  %v927_v13 = vadd.f32 %v915_v61, %v891_v44 }
 0x259   :  { %7165 = vst [vmem:[#allocation20_spill] sm:$0xff] %v4604_v11  ;;  %v4606_v15 = vpop.f32.mrb[7].mxu0  ;;  %v921_v14 = vadd.f32 %v909_v9, %v885_v50 }
 0x25a   :  { %7166 = vst [vmem:[#allocation21_spill] sm:$0xff] %v4606_v15 }
 0x25b   :  { %v4608_v57 = vpop.f32.mrb[8].mxu1 }
 0x25c   :  { %7167 = vst [vmem:[#allocation22_spill] sm:$0xff] %v4608_v57  ;;  %v936_v17 = vadd.f32 %v4608_v57, %v900_v45  ;;  %v948_v19 = vmul.f32 %v4608_v57, %v4608_v57  ;;  %v4613_v18 = vpop.f32.mrb[9].mxu1 }
 0x25d   :  { %7168 = vst [vmem:[#allocation23_spill] sm:$0xff] %v4613_v18  ;;  %v930_v16 = vadd.f32 %v894_v6, %v4613_v18  ;;  %v942_v25 = vmul.f32 %v4613_v18, %v4613_v18  ;;  %v4622_v26 = vpop.f32.mrb[10].mxu1 }
 0x25e   :  { %7169 = vst [vmem:[#allocation24_spill] sm:$0xff] %v4622_v26  ;;  %v4626_v29 = vpop.f32.mrb[8].mxu0  ;;  %v960_v30 = vadd.f32 %v948_v19, %v924_v54  ;;  %v939_v32 = vadd.f32 %v4622_v26, %v903_v37  ;;  %v951_v33 = vmul.f32 %v4622_v26, %v4622_v26  ;;  %v4631_v20 = vpop.f32.mrb[11].mxu1  ;;  %v884_v37 = vmul.f32 %v4566_v58, %v4566_v58 }
 0x25f   :  { %7170 = vst [vmem:[#allocation25_spill] sm:$0xff] %v4631_v20  ;;  %v892_v35 = vadd.f32 %v4626_v29, %v4558_v38  ;;  %v904_v59 = vmul.f32 %v4626_v29, %v4626_v29  ;;  %v4637_v41 = vpop.f32.mrb[9].mxu0  ;;  %v954_v44 = vadd.f32 %v942_v25, %v918_v8  ;;  %v933_v45 = vadd.f32 %v897_v3, %v4631_v20 }
 0x260   :  { %v893_v46 = vadd.f32 %v4637_v41, %v4562_v4  ;;  %v905_v50 = vmul.f32 %v4637_v41, %v4637_v41  ;;  %v4644_v6 = vpop.f32.mrb[10].mxu0  ;;  %v963_v51 = vadd.f32 %v951_v33, %v927_v13  ;;  %v945_v54 = vmul.f32 %v4631_v20, %v4631_v20 }
 0x261   :  { %7171 = vst [vmem:[#allocation26_spill] sm:$0xff] %v4644_v6  ;;  %v916_v61 = vadd.f32 %v904_v59, %v880_v23  ;;  %v895_v8 = vadd.f32 %v4644_v6, %v4564_v40  ;;  %v907_v3 = vmul.f32 %v4644_v6, %v4644_v6  ;;  %v4654_v9 = vpop.f32.mrb[11].mxu0 }
 0x262   :  { %v917_v19 = vadd.f32 %v905_v50, %v881_v24  ;;  %v896_v25 = vadd.f32 %v4654_v9, %v4566_v58  ;;  %v908_v13 = vmul.f32 %v4654_v9, %v4654_v9  ;;  %v957_v33 = vadd.f32 %v945_v54, %v921_v14 }
 0x263   :  { %v919_v0 = vadd.f32 %v907_v3, %v883_v28  ;;  %v4660_v26 = vpop.f32.mrb[12].mxu1  ;;  %v886_v14 = vmul.f32 %v4590_v53, %v4590_v53 }
 0x264   :  { %7172 = vst [vmem:[#allocation27_spill] sm:$0xff] %v4660_v26  ;;  %v920_v23 = vadd.f32 %v908_v13, %v884_v37  ;;  %v4663_v59 = vadd.f32 %v4660_v26, %v936_v17  ;;  %v984_v57 = vmul.f32 %v4660_v26, %v4660_v26  ;;  %v4667_v52 = vpop.f32.mrb[13].mxu1  ;;  %v887_v17 = vmul.f32 %v4598_v2, %v4598_v2 }
 0x265   :  { %v4670_v24 = vadd.f32 %v930_v16, %v4667_v52  ;;  %v978_v50 = vmul.f32 %v4667_v52, %v4667_v52  ;;  %v4674_v42 = vpop.f32.mrb[14].mxu1 }
 0x266   :  { %7173 = vst [vmem:[#allocation28_spill] sm:$0xff] %v4674_v42  ;;  %v4680_v28 = vpop.f32.mrb[12].mxu0  ;;  %v4683_v54 = vadd.f32 %v4674_v42, %v939_v32  ;;  %v4685_v37 = vpop.f32.mrb[15].mxu1  ;;  %v4687_v16 = vadd.f32 %v984_v57, %v960_v30  ;;  %v987_v7 = vmul.f32 %v4674_v42, %v4674_v42 }
 0x267   :  { %7174 = vst [vmem:[#allocation29_spill] sm:$0xff] %v4680_v28  ;;  %7175 = vst [vmem:[#allocation30_spill] sm:$0xff] %v4685_v37  ;;  %v898_v3 = vadd.f32 %v4680_v28, %v4590_v53  ;;  %v910_v13 = vmul.f32 %v4680_v28, %v4680_v28  ;;  %v4693_v20 = vpop.f32.mrb[13].mxu0  ;;  %v4696_v39 = vadd.f32 %v933_v45, %v4685_v37 }
 0x268   :  { %7176 = vst [vmem:[#allocation31_spill] sm:$0xff] %v4693_v20  ;;  %v981_v22 = vmul.f32 %v4685_v37, %v4685_v37  ;;  %v899_v32 = vadd.f32 %v4693_v20, %v4598_v2  ;;  %v911_v57 = vmul.f32 %v4693_v20, %v4693_v20  ;;  %v4704_v30 = vpop.f32.mrb[14].mxu0  ;;  %v4708_v28 = vadd.f32 %v978_v50, %v954_v44 }
 0x269   :  { %7177 = vst [vmem:[#allocation32_spill] sm:$0xff] %v4704_v30  ;;  %v889_v45 = vmul.f32 %v4604_v11, %v4604_v11  ;;  %v922_v18 = vadd.f32 %v910_v13, %v886_v14  ;;  %v901_v10 = vadd.f32 %v4704_v30, %v4604_v11  ;;  %v913_v26 = vmul.f32 %v4704_v30, %v4704_v30  ;;  %v4716_v37 = vpop.f32.mrb[15].mxu0 }
 0x26a   :  { %7178 = vst [vmem:[#allocation33_spill] sm:$0xff] %v4716_v37  ;;  %v890_v20 = vmul.f32 %v4606_v15, %v4606_v15  ;;  %v923_v2 = vadd.f32 %v911_v57, %v887_v17  ;;  %v902_v44 = vadd.f32 %v4716_v37, %v4606_v15  ;;  %v914_v50 = vmul.f32 %v4716_v37, %v4716_v37 }
 0x26b   :  { %v925_v42 = vadd.f32 %v913_v26, %v889_v45  ;;  %v4724_v14 = vadd.f32 %v981_v22, %v957_v33  ;;  %v4726_v11 = vadd.f32 %v987_v7, %v963_v51 }
 0x26c   :  { %v926_v13 = vadd.f32 %v914_v50, %v890_v20 }
 0x26e   :  { %v4728_v53 = vpop.f32.mrb[16].mxu0 }
 0x26f   :  { %7179 = vst [vmem:[#allocation34_spill] sm:$0xff] %v4728_v53  ;;  %v928_v30 = vadd.f32 %v892_v35, %v4728_v53  ;;  %v940_v6 = vmul.f32 %v4728_v53, %v4728_v53  ;;  %v4733_v17 = vpop.f32.mrb[17].mxu0 }
 0x270   :  { %7180 = vst [vmem:[#allocation35_spill] sm:$0xff] %v4733_v17  ;;  %v929_v57 = vadd.f32 %v893_v46, %v4733_v17  ;;  %v941_v37 = vmul.f32 %v4733_v17, %v4733_v17  ;;  %v4738_v26 = vpop.f32.mrb[18].mxu0 }
 0x271   :  { %7181 = vst [vmem:[#allocation36_spill] sm:$0xff] %v4738_v26  ;;  %v952_v22 = vadd.f32 %v940_v6, %v916_v61  ;;  %v931_v7 = vadd.f32 %v895_v8, %v4738_v26  ;;  %v943_v20 = vmul.f32 %v4738_v26, %v4738_v26  ;;  %v4743_v51 = vpop.f32.mrb[19].mxu0 }
 0x272   :  { %7182 = vst [vmem:[#allocation37_spill] sm:$0xff] %v4743_v51  ;;  %v953_v35 = vadd.f32 %v941_v37, %v917_v19  ;;  %v932_v33 = vadd.f32 %v896_v25, %v4743_v51  ;;  %v944_v45 = vmul.f32 %v4743_v51, %v4743_v51 }
 0x273   :  { %v955_v46 = vadd.f32 %v943_v20, %v919_v0 }
 0x274   :  { %v956_v50 = vadd.f32 %v944_v45, %v920_v23 }
 0x276   :  { %v4748_v53 = vpop.f32.mrb[20].mxu0 }
 0x277   :  { %7183 = vst [vmem:[#allocation38_spill] sm:$0xff] %v4748_v53  ;;  %v934_v17 = vadd.f32 %v898_v3, %v4748_v53  ;;  %v946_v6 = vmul.f32 %v4748_v53, %v4748_v53  ;;  %v4753_v61 = vpop.f32.mrb[21].mxu0 }
 0x278   :  { %7184 = vst [vmem:[#allocation39_spill] sm:$0xff] %v4753_v61  ;;  %v935_v8 = vadd.f32 %v899_v32, %v4753_v61  ;;  %v947_v19 = vmul.f32 %v4753_v61, %v4753_v61  ;;  %v4758_v25 = vpop.f32.mrb[22].mxu0 }
 0x279   :  { %7185 = vst [vmem:[#allocation40_spill] sm:$0xff] %v4758_v25  ;;  %v958_v37 = vadd.f32 %v946_v6, %v922_v18  ;;  %v937_v0 = vadd.f32 %v901_v10, %v4758_v25  ;;  %v949_v23 = vmul.f32 %v4758_v25, %v4758_v25  ;;  %v4763_v20 = vpop.f32.mrb[23].mxu0 }
 0x27a   :  { %7186 = vst [vmem:[#allocation41_spill] sm:$0xff] %v4763_v20  ;;  %v959_v3 = vadd.f32 %v947_v19, %v923_v2  ;;  %v938_v45 = vadd.f32 %v902_v44, %v4763_v20  ;;  %v950_v51 = vmul.f32 %v4763_v20, %v4763_v20 }
 0x27b   :  { %v961_v32 = vadd.f32 %v949_v23, %v925_v42 }
 0x27c   :  { %v962_v26 = vadd.f32 %v950_v51, %v926_v13 }
 0x27e   :  { %v4768_v53 = vpop.f32.mrb[24].mxu0 }
 0x27f   :  { %7187 = vst [vmem:[#allocation42_spill] sm:$0xff] %v4768_v53  ;;  %v964_v61 = vadd.f32 %v928_v30, %v4768_v53  ;;  %v976_v10 = vmul.f32 %v4768_v53, %v4768_v53  ;;  %v4773_v18 = vpop.f32.mrb[25].mxu0  ;;  %v1001_v53 = vsel %vm645_vm0, %v4670_v24, 0.0 }
 0x280   :  { %7188 = vst [vmem:[#allocation43_spill] sm:$0xff] %v4773_v18  ;;  %v965_v6 = vadd.f32 %v929_v57, %v4773_v18  ;;  %v977_v2 = vmul.f32 %v4773_v18, %v4773_v18  ;;  %v4778_v44 = vpop.f32.mrb[26].mxu0 }
 0x281   :  { %7189 = vst [vmem:[#allocation44_spill] sm:$0xff] %v4778_v44  ;;  %v967_v19 = vadd.f32 %v931_v7, %v4778_v44  ;;  %v979_v42 = vmul.f32 %v4778_v44, %v4778_v44  ;;  %v4783_v13 = vpop.f32.mrb[27].mxu0  ;;  %v988_v30 = vadd.f32 %v976_v10, %v952_v22  ;;  %v1006_v44 = vsel %vm645_vm0, %v4696_v39, 0.0 }
 0x282   :  { %v968_v51 = vadd.f32 %v932_v33, %v4783_v13  ;;  %v980_v23 = vmul.f32 %v4783_v13, %v4783_v13  ;;  %v1000_v20 = vadd.f32 %v965_v6, %v964_v61  ;;  %v989_v57 = vadd.f32 %v977_v2, %v953_v35 }
 0x283   :  { %v991_v25 = vadd.f32 %v979_v42, %v955_v46  ;;  %v1025_v22 = vsel %vm645_vm0, %v4708_v28, 0.0  ;;  %v1030_v46 = vsel %vm645_vm0, %v4724_v14, 0.0 }
 0x284   :  { %v1002_v18 = vadd.f32 %v1001_v53, %v1000_v20  ;;  %v1005_v15 = vadd.f32 %v968_v51, %v967_v19  ;;  %v1024_v7 = vadd.f32 %v989_v57, %v988_v30  ;;  %v992_v48 = vadd.f32 %v980_v23, %v956_v50 }
 0x285   :  { %v1035_v23 = vsel %vm645_vm0, %v4687_v16, 0.0 }
 0x286   :  { %1003 = vadd.xlane.f32.xlu0 %v1002_v18  ;;  %v4794_v33 = vpop.f32.mrb[28].mxu0  ;;  %v1007_v10 = vadd.f32 %v1006_v44, %v1005_v15  ;;  %v1026_v61 = vadd.f32 %v1025_v22, %v1024_v7  ;;  %v1029_v35 = vadd.f32 %v992_v48, %v991_v25  ;;  %v1011_v44 = vsel %vm645_vm0, %v4663_v59, 0.0 }
 0x287   :  { %7190 = vst [vmem:[#allocation45_spill] sm:$0xff] %v4794_v33  ;;  %v970_v6 = vadd.f32 %v934_v17, %v4794_v33  ;;  %v982_v53 = vmul.f32 %v4794_v33, %v4794_v33  ;;  %v4799_v24 = vpop.f32.mrb[29].mxu0  ;;  %v7228_v33 = vld [vmem:[#allocation12_spill] sm:$0xff] }
 0x288   :  { %v971_v39 = vadd.f32 %v935_v8, %v4799_v24  ;;  %v983_v28 = vmul.f32 %v4799_v24, %v4799_v24  ;;  %1008 = vadd.xlane.f32.xlu1 %v1007_v10  ;;  %v4806_v50 = vpop.f32.mrb[30].mxu0  ;;  %v1031_v15 = vadd.f32 %v1030_v46, %v1029_v35 }
 0x289   :  { %7191 = vst [vmem:[#allocation46_spill] sm:$0xff] %v4806_v50  ;;  %v973_v48 = vadd.f32 %v937_v0, %v4806_v50  ;;  %v985_v17 = vmul.f32 %v4806_v50, %v4806_v50  ;;  %v4811_v25 = vpop.f32.mrb[31].mxu0  ;;  %v994_v20 = vadd.f32 %v982_v53, %v958_v37  ;;  %v1016_v37 = vsel %vm645_vm0, %v4683_v54, 0.0 }
 0x28a   :  { %v974_v18 = vadd.f32 %v938_v45, %v4811_v25  ;;  %v986_v14 = vmul.f32 %v4811_v25, %v4811_v25  ;;  %1027 = vadd.xlane.f32.xlu0 %v1026_v61  ;;  %v1010_v8 = vadd.f32 %v971_v39, %v970_v6  ;;  %v995_v2 = vadd.f32 %v983_v28, %v959_v3 }
 0x28b   :  { %v997_v19 = vadd.f32 %v985_v17, %v961_v32  ;;  %v1040_v3 = vsel %vm645_vm0, %v4726_v11, 0.0 }
 0x28c   :  { %v1012_v42 = vadd.f32 %v1011_v44, %v1010_v8  ;;  %v1034_v0 = vadd.f32 %v995_v2, %v994_v20  ;;  %v1015_v30 = vadd.f32 %v974_v18, %v973_v48  ;;  %v998_v51 = vadd.f32 %v986_v14, %v962_v26 }
 0x28e   :  { %1032 = vadd.xlane.f32.xlu0 %v1031_v15  ;;  %1013 = vadd.xlane.f32.xlu1 %v1012_v42  ;;  %v1036_v45 = vadd.f32 %v1035_v23, %v1034_v0  ;;  %v1017_v57 = vadd.f32 %v1016_v37, %v1015_v30  ;;  %v1039_v7 = vadd.f32 %v998_v51, %v997_v19 }
 0x290   :  { %v1041_v59 = vadd.f32 %v1040_v3, %v1039_v7 }
 0x292   :  { %1037 = vadd.xlane.f32.xlu1 %v1036_v45  ;;  %1018 = vadd.xlane.f32.xlu0 %v1017_v57  ;;  %v73_v57 = vld [vmem:[%s7045_s2] sm:$0xff] }
 0x296   :  { %1042 = vadd.xlane.f32.xlu0 %v1041_v59 }
 0x313   :  { %v1004_v32 = vpop.xlane.xlu0 %1003 }
 0x314   :  { %v1020_v26 = vmul.f32 0.00086805556, %v1004_v32  ;;  %v77_v32 = vld [vmem:[%s7045_s2 + $0x20] sm:$0xff] }
 0x315   :  { %v1009_v22 = vpop.xlane.xlu1 %1008 }
 0x316   :  { %v1048_v16 = vmul.f32 %v1020_v26, %v1020_v26  ;;  %v1021_v61 = vmul.f32 0.00086805556, %v1009_v22  ;;  %v74_v22 = vld [vmem:[%s7045_s2 + $0x8] sm:$0xff] }
 0x317   :  { %v1028_v10 = vpop.xlane.xlu0 %1027 }
 0x318   :  { %v1044_v35 = vmul.f32 0.00086805556, %v1028_v10  ;;  %v1049_v46 = vmul.f32 %v1021_v61, %v1021_v61 }
 0x31a   :  { %v1052_v54 = vsub.f32 %v1044_v35, %v1048_v16 }
 0x31b   :  { %v1033_v6 = vpop.xlane.xlu0 %1032  ;;  %v1014_v53 = vpop.xlane.xlu1 %1013 }
 0x31c   :  { %v1056_v39 = vmax.f32 %v1052_v54, 0.0  ;;  %v1045_v28 = vmul.f32 0.00086805556, %v1033_v6  ;;  %v1022_v15 = vmul.f32 0.00086805556, %v1014_v53  ;;  %v78_v6 = vld [vmem:[%s7045_s2 + $0x28] sm:$0xff] }
 0x31e   :  { %v1060_v48 = vadd.f32 1e-05, %v1056_v39  ;;  %v1053_v11 = vsub.f32 %v1045_v28, %v1049_v46  ;;  %v1050_v17 = vmul.f32 %v1022_v15, %v1022_v15  ;;  %v75_v28 = vld [vmem:[%s7045_s2 + $0x10] sm:$0xff] }
 0x31f   :  { %v1038_v20 = vpop.xlane.xlu1 %1037  ;;  %v1019_v18 = vpop.xlane.xlu0 %1018 }
 0x320   :  { %3939 = vrsqrt.f32 %v1060_v48  ;;  %v1057_v14 = vmax.f32 %v1053_v11, 0.0  ;;  %v1046_v8 = vmul.f32 0.00086805556, %v1038_v20  ;;  %v1023_v2 = vmul.f32 0.00086805556, %v1019_v18 }
 0x322   :  { %v1061_v44 = vadd.f32 1e-05, %v1057_v14  ;;  %v1054_v19 = vsub.f32 %v1046_v8, %v1050_v17  ;;  %v1051_v30 = vmul.f32 %v1023_v2, %v1023_v2  ;;  %v79_v14 = vld [vmem:[%s7045_s2 + $0x30] sm:$0xff] }
 0x323   :  { %v1043_v42 = vpop.xlane.xlu0 %1042 }
 0x324   :  { %3941 = vrsqrt.f32 %v1061_v44  ;;  %v1058_v0 = vmax.f32 %v1054_v19, 0.0  ;;  %v1047_v51 = vmul.f32 0.00086805556, %v1043_v42  ;;  %v80_v42 = vld [vmem:[%s7045_s2 + $0x38] sm:$0xff] }
 0x326   :  { %v1062_v23 = vadd.f32 1e-05, %v1058_v0  ;;  %v1055_v37 = vsub.f32 %v1047_v51, %v1051_v30  ;;  %v4109_v0 = vld [vmem:[#allocation4 + $0x1a8] sm:$0x3f] }
 0x327   :  { %v2023_v30 = vrot.slane %v4109_v0, 1 }
 0x328   :  { %v1059_v45 = vmax.f32 %v1055_v37, 0.0  ;;  %3943 = vrsqrt.f32 %v1062_v23  ;;  %v2257_v23 = vrot.slane %v4109_v0, %v4299_v21 }
 0x32a   :  { %v3940_v7 = vpop.eup %3939  ;;  %v1063_v3 = vadd.f32 1e-05, %v1059_v45 }
 0x32b   :  { %v1068_v59 = vmul.f32 %v3940_v7, %v73_v57  ;;  %v2485_v7 = vrot.slane %v4467_v56, %v4299_v21 }
 0x32c   :  { %3945 = vrsqrt.f32 %v1063_v3 }
 0x32d   :  { %1082 = vperm.xlu1 %3904, %v1068_v59   ;;  %v1072_v10 = vmul.f32 %v1068_v59, %v1020_v26  ;;  %v4107_v26 = vld [vmem:[#allocation4 + $0x1a0] sm:$0x3f] }
 0x32e   :  { %v3942_v16 = vpop.eup %3941  ;;  %v1750_v48 = vrot.slane %v4107_v26, %v4315_v34  ;;  %v2329_v37 = vrot.slane %v4107_v26, 3  ;;  %v2022_v3 = vrot.slane %v4107_v26, 1 }
 0x32f   :  { %v1076_v35 = vsub.f32 %v77_v32, %v1072_v10  ;;  %v1069_v54 = vmul.f32 %v3942_v16, %v74_v22  ;;  %v2330_v32 = vrot.slane %v4109_v0, 3 }
 0x330   :  { %v2335_v57 = vmul.f32 %v4107_v26, %v2329_v37 }
 0x331   :  { %1114 = vperm.xlu1 %3904, %v1076_v35   ;;  %1087 = vperm.xlu0 %3905, %v1069_v54   ;;  %v1073_v53 = vmul.f32 %v1069_v54, %v1021_v61  ;;  %v76_v61 = vld [vmem:[%s7045_s2 + $0x18] sm:$0xff]  ;;  %v2336_v22 = vmul.f32 %v4109_v0, %v2330_v32 }
 0x332   :  { %v3944_v39 = vpop.eup %3943 }
 0x333   :  { %v1077_v46 = vsub.f32 %v78_v6, %v1073_v53  ;;  %v1070_v11 = vmul.f32 %v3944_v39, %v75_v28  ;;  %v2348_v56 = vrot.slane %v2336_v22, %v4299_v21 }
 0x335   :  { %1119 = vperm.xlu1 %3904, %v1077_v46   ;;  %1667 = vrot.lane.b32.xlu0 %v4444_v43, %s4194_s18  ;;  %v1074_v18 = vmul.f32 %v1070_v11, %v1022_v15  ;;  %v4108_v43 = vld [vmem:[#allocation4 + $0x198] sm:$0x3f] }
 0x336   :  { %v3946_v17 = vpop.eup %3945  ;;  %v2021_v8 = vrot.slane %v4108_v43, 1  ;;  %v2249_v45 = vrot.slane %v4108_v43, %v4299_v21  ;;  %v2328_v10 = vrot.slane %v4108_v43, 3 }
 0x337   :  { %v1071_v20 = vmul.f32 %v3946_v17, %v76_v61  ;;  %v1078_v44 = vsub.f32 %v79_v14, %v1074_v18 }
 0x338   :  { %v2027_v15 = vmul.f32 %v4108_v43, %v2021_v8  ;;  %v2334_v16 = vmul.f32 %v4108_v43, %v2328_v10 }
 0x339   :  { %1092 = vperm.xlu1 %3904, %v1070_v11   ;;  %1760 = vrot.lane.b32.xlu0 %v1750_v48, %s4191_s0  ;;  %v1075_v19 = vmul.f32 %v1071_v20, %v1023_v2  ;;  %v2029_v2 = vmul.f32 %v4109_v0, %v2023_v30 }
 0x33b   :  { %v1079_v51 = vsub.f32 %v80_v42, %v1075_v19 }
 0x33d   :  { %1097 = vperm.xlu1 %3904, %v1071_v20   ;;  %1828 = vrot.lane.b32.xlu0 %v4492_v5, %s4195_s22  ;;  %v2033_v5 = vrot.slane %v2027_v15, %v4307_v27 }
 0x341   :  { %1124 = vperm.xlu1 %3904, %v1078_v44   ;;  %1832 = vrot.lane.b32.xlu0 %v4475_v63, %s4195_s22  ;;  %v2041_v63 = vrot.slane %v2029_v2, %v4307_v27 }
 0x345   :  { %1129 = vperm.xlu1 %3904, %v1079_v51   ;;  %1901 = vrot.lane.b32.xlu0 %v4482_v49, %s4196_s25  ;;  %v1746_v49 = vrot.slane %v4108_v43, %v4315_v34 }
 0x349   :  { %2045 = vrot.lane.b32.xlu0 %v2033_v5, %s4197_s26  ;;  %1663 = vrot.lane.b32.xlu1 %v4456_v47, %s4194_s18  ;;  %v1754_v47 = vrot.slane %v4109_v0, %v4315_v34  ;;  %v2028_v34 = vmul.f32 %v4107_v26, %v2022_v3 }
 0x34b   :  { %v2037_v59 = vrot.slane %v2028_v34, %v4307_v27  ;;  %v2481_v27 = vrot.slane %v4464_v55, %v4299_v21 }
 0x34d   :  { %2049 = vrot.lane.b32.xlu0 %v2041_v63, %s4197_s26  ;;  %1665 = vrot.lane.b32.xlu1 %v4450_v60, %s4194_s18  ;;  %v2344_v60 = vrot.slane %v2335_v57, %v4299_v21 }
 0x351   :  { %2265 = vrot.lane.b32.xlu0 %v2257_v23, %s4192_s5  ;;  %1758 = vrot.lane.b32.xlu1 %v1746_v49, %s4191_s0  ;;  %v7192_v49 = vld [vmem:[#allocation15_spill] sm:$0xff] }
 0x355   :  { %2261 = vrot.lane.b32.xlu0 %v2249_v45, %s4192_s5  ;;  %1762 = vrot.lane.b32.xlu1 %v1754_v47, %s4191_s0 }
 0x359   :  { %2354 = vrot.lane.b32.xlu0 %v2344_v60, %s4198_s27  ;;  %1830 = vrot.lane.b32.xlu1 %v4471_v62, %s4195_s22  ;;  %v2253_v62 = vrot.slane %v4107_v26, %v4299_v21 }
 0x35d   :  { %2493 = vrot.lane.b32.xlu0 %v2485_v7, %s4193_s17  ;;  %1899 = vrot.lane.b32.xlu1 %v4498_v12, %s4196_s25  ;;  %v2340_v12 = vrot.slane %v2334_v16, %v4299_v21 }
 0x361   :  { %1903 = vrot.lane.b32.xlu1 %v4486_v1, %s4196_s25 }
 0x365   :  { %2047 = vrot.lane.b32.xlu1 %v2037_v59, %s4197_s26 }
 0x369   :  { %2263 = vrot.lane.b32.xlu1 %v2253_v62, %s4192_s5 }
 0x36d   :  { %2356 = vrot.lane.b32.xlu1 %v2348_v56, %s4198_s27 }
 0x371   :  { %2352 = vrot.lane.b32.xlu1 %v2340_v12, %s4198_s27 }
 0x375   :  { %2491 = vrot.lane.b32.xlu1 %v2481_v27, %s4193_s17 }
 0x3ac   :  { %v4896_v1 = vpop.permute.xlu1 %1082 }
 0x3ad   :  { %v1101_v35 = vmul.f32 %v4896_v1, %v4562_v4  ;;  %v1102_v54 = vmul.f32 %v4896_v1, %v4554_v36  ;;  %v1100_v46 = vmul.f32 %v4896_v1, %v4558_v38  ;;  %v1253_v28 = vmul.f32 %v4896_v1, %v4637_v41 }
 0x3ae   :  { %v1252_v44 = vmul.f32 %v4896_v1, %v4626_v29  ;;  %v1518_v5 = vmul.f32 %v4896_v1, %v4667_v52  ;;  %v4938_v29 = vmul.f32 %v4896_v1, %v7192_v49  ;;  %v7196_v49 = vld [vmem:[#allocation30_spill] sm:$0xff] }
 0x3b0   :  { %v4902_v6 = vpop.permute.xlu1 %1114  ;;  %v4904_v53 = vpop.permute.xlu0 %1087 }
 0x3b1   :  { %v1133_v39 = vadd.f32 %v4902_v6, %v1101_v35  ;;  %v1134_v55 = vadd.f32 %v4902_v6, %v1102_v54  ;;  %v1104_v4 = vmul.f32 %v4904_v53, %v4566_v58  ;;  %v1132_v26 = vadd.f32 %v4902_v6, %v1100_v46 }
 0x3b2   :  { %v1105_v48 = vmul.f32 %v4904_v53, %v4560_v31  ;;  %v1265_v17 = vadd.f32 %v1253_v28, %v4902_v6  ;;  %v1103_v61 = vmul.f32 %v4904_v53, %v4564_v40  ;;  %v1256_v41 = vmul.f32 %v4904_v53, %v4654_v9  ;;  %v7193_v28 = vld [vmem:[#allocation26_spill] sm:$0xff] }
 0x3b3   :  { %v1157_v36 = vmul.f32 0.044715, %v1133_v39  ;;  %v1158_v11 = vmul.f32 0.044715, %v1134_v55  ;;  %v1156_v20 = vmul.f32 0.044715, %v1132_v26 }
 0x3b4   :  { %v4918_v38 = vpop.permute.xlu1 %1119  ;;  %v1289_v15 = vmul.f32 0.044715, %v1265_v17  ;;  %v4934_v2 = vmul.f32 0.5, %v1133_v39  ;;  %v4942_v56 = vmul.f32 0.5, %v1134_v55  ;;  %v4944_v16 = vmul.f32 0.5, %v1132_v26 }
 0x3b5   :  { %v1136_v58 = vadd.f32 %v4918_v38, %v1104_v4  ;;  %v1169_v18 = vmul.f32 %v1157_v36, %v1133_v39  ;;  %v1137_v14 = vadd.f32 %v4918_v38, %v1105_v48  ;;  %v1170_v43 = vmul.f32 %v1158_v11, %v1134_v55 }
 0x3b6   :  { %v1135_v31 = vadd.f32 %v4918_v38, %v1103_v61  ;;  %v1168_v8 = vmul.f32 %v1156_v20, %v1132_v26  ;;  %v1268_v40 = vadd.f32 %v1256_v41, %v4918_v38  ;;  %v1301_v34 = vmul.f32 %v1289_v15, %v1265_v17 }
 0x3b7   :  { %v1160_v19 = vmul.f32 0.044715, %v1136_v58  ;;  %v1181_v42 = vmul.f32 %v1169_v18, %v1133_v39  ;;  %v1161_v9 = vmul.f32 0.044715, %v1137_v14  ;;  %v1182_v30 = vmul.f32 %v1170_v43, %v1134_v55 }
 0x3b8   :  { %v4930_v0 = vpop.permute.xlu1 %1092  ;;  %v1159_v51 = vmul.f32 0.044715, %v1135_v31  ;;  %v1180_v57 = vmul.f32 %v1168_v8, %v1132_v26  ;;  %v1292_v3 = vmul.f32 0.044715, %v1268_v40  ;;  %v1255_v4 = vmul.f32 %v4904_v53, %v7193_v28 }
 0x3b9   :  { %v1172_v63 = vmul.f32 %v1160_v19, %v1136_v58  ;;  %v1193_v23 = vadd.f32 %v1181_v42, %v1133_v39  ;;  %v1173_v37 = vmul.f32 %v1161_v9, %v1137_v14  ;;  %v1194_v45 = vadd.f32 %v1182_v30, %v1134_v55  ;;  %v7195_v9 = vld [vmem:[#allocation19_spill] sm:$0xff] }
 0x3ba   :  { %v1171_v47 = vmul.f32 %v1159_v51, %v1135_v31  ;;  %v1192_v22 = vadd.f32 %v1180_v57, %v1132_v26  ;;  %v1304_v46 = vmul.f32 %v1292_v3, %v1268_v40  ;;  %v1313_v39 = vmul.f32 %v1301_v34, %v1265_v17  ;;  %v7198_v3 = vld [vmem:[#allocation21_spill] sm:$0xff] }
 0x3bb   :  { %v1184_v60 = vmul.f32 %v1172_v63, %v1136_v58  ;;  %v1205_v7 = vmul.f32 0.7978846, %v1193_v23  ;;  %v1185_v32 = vmul.f32 %v1173_v37, %v1137_v14  ;;  %v1206_v52 = vmul.f32 0.7978846, %v1194_v45 }
 0x3bc   :  { %v4940_v59 = vpop.permute.xlu1 %1097  ;;  %v1183_v62 = vmul.f32 %v1171_v47, %v1135_v31  ;;  %v1204_v35 = vmul.f32 0.7978846, %v1192_v22  ;;  %v1264_v55 = vadd.f32 %v1252_v44, %v4902_v6  ;;  %v4951_v61 = vmul.f32 0.5, %v1136_v58  ;;  %v1668_v44 = vpop.permute.xlu0 %1667  ;;  %v7197_v47 = vld [vmem:[#allocation27_spill] sm:$0xff] }
 0x3bd   :  { %v1196_v10 = vadd.f32 %v1184_v60, %v1136_v58  ;;  %3947 = vtanh.f32 %v1205_v7  ;;  %v1197_v12 = vadd.f32 %v1185_v32, %v1137_v14  ;;  %v4953_v26 = vmul.f32 0.5, %v1265_v17  ;;  %v7194_v58 = vld [vmem:[#allocation17_spill] sm:$0xff] }
 0x3be   :  { %3949 = vtanh.f32 %v1206_v52  ;;  %v1195_v27 = vadd.f32 %v1183_v62, %v1135_v31  ;;  %v1316_v20 = vmul.f32 %v1304_v46, %v1268_v40  ;;  %v4955_v41 = vmul.f32 0.5, %v1137_v14 }
 0x3bf   :  { %v1208_v54 = vmul.f32 0.7978846, %v1196_v10  ;;  %v1209_v48 = vmul.f32 0.7978846, %v1197_v12  ;;  %3951 = vtanh.f32 %v1204_v35  ;;  %v1325_v18 = vadd.f32 %v1313_v39, %v1265_v17  ;;  %v7200_v12 = vld [vmem:[#allocation28_spill] sm:$0xff] }
 0x3c0   :  { %v4948_v36 = vpop.permute.xlu1 %1124  ;;  %v1207_v11 = vmul.f32 0.7978846, %v1195_v27  ;;  %v4958_v43 = vadd.f32 %v1255_v4, %v4918_v38  ;;  %v4960_v8 = vmul.f32 0.5, %v1135_v31  ;;  %v1328_v19 = vadd.f32 %v1316_v20, %v1268_v40  ;;  %v4999_v4 = vpop.permute.xlu0 %1760 }
 0x3c1   :  { %3953 = vtanh.f32 %v1208_v54  ;;  %v1288_v42 = vmul.f32 0.044715, %v1264_v55  ;;  %v4964_v15 = vmul.f32 %v4930_v0, %v7194_v58  ;;  %v1107_v30 = vmul.f32 %v4930_v0, %v7195_v9 }
 0x3c2   :  { %3955 = vtanh.f32 %v1209_v48  ;;  %v1337_v51 = vmul.f32 0.7978846, %v1325_v18  ;;  %v1291_v17 = vmul.f32 0.044715, %v4958_v43  ;;  %v4971_v63 = vmul.f32 0.5, %v1268_v40 }
 0x3c3   :  { %3957 = vtanh.f32 %v1207_v11  ;;  %v1340_v31 = vmul.f32 0.7978846, %v1328_v19  ;;  %v1300_v23 = vmul.f32 %v1288_v42, %v1264_v55  ;;  %v1521_v37 = vmul.f32 %v4904_v53, %v7196_v49 }
 0x3c4   :  { %v4968_v14 = vpop.permute.xlu1 %1129  ;;  %3959 = vtanh.f32 %v1337_v51  ;;  %v1303_v45 = vmul.f32 %v1291_v17, %v4958_v43  ;;  %v1524_v57 = vmul.f32 %v7197_v47, %v4930_v0  ;;  %v4979_v60 = vadd.f32 %v1518_v5, %v4902_v6 }
 0x3c5   :  { %v1110_v34 = vmul.f32 %v4940_v59, %v7198_v3  ;;  %3961 = vtanh.f32 %v1340_v31  ;;  %v1312_v40 = vmul.f32 %v1300_v23, %v1264_v55  ;;  %v4984_v32 = vadd.f32 %v1521_v37, %v4918_v38 }
 0x3c6   :  { %v1315_v10 = vmul.f32 %v1303_v45, %v4958_v43  ;;  %v1527_v27 = vmul.f32 %v7200_v12, %v4940_v59  ;;  %v4992_v5 = vadd.f32 %v1524_v57, %v4948_v36  ;;  %v4995_v35 = vadd.f32 %v4948_v36, %v1107_v30 }
 0x3c7   :  { %v3948_v7 = vpop.eup %3947  ;;  %v4997_v46 = vmul.f32 0.5, %v1264_v55  ;;  %v1324_v39 = vadd.f32 %v1312_v40, %v1264_v55  ;;  %v5002_v48 = vadd.f32 %v4968_v14, %v1110_v34  ;;  %v1554_v18 = vmul.f32 0.044715, %v4979_v60 }
 0x3c8   :  { %v3950_v52 = vpop.eup %3949  ;;  %v4986_v62 = vpop.permute.xlu1 %1663  ;;  %v1229_v22 = vadd.f32 1.0, %v3948_v7  ;;  %v1327_v11 = vadd.f32 %v1315_v10, %v4958_v43  ;;  %v5006_v20 = vadd.f32 %v1527_v27, %v4968_v14  ;;  %v1557_v55 = vmul.f32 0.044715, %v4984_v32 }
 0x3c9   :  { %7199 = vst [vmem:[#allocation15_spill] sm:$0xff] %v4986_v62  ;;  %v1230_v54 = vadd.f32 1.0, %v3950_v52  ;;  %v3952_v28 = vpop.eup %3951  ;;  %v1336_v9 = vmul.f32 0.7978846, %v1324_v39  ;;  %v1560_v49 = vmul.f32 0.044715, %v4992_v5  ;;  %v1566_v34 = vmul.f32 %v1554_v18, %v4979_v60 }
 0x3ca   :  { %v5010_v42 = vmul.f32 %v1229_v22, %v4934_v2  ;;  %v1228_v58 = vadd.f32 1.0, %v3952_v28  ;;  %v1339_v23 = vmul.f32 0.7978846, %v1327_v11  ;;  %v5039_v22 = vpop.permute.xlu0 %1828 }
 0x3cb   :  { %v3954_v19 = vpop.eup %3953  ;;  %v5014_v31 = vmul.f32 %v1230_v54, %v4942_v56  ;;  %3963 = vtanh.f32 %v1336_v9  ;;  %7203 = vst [vmem:[#allocation19_spill] sm:$0xff] %v5039_v22 }
 0x3cc   :  { %v3956_v30 = vpop.eup %3955  ;;  %v1666_v51 = vpop.permute.xlu1 %1665  ;;  %v1232_v17 = vadd.f32 1.0, %v3954_v19  ;;  %v5025_v57 = vmul.f32 %v1228_v58, %v4944_v16  ;;  %v1563_v16 = vmul.f32 0.044715, %v5006_v20  ;;  %3965 = vtanh.f32 %v1339_v23 }
 0x3cd   :  { %v3958_v37 = vpop.eup %3957  ;;  %v5019_v45 = vsel %vm1669_vm7, %v4986_v62, %v1666_v51  ;;  %v5022_v2 = vsel %vm1669_vm7, %v1666_v51, %v1668_v44  ;;  %v1233_v47 = vadd.f32 1.0, %v3956_v30  ;;  %v1569_v51 = vmul.f32 %v1557_v55, %v4984_v32 }
 0x3ce   :  { %7201 = vst [vmem:[#allocation26_spill] sm:$0xff] %v5019_v45  ;;  %7202 = vst [vmem:[#allocation17_spill] sm:$0xff] %v5022_v2  ;;  %v5028_v7 = vmul.f32 %v1232_v17, %v4951_v61  ;;  %v1676_v56 = vmul.f32 %v5019_v45, %v5010_v42  ;;  %v1231_v3 = vadd.f32 1.0, %v3958_v37  ;;  %v1677_v44 = vmul.f32 %v5022_v2, %v5014_v31  ;;  %v3960_v52 = vpop.eup %3959 }
 0x3cf   :  { %v5034_v40 = vmul.f32 %v1233_v47, %v4955_v41  ;;  %v3962_v41 = vpop.eup %3961  ;;  %v1675_v28 = vmul.f32 %v4986_v62, %v5025_v57  ;;  %v1361_v11 = vadd.f32 1.0, %v3960_v52  ;;  %v1572_v17 = vmul.f32 %v1560_v49, %v4992_v5 }
 0x3d0   :  { %v1759_v61 = vpop.permute.xlu1 %1758  ;;  %v1679_v10 = vmul.f32 %v5019_v45, %v5028_v7  ;;  %v1649_v12 = vpack.c.bf16 %v5028_v7, %v5010_v42  ;;  %v5046_v27 = vmul.f32 %v1231_v3, %v4960_v8  ;;  %v1364_v58 = vadd.f32 1.0, %v3962_v41 }
 0x3d1   :  { %v1650_v54 = vpack.c.bf16 %v5034_v40, %v5014_v31  ;;  %v1680_v39 = vmul.f32 %v5022_v2, %v5034_v40  ;;  %v5060_v30 = vmul.f32 %v1361_v11, %v4953_v26  ;;  %v1575_v3 = vmul.f32 %v1563_v16, %v5006_v20 }
 0x3d2   :  { %v1688_v18 = vpack.c.bf16 %v1679_v10, %v1676_v56  ;;  %v1678_v19 = vmul.f32 %v4986_v62, %v5046_v27  ;;  %v1648_v8 = vpack.c.bf16 %v5046_v27, %v5025_v57  ;;  %2748 = vmatprep.subr.bf16.mxu0 %v1649_v12  ;;  %v5068_v47 = vmul.f32 %v1364_v58, %v4971_v63  ;;  %v1833_v63 = vpop.permute.xlu0 %1832 }
 0x3d3   :  { %1656 = vst.msk [vmem:[#allocation2 + $0x10] sm:$0xff] %vm645_vm0, %v1650_v54  ;;  %v1689_v9 = vpack.c.bf16 %v1680_v39, %v1677_v44  ;;  %v1279_v56 = vmul.f32 0.5, %v4958_v43  ;;  %v1578_v55 = vmul.f32 %v1566_v34, %v4979_v60  ;;  %v1581_v49 = vmul.f32 %v1569_v51, %v4984_v32 }
 0x3d4   :  { %v5064_v23 = vpop.permute.xlu1 %1762  ;;  %1701 = vrot.lane.b32.xlu1 %v1688_v18, %s4191_s0  ;;  %v1687_v37 = vpack.c.bf16 %v1678_v19, %v1675_v28  ;;  %2749 = vmatpush1.bf16.msra.mxu0 %v1648_v8  ;;  %v1584_v44 = vmul.f32 %v1572_v17, %v4992_v5  ;;  %v1732_v52 = vpack.c.bf16 %v5068_v47, %v5060_v30 }
 0x3d5   :  { %7204 = vst [vmem:[#allocation30_spill] sm:$0xff] %v5064_v23  ;;  %1703 = vrot.lane.b32.xlu0 %v1689_v9, %s4191_s0  ;;  %v5076_v26 = vsel %vm490_vm2, %v4999_v4, %v5064_v23  ;;  %v1587_v10 = vmul.f32 %v1575_v3, %v5006_v20  ;;  %v5090_v12 = vsel %vm490_vm2, %v1759_v61, %v4999_v4  ;;  %v3964_v61 = vpop.eup %3963 }
 0x3d6   :  { %7205 = vst [vmem:[#allocation27_spill] sm:$0xff] %v5076_v26  ;;  %v1770_v43 = vmul.f32 %v5076_v26, %v5060_v30  ;;  %v1773_v16 = vmul.f32 %v5076_v26, %v5068_v47  ;;  %7206 = vst [vmem:[#allocation21_spill] sm:$0xff] %v5090_v12  ;;  %v1590_v34 = vadd.f32 %v1578_v55, %v4979_v60  ;;  %v3966_v51 = vpop.eup %3965  ;;  %v1360_v17 = vadd.f32 1.0, %v3964_v61 }
 0x3d7   :  { %v1593_v41 = vadd.f32 %v1581_v49, %v4984_v32  ;;  %v1596_v54 = vadd.f32 %v1584_v44, %v4992_v5  ;;  %1738 = vst [vmem:[#allocation2 + $0x68] sm:$0xff] %v1732_v52  ;;  %v1599_v11 = vadd.f32 %v1587_v10, %v5006_v20  ;;  %v5099_v18 = vmul.f32 %v5039_v22, %v5025_v57  ;;  %v1902_v52 = vpop.permute.xlu0 %1901 }
 0x3d8   :  { %v1831_v39 = vpop.permute.xlu1 %1830  ;;  %1699 = vrot.lane.b32.xlu1 %v1687_v37, %s4191_s0  ;;  %v1782_v28 = vpack.c.bf16 %v1773_v16, %v1770_v43  ;;  %v5103_v4 = vmul.f32 %v5039_v22, %v5046_v27  ;;  %v1602_v58 = vmul.f32 0.7978846, %v1590_v34  ;;  %v1363_v49 = vadd.f32 1.0, %v3966_v51 }
 0x3d9   :  { %v5107_v19 = vsel %vm1834_vm8, %v5039_v22, %v1831_v39  ;;  %v5110_v8 = vsel %vm1834_vm8, %v1831_v39, %v1833_v63  ;;  %v1605_v9 = vmul.f32 0.7978846, %v1593_v41  ;;  %v1608_v37 = vmul.f32 0.7978846, %v1596_v54 }
 0x3da   :  { %7207 = vst [vmem:[#allocation28_spill] sm:$0xff] %v5107_v19  ;;  %7208 = vst [vmem:[#allocation47_spill] sm:$0xff] %v5110_v8  ;;  %1795 = vrot.lane.b32.xlu0 %v1782_v28, %s4194_s18  ;;  %v1611_v3 = vmul.f32 0.7978846, %v1599_v11  ;;  %v1842_v55 = vmul.f32 %v5110_v8, %v5014_v31  ;;  %3967 = vtanh.f32 %v1602_v58  ;;  %v1845_v44 = vmul.f32 %v5110_v8, %v5034_v40 }
 0x3db   :  { %v1841_v63 = vmul.f32 %v5107_v19, %v5010_v42  ;;  %v5122_v16 = vmul.f32 %v1360_v17, %v4997_v46  ;;  %3969 = vtanh.f32 %v1605_v9  ;;  %v1844_v10 = vmul.f32 %v5107_v19, %v5028_v7 }
 0x3dc   :  { %v5119_v43 = vpop.permute.xlu1 %1899  ;;  %v1852_v34 = vpack.c.bf16 %v5103_v4, %v5099_v18  ;;  %v5128_v41 = vmul.f32 %v1363_v49, %v1279_v56  ;;  %3971 = vtanh.f32 %v1608_v37  ;;  %v1854_v54 = vpack.c.bf16 %v1845_v44, %v1842_v55  ;;  %v7220_v4 = vld [vmem:[#allocation35_spill] sm:$0xff] }
 0x3dd   :  { %7209 = vst [vmem:[#allocation48_spill] sm:$0xff] %v5119_v43  ;;  %v5132_v39 = vsel %vm7153_vm9, %v5119_v43, %v1902_v52  ;;  %v1769_v28 = vmul.f32 %v5090_v12, %v5122_v16  ;;  %3973 = vtanh.f32 %v1611_v3  ;;  %v1853_v46 = vpack.c.bf16 %v1844_v10, %v1841_v63  ;;  %v7211_v3 = vld [vmem:[#allocation18_spill] sm:$0xff] }
 0x3de   :  { %7210 = vst [vmem:[#allocation49_spill] sm:$0xff] %v5132_v39  ;;  %v1912_v11 = vmul.f32 %v5132_v39, %v5010_v42  ;;  %v1731_v61 = vpack.c.bf16 %v5128_v41, %v5122_v16  ;;  %v1772_v56 = vmul.f32 %v5090_v12, %v5128_v41  ;;  %1868 = vrot.lane.b32.xlu0 %v1854_v54, %s4192_s5  ;;  %v1163_v42 = vmul.f32 0.044715, %v4995_v35 }
 0x3df   :  { %v1915_v58 = vmul.f32 %v5132_v39, %v5028_v7  ;;  %v1911_v9 = vmul.f32 %v5119_v43, %v5025_v57  ;;  %v1914_v17 = vmul.f32 %v5119_v43, %v5046_v27  ;;  %v1166_v37 = vmul.f32 0.044715, %v5002_v48 }
 0x3e0   :  { %v1904_v51 = vpop.permute.xlu1 %1903  ;;  %v1257_v55 = vmul.f32 %v4904_v53, %v7211_v3  ;;  %1737 = vst [vmem:[#allocation2 + $0x60] sm:$0xff] %v1731_v61  ;;  %v1781_v49 = vpack.c.bf16 %v1772_v56, %v1769_v28  ;;  %v5158_v57 = vadd.f32 %v4938_v29, %v4902_v6  ;;  %v1175_v54 = vmul.f32 %v1163_v42, %v4995_v35  ;;  %v7213_v3 = vld [vmem:[#allocation20_spill] sm:$0xff] }
 0x3e1   :  { %v5154_v44 = vsel %vm7153_vm9, %v1902_v52, %v1904_v51  ;;  %v1924_v7 = vpack.c.bf16 %v1915_v58, %v1912_v11  ;;  %v1923_v63 = vpack.c.bf16 %v1914_v17, %v1911_v9  ;;  %v1109_v28 = vmul.f32 %v4940_v59, %v7213_v3 }
 0x3e2   :  { %7212 = vst [vmem:[#allocation18_spill] sm:$0xff] %v5154_v44  ;;  %v1913_v27 = vmul.f32 %v5154_v44, %v5014_v31  ;;  %v1916_v10 = vmul.f32 %v5154_v44, %v5034_v40  ;;  %1793 = vrot.lane.b32.xlu1 %v1781_v49, %s4194_s18  ;;  %v1178_v52 = vmul.f32 %v1166_v37, %v5002_v48  ;;  %v1290_v11 = vmul.f32 0.044715, %v5158_v57 }
 0x3e3   :  { %1937 = vrot.lane.b32.xlu0 %v1924_v7, %s4193_s17  ;;  %v5171_v29 = vadd.f32 %v1257_v55, %v4918_v38  ;;  %v5176_v31 = vadd.f32 %v4948_v36, %v4964_v15  ;;  %v1187_v61 = vmul.f32 %v1175_v54, %v4995_v35  ;;  %v5180_v58 = vadd.f32 %v4968_v14, %v1109_v28 }
 0x3e4   :  { %v1925_v40 = vpack.c.bf16 %v1916_v10, %v1913_v27  ;;  %v3968_v56 = vpop.eup %3967  ;;  %v1542_v9 = vmul.f32 0.5, %v4979_v60  ;;  %v1545_v51 = vmul.f32 0.5, %v4984_v32  ;;  %v1190_v17 = vmul.f32 %v1178_v52, %v5002_v48 }
 0x3e5   :  { %v3970_v42 = vpop.eup %3969  ;;  %v1548_v37 = vmul.f32 0.5, %v4992_v5  ;;  %v1626_v55 = vadd.f32 1.0, %v3968_v56  ;;  %v1199_v15 = vadd.f32 %v1187_v61, %v4995_v35  ;;  %v1293_v49 = vmul.f32 0.044715, %v5171_v29 }
 0x3e6   :  { %v3972_v7 = vpop.eup %3971  ;;  %v1551_v27 = vmul.f32 0.5, %v5006_v20  ;;  %v1629_v10 = vadd.f32 1.0, %v3970_v42  ;;  %1866 = vrot.lane.b32.xlu1 %v1853_v46, %s4192_s5  ;;  %v1202_v60 = vadd.f32 %v1190_v17, %v5002_v48  ;;  %v1302_v32 = vmul.f32 %v1290_v11, %v5158_v57 }
 0x3e7   :  { %1935 = vrot.lane.b32.xlu0 %v1923_v63, %s4193_s17  ;;  %v3974_v54 = vpop.eup %3973  ;;  %v1632_v3 = vadd.f32 1.0, %v3972_v7  ;;  %v1211_v5 = vmul.f32 0.7978846, %v1199_v15  ;;  %v1305_v28 = vmul.f32 %v1293_v49, %v5171_v29  ;;  %v1162_v52 = vmul.f32 0.044715, %v5176_v31  ;;  %v7216_v63 = vld [vmem:[#allocation34_spill] sm:$0xff] }
 0x3e8   :  { %v1635_v61 = vadd.f32 1.0, %v3974_v54  ;;  %v5195_v56 = vmul.f32 %v1626_v55, %v1542_v9  ;;  %v5197_v20 = vmul.f32 %v1629_v10, %v1545_v51  ;;  %v1165_v46 = vmul.f32 0.044715, %v5180_v58  ;;  %v7219_v49 = vld [vmem:[#allocation43_spill] sm:$0xff] }
 0x3e9   :  { %v1214_v42 = vmul.f32 0.7978846, %v1202_v60  ;;  %3975 = vtanh.f32 %v1211_v5  ;;  %v1384_v17 = vmul.f32 %v4896_v1, %v7216_v63  ;;  %v5202_v11 = vmul.f32 %v1632_v3, %v1548_v37 }
 0x3ea   :  { %7214 = vst [vmem:[#allocation20_spill] sm:$0xff] %v5195_v56  ;;  %7215 = vst [vmem:[#allocation50_spill] sm:$0xff] %v5197_v20  ;;  %v5204_v7 = vmul.f32 %v1635_v61, %v1551_v27  ;;  %v2182_v15 = vpack.c.bf16 %v5197_v20, %v5195_v56  ;;  %1864 = vrot.lane.b32.xlu1 %v1852_v34, %s4192_s5  ;;  %v1314_v9 = vmul.f32 %v1302_v32, %v5158_v57  ;;  %vm2106_vm9 = vcmask 171008  }
 0x3eb   :  { %7217 = vst [vmem:[#allocation34_spill] sm:$0xff] %v5202_v11  ;;  %3977 = vtanh.f32 %v1214_v42  ;;  %v1317_v51 = vmul.f32 %v1305_v28, %v5171_v29  ;;  %v1174_v55 = vmul.f32 %v1162_v52, %v5176_v31  ;;  %v5217_v37 = vmul.f32 %v4896_v1, %v7219_v49  ;;  %v7221_v52 = vld [vmem:[#allocation38_spill] sm:$0xff] }
 0x3ec   :  { %7218 = vst [vmem:[#allocation51_spill] sm:$0xff] %v5204_v7  ;;  %v2185_v27 = vpack.c.bf16 %v5204_v7, %v5202_v11  ;;  %2188 = vst.msk [vmem:[#allocation2 + $0x1f0] sm:$0xff] %vm645_vm0, %v2182_v15  ;;  %v1326_v10 = vadd.f32 %v1314_v9, %v5158_v57  ;;  %v1177_v18 = vmul.f32 %v1165_v46, %v5180_v58  ;;  %v7222_v46 = vld [vmem:[#allocation40_spill] sm:$0xff] }
 0x3ed   :  { %v5226_v34 = vmul.f32 %v4896_v1, %v7220_v4  ;;  %v1329_v60 = vadd.f32 %v1317_v51, %v5171_v29  ;;  %v1186_v32 = vmul.f32 %v1174_v55, %v5176_v31  ;;  %v1968_v54 = vmul.f32 %v5107_v19, %v5060_v30 }
 0x3ee   :  { %v1971_v3 = vmul.f32 %v5107_v19, %v5068_v47  ;;  %2191 = vst.msk [vmem:[#allocation2 + $0x208] sm:$0xff] %vm645_vm0, %v2185_v27  ;;  %1939 = vrot.lane.b32.xlu1 %v1925_v40, %s4193_s17  ;;  %v1338_v5 = vmul.f32 0.7978846, %v1326_v10  ;;  %v1189_v28 = vmul.f32 %v1177_v18, %v5180_v58  ;;  %v1390_v61 = vmul.f32 %v4930_v0, %v7221_v52  ;;  %v7223_v18 = vld [vmem:[#allocation23_spill] sm:$0xff]  ;;  %v7224_v52 = vld [vmem:[#allocation36_spill] sm:$0xff] }
 0x3ef   :  { %v1393_v42 = vmul.f32 %v4940_v59, %v7222_v46  ;;  %v1341_v63 = vmul.f32 0.7978846, %v1329_v60  ;;  %v1198_v15 = vadd.f32 %v1186_v32, %v5176_v31  ;;  %v5243_v51 = vadd.f32 %v1384_v17, %v4902_v6 }
 0x3f0   :  { %v1980_v9 = vpack.c.bf16 %v1971_v3, %v1968_v54  ;;  %3979 = vtanh.f32 %v1338_v5  ;;  %v1201_v55 = vadd.f32 %v1189_v28, %v5180_v58  ;;  %v5247_v40 = vadd.f32 %v1390_v61, %v4948_v36 }
 0x3f1   :  { %v5250_v49 = vadd.f32 %v1393_v42, %v4968_v14  ;;  %3981 = vtanh.f32 %v1341_v63  ;;  %v1210_v27 = vmul.f32 0.7978846, %v1198_v15  ;;  %v1420_v10 = vmul.f32 0.044715, %v5243_v51 }
 0x3f2   :  { %v5255_v4 = vmul.f32 %v4896_v1, %v7223_v18  ;;  %v1151_v17 = vmul.f32 0.5, %v4995_v35  ;;  %v1154_v60 = vmul.f32 0.5, %v5002_v48  ;;  %v1213_v32 = vmul.f32 0.7978846, %v1201_v55  ;;  %1993 = vrot.lane.b32.xlu1 %v1980_v9, %s4192_s5 }
 0x3f3   :  { %v1426_v54 = vmul.f32 0.044715, %v5247_v40  ;;  %v3976_v3 = vpop.eup %3975  ;;  %3983 = vtanh.f32 %v1210_v27  ;;  %v1429_v5 = vmul.f32 0.044715, %v5250_v49  ;;  %v1432_v28 = vmul.f32 %v1420_v10, %v5243_v51 }
 0x3f4   :  { %v1387_v61 = vmul.f32 %v4904_v53, %v7224_v52  ;;  %v1235_v46 = vadd.f32 1.0, %v3976_v3  ;;  %v1278_v42 = vmul.f32 0.5, %v5158_v57  ;;  %3985 = vtanh.f32 %v1213_v32 }
 0x3f5   :  { %v1438_v35 = vmul.f32 %v1426_v54, %v5247_v40  ;;  %v3978_v48 = vpop.eup %3977  ;;  %v1441_v63 = vmul.f32 %v1429_v5, %v5250_v49  ;;  %v1444_v15 = vmul.f32 %v1432_v28, %v5243_v51  ;;  %v1967_v55 = vmul.f32 %v5039_v22, %v5122_v16 }
 0x3f6   :  { %v5270_v9 = vadd.f32 %v1387_v61, %v4918_v38  ;;  %v1238_v27 = vadd.f32 1.0, %v3978_v48  ;;  %v5274_v10 = vmul.f32 %v1235_v46, %v1151_v17  ;;  %v1970_v57 = vmul.f32 %v5039_v22, %v5128_v41 }
 0x3f7   :  { %v1450_v18 = vmul.f32 %v1438_v35, %v5247_v40  ;;  %v1281_v32 = vmul.f32 0.5, %v5171_v29  ;;  %v1453_v54 = vmul.f32 %v1441_v63, %v5250_v49  ;;  %v1456_v3 = vadd.f32 %v1444_v15, %v5243_v51 }
 0x3f8   :  { %v1423_v5 = vmul.f32 0.044715, %v5270_v9  ;;  %v5283_v28 = vmul.f32 %v1238_v27, %v1154_v60  ;;  %v5287_v52 = vmul.f32 %v5019_v45, %v5274_v10  ;;  %v1979_v61 = vpack.c.bf16 %v1970_v57, %v1967_v55  ;;  %v5303_v57 = vpop.permute.xlu0 %2045 }
 0x3f9   :  { %v1462_v17 = vadd.f32 %v1450_v18, %v5247_v40  ;;  %v1465_v46 = vadd.f32 %v1453_v54, %v5250_v49  ;;  %v1468_v35 = vmul.f32 0.7978846, %v1456_v3  ;;  %v1523_v48 = vmul.f32 %v4930_v0, %v4799_v24 }
 0x3fa   :  { %v1435_v29 = vmul.f32 %v1423_v5, %v5270_v9  ;;  %v3980_v63 = vpop.eup %3979  ;;  %v1652_v60 = vpack.c.bf16 %v5283_v28, %v5274_v10  ;;  %v5298_v15 = vmul.f32 %v5019_v45, %v5283_v28  ;;  %1991 = vrot.lane.b32.xlu1 %v1979_v61, %s4192_s5  ;;  %v1526_v55 = vmul.f32 %v4940_v59, %v4811_v25 }
 0x3fb   :  { %v1474_v27 = vmul.f32 0.7978846, %v1462_v17  ;;  %v3982_v18 = vpop.eup %3981  ;;  %v1362_v54 = vadd.f32 1.0, %v3980_v63  ;;  %v1477_v3 = vmul.f32 0.7978846, %v1465_v46  ;;  %3987 = vtanh.f32 %v1468_v35 }
 0x3fc   :  { %v1447_v24 = vmul.f32 %v1435_v29, %v5270_v9  ;;  %2750 = vmatprep.subr.bf16.mxu0 %v1652_v60  ;;  %v1365_v5 = vadd.f32 1.0, %v3982_v18  ;;  %v1691_v11 = vpack.c.bf16 %v5298_v15, %v5287_v52  ;;  %v5310_v17 = vadd.f32 %v5217_v37, %v4902_v6  ;;  %v5324_v37 = vpop.permute.xlu1 %2047 }
 0x3fd   :  { %3989 = vtanh.f32 %v1474_v27  ;;  %v3984_v61 = vpop.eup %3983  ;;  %v5312_v25 = vmul.f32 %v1362_v54, %v1278_v42  ;;  %v5316_v46 = vadd.f32 %v1523_v48, %v4948_v36  ;;  %v1150_v60 = vmul.f32 0.5, %v5176_v31 }
 0x3fe   :  { %3991 = vtanh.f32 %v1477_v3  ;;  %v1459_v63 = vadd.f32 %v1447_v24, %v5270_v9  ;;  %v3986_v35 = vpop.eup %3985  ;;  %v5318_v29 = vmul.f32 %v1365_v5, %v1281_v32  ;;  %v1234_v52 = vadd.f32 1.0, %v3984_v61  ;;  %v2050_v24 = vpop.permute.xlu0 %2049 }
 0x3ff   :  { %v5322_v15 = vadd.f32 %v1526_v55, %v4968_v14  ;;  %v1969_v42 = vmul.f32 %v5110_v8, %v5312_v25  ;;  %v1153_v27 = vmul.f32 0.5, %v5180_v58  ;;  %v1237_v18 = vadd.f32 1.0, %v3986_v35  ;;  %v7225_v55 = vld [vmem:[#allocation42_spill] sm:$0xff] }
 0x400   :  { %v1471_v54 = vmul.f32 0.7978846, %v1459_v63  ;;  %v1733_v32 = vpack.c.bf16 %v5318_v29, %v5312_v25  ;;  %v1972_v31 = vmul.f32 %v5110_v8, %v5318_v29  ;;  %v5333_v48 = vmul.f32 %v1234_v52, %v1150_v60  ;;  %v2264_v20 = vpop.permute.xlu1 %2263 }
 0x401   :  { %v5337_v3 = vmul.f32 %v4896_v1, %v7225_v55  ;;  %v5339_v5 = vmul.f32 %v1237_v18, %v1153_v27  ;;  %v1553_v58 = vmul.f32 0.044715, %v5310_v17  ;;  %v1559_v61 = vmul.f32 0.044715, %v5316_v46 }
 0x402   :  { %3993 = vtanh.f32 %v1471_v54  ;;  %1739 = vst.msk [vmem:[#allocation2 + $0x70] sm:$0xff] %vm645_vm0, %v1733_v32  ;;  %v1981_v63 = vpack.c.bf16 %v1972_v31, %v1969_v42  ;;  %v1681_v35 = vmul.f32 %v4986_v62, %v5333_v48  ;;  %v1562_v60 = vmul.f32 0.044715, %v5322_v15  ;;  %v5371_v26 = vpop.permute.xlu0 %2265 }
 0x403   :  { %7226 = vst [vmem:[#allocation43_spill] sm:$0xff] %v5337_v3  ;;  %v1520_v1 = vmul.f32 %v4904_v53, %v4783_v13  ;;  %v1651_v52 = vpack.c.bf16 %v5339_v5, %v5333_v48  ;;  %v1684_v27 = vmul.f32 %v4986_v62, %v5339_v5  ;;  %v1565_v18 = vmul.f32 %v1553_v58, %v5310_v17  ;;  %v7227_v13 = vld [vmem:[#allocation11_spill] sm:$0xff] }
 0x404   :  { %v1571_v54 = vmul.f32 %v1559_v61, %v5316_v46  ;;  %1995 = vrot.lane.b32.xlu0 %v1981_v63, %s4192_s5  ;;  %v1408_v42 = vmul.f32 0.5, %v5243_v51  ;;  %v1574_v32 = vmul.f32 %v1562_v60, %v5322_v15  ;;  %v1414_v56 = vmul.f32 0.5, %v5247_v40  ;;  %7229 = vst [vmem:[#allocation35_spill] sm:$0xff] %v5371_v26 }
 0x405   :  { %v5359_v31 = vadd.f32 %v1520_v1, %v4918_v38  ;;  %v3988_v7 = vpop.eup %3987  ;;  %2751 = vmatpush1.bf16.msra.mxu0 %v1651_v52  ;;  %v1690_v58 = vpack.c.bf16 %v1684_v27, %v1681_v35  ;;  %v1577_v61 = vmul.f32 %v1565_v18, %v5310_v17  ;;  %v1417_v51 = vmul.f32 0.5, %v5250_v49  ;;  %v7230_v27 = vld [vmem:[#allocation13_spill] sm:$0xff] }
 0x406   :  { %v1583_v63 = vmul.f32 %v1571_v54, %v5316_v46  ;;  %v1586_v60 = vmul.f32 %v1574_v32, %v5322_v15  ;;  %v1108_v55 = vmul.f32 %v7228_v33, %v4930_v0  ;;  %v1111_v18 = vmul.f32 %v7230_v27, %v4940_v59 }
 0x407   :  { %v3990_v50 = vpop.eup %3989  ;;  %v1556_v1 = vmul.f32 0.044715, %v5359_v31  ;;  %v1589_v40 = vadd.f32 %v1577_v61, %v5310_v17  ;;  %v1492_v49 = vadd.f32 1.0, %v3988_v7  ;;  %v5394_v7 = vsel %vm7154_vm10, %v5303_v57, %v5324_v37 }
 0x408   :  { %v3992_v12 = vpop.eup %3991  ;;  %v1498_v52 = vadd.f32 1.0, %v3990_v50  ;;  %v1595_v35 = vadd.f32 %v1583_v63, %v5316_v46  ;;  %1707 = vrot.lane.b32.xlu0 %v1691_v11, %s4191_s0  ;;  %v1598_v32 = vadd.f32 %v1586_v60, %v5322_v15  ;;  %v5381_v43 = vadd.f32 %v4948_v36, %v1108_v55  ;;  %v5400_v60 = vpop.permute.xlu1 %2356 }
 0x409   :  { %v1501_v54 = vadd.f32 1.0, %v3992_v12  ;;  %v1568_v23 = vmul.f32 %v1556_v1, %v5359_v31  ;;  %v1601_v33 = vmul.f32 0.7978846, %v1589_v40  ;;  %v5384_v50 = vadd.f32 %v4968_v14, %v1111_v18 }
 0x40a   :  { %v1607_v3 = vmul.f32 0.7978846, %v1595_v35  ;;  %v5386_v61 = vmul.f32 %v1498_v52, %v1414_v56  ;;  %v1610_v27 = vmul.f32 0.7978846, %v1598_v32  ;;  %v5398_v55 = vsel %vm7154_vm10, %v5324_v37, %v2050_v24  ;;  %v2262_v52 = vpop.permute.xlu0 %2261 }
 0x40b   :  { %v5388_v63 = vmul.f32 %v1501_v54, %v1417_v51  ;;  %v1580_v11 = vmul.f32 %v1568_v23, %v5359_v31  ;;  %7233 = vst [vmem:[#allocation23_spill] sm:$0xff] %v5398_v55  ;;  %v1411_v56 = vmul.f32 0.5, %v5270_v9  ;;  %3995 = vtanh.f32 %v1601_v33 }
 0x40c   :  { %7231 = vst [vmem:[#allocation38_spill] sm:$0xff] %v5386_v61  ;;  %v3994_v12 = vpop.eup %3993  ;;  %v5403_v51 = vmul.f32 %v1492_v49, %v1408_v42  ;;  %1705 = vrot.lane.b32.xlu0 %v1690_v58, %s4191_s0  ;;  %3997 = vtanh.f32 %v1607_v3  ;;  %v1164_v24 = vmul.f32 0.044715, %v5381_v43  ;;  %v1167_v40 = vmul.f32 0.044715, %v5384_v50 }
 0x40d   :  { %7232 = vst [vmem:[#allocation40_spill] sm:$0xff] %v5388_v63  ;;  %v2117_v23 = vpack.c.bf16 %v5388_v63, %v5386_v61  ;;  %v1495_v1 = vadd.f32 1.0, %v3994_v12  ;;  %3999 = vtanh.f32 %v1610_v27  ;;  %v1592_v37 = vadd.f32 %v1580_v11, %v5359_v31  ;;  %v2353_v11 = vpop.permute.xlu1 %2352 }
 0x40e   :  { %v2059_v42 = vmul.f32 %v5398_v55, %v5312_v25  ;;  %v2062_v35 = vmul.f32 %v5398_v55, %v5318_v29  ;;  %v5419_v3 = vmul.f32 %v5394_v7, %v5060_v30  ;;  %v1176_v18 = vmul.f32 %v1164_v24, %v5381_v43  ;;  %v5453_v24 = vpop.permute.xlu0 %2354  ;;  %v7243_v55 = vld [vmem:[#allocation31_spill] sm:$0xff] }
 0x40f   :  { %2123 = vst [vmem:[#allocation2 + $0x198] sm:$0xff] %v2117_v23  ;;  %v5411_v9 = vmul.f32 %v1495_v1, %v1411_v56  ;;  %v1604_v58 = vmul.f32 0.7978846, %v1592_v37  ;;  %v1179_v49 = vmul.f32 %v1167_v40, %v5384_v50  ;;  %v5425_v54 = vmul.f32 %v5394_v7, %v5068_v47  ;;  %v7236_v1 = vld [vmem:[#allocation37_spill] sm:$0xff]  ;;  %7237 = vst [vmem:[#allocation11_spill] sm:$0xff] %v5453_v24 }
 0x410   :  { %v5428_v32 = vsel %vm519_vm3, %v2262_v52, %v2264_v20  ;;  %v5432_v33 = vsel %vm519_vm3, %v2264_v20, %v5371_v26  ;;  %v2071_v27 = vpack.c.bf16 %v2062_v35, %v2059_v42  ;;  %v1188_v12 = vmul.f32 %v1176_v18, %v5381_v43  ;;  %v7238_v35 = vld [vmem:[#allocation25_spill] sm:$0xff] }
 0x411   :  { %7234 = vst [vmem:[#allocation36_spill] sm:$0xff] %v5411_v9  ;;  %7235 = vst [vmem:[#allocation42_spill] sm:$0xff] %v5428_v32  ;;  %v2114_v30 = vpack.c.bf16 %v5411_v9, %v5403_v51  ;;  %4001 = vtanh.f32 %v1604_v58  ;;  %v1191_v56 = vmul.f32 %v1179_v49, %v5384_v50  ;;  %v5443_v20 = vmul.f32 %v5303_v57, %v5122_v16 }
 0x412   :  { %2085 = vrot.lane.b32.xlu0 %v2071_v27, %s4198_s27  ;;  %v5447_v23 = vmul.f32 %v5303_v57, %v5128_v41  ;;  %v1388_v52 = vmul.f32 %v4904_v53, %v7236_v1  ;;  %v1397_v37 = vadd.f32 %v5226_v34, %v4902_v6  ;;  %v1200_v40 = vadd.f32 %v1188_v12, %v5381_v43 }
 0x413   :  { %2120 = vst [vmem:[#allocation2 + $0x180] sm:$0xff] %v2114_v30  ;;  %v1203_v42 = vadd.f32 %v1191_v56, %v5384_v50  ;;  %v1389_v16 = vmul.f32 %v4904_v53, %v7238_v35  ;;  %v1398_v58 = vadd.f32 %v5255_v4, %v4902_v6  ;;  %v5463_v41 = vsel %vm2093_vm11, %v2353_v11, %v5453_v24 }
 0x414   :  { %7239 = vst [vmem:[#allocation12_spill] sm:$0xff] %v5463_v41  ;;  %v5468_v34 = vadd.f32 %v1388_v52, %v4918_v38  ;;  %v1421_v49 = vmul.f32 0.044715, %v1397_v37  ;;  %v1541_v27 = vmul.f32 0.5, %v5310_v17  ;;  %v1212_v12 = vmul.f32 0.7978846, %v1200_v40 }
 0x415   :  { %v3996_v30 = vpop.eup %3995  ;;  %v1215_v56 = vmul.f32 0.7978846, %v1203_v42  ;;  %v5472_v1 = vadd.f32 %v1389_v16, %v4918_v38  ;;  %v1547_v35 = vmul.f32 0.5, %v5316_v46  ;;  %v1550_v11 = vmul.f32 0.5, %v5322_v15 }
 0x416   :  { %v3998_v4 = vpop.eup %3997  ;;  %v7240_v18 = vrot.slane %v7227_v13, %v4299_v21  ;;  %v1424_v52 = vmul.f32 0.044715, %v5468_v34  ;;  %v1433_v47 = vmul.f32 %v1421_v49, %v1397_v37  ;;  %v1544_v40 = vmul.f32 0.5, %v5359_v31 }
 0x417   :  { %v4000_v61 = vpop.eup %3999  ;;  %v1631_v17 = vadd.f32 1.0, %v3998_v4  ;;  %4003 = vtanh.f32 %v1212_v12  ;;  %v1422_v42 = vmul.f32 0.044715, %v1398_v58  ;;  %v1152_v63 = vmul.f32 0.5, %v5381_v43 }
 0x418   :  { %2489 = vrot.lane.b32.xlu0 %v7240_v18, %s4193_s17  ;;  %v1634_v16 = vadd.f32 1.0, %v4000_v61  ;;  %4005 = vtanh.f32 %v1215_v56  ;;  %v1436_v46 = vmul.f32 %v1424_v52, %v5468_v34  ;;  %v1155_v15 = vmul.f32 0.5, %v5384_v50 }
 0x419   :  { %v1445_v24 = vmul.f32 %v1433_v47, %v1397_v37  ;;  %v1425_v21 = vmul.f32 0.044715, %v5472_v1  ;;  %v1434_v13 = vmul.f32 %v1422_v42, %v1398_v58  ;;  %v1625_v18 = vadd.f32 1.0, %v3996_v30 }
 0x41a   :  { %v5486_v49 = vmul.f32 %v1631_v17, %v1547_v35  ;;  %v5488_v4 = vmul.f32 %v1634_v16, %v1550_v11  ;;  %v1448_v31 = vmul.f32 %v1436_v46, %v5468_v34  ;;  %v1259_v52 = vmul.f32 %v4930_v0, %v7243_v55  ;;  %v7244_v35 = vld [vmem:[#allocation33_spill] sm:$0xff] }
 0x41b   :  { %v4002_v12 = vpop.eup %4001  ;;  %v1457_v61 = vadd.f32 %v1445_v24, %v1397_v37  ;;  %v1437_v43 = vmul.f32 %v1425_v21, %v5472_v1  ;;  %v1446_v56 = vmul.f32 %v1434_v13, %v1398_v58  ;;  %v1262_v11 = vmul.f32 %v4940_v59, %v7244_v35 }
 0x41c   :  { %7241 = vst [vmem:[#allocation13_spill] sm:$0xff] %v5486_v49  ;;  %7242 = vst [vmem:[#allocation37_spill] sm:$0xff] %v5488_v4  ;;  %v2184_v50 = vpack.c.bf16 %v5488_v4, %v5486_v49  ;;  %v1628_v47 = vadd.f32 1.0, %v4002_v12  ;;  %v1460_v30 = vadd.f32 %v1448_v31, %v5468_v34  ;;  %v5501_v24 = vadd.f32 %v1259_v52, %v4948_v36 }
 0x41d   :  { %v1469_v17 = vmul.f32 0.7978846, %v1457_v61  ;;  %v1449_v42 = vmul.f32 %v1437_v43, %v5472_v1  ;;  %v1458_v16 = vadd.f32 %v1446_v56, %v1398_v58  ;;  %v5503_v46 = vmul.f32 %v1625_v18, %v1541_v27  ;;  %v7245_v27 = vld [vmem:[#allocation29_spill] sm:$0xff] }
 0x41e   :  { %2190 = vst [vmem:[#allocation2 + $0x200] sm:$0xff] %v2184_v50  ;;  %v5505_v55 = vmul.f32 %v1628_v47, %v1544_v40  ;;  %v1472_v21 = vmul.f32 0.7978846, %v1460_v30  ;;  %v5508_v13 = vadd.f32 %v1262_v11, %v4968_v14  ;;  %v1409_v31 = vmul.f32 0.5, %v1397_v37  ;;  %v7246_v11 = vld [vmem:[#allocation32_spill] sm:$0xff] }
 0x41f   :  { %4007 = vtanh.f32 %v1469_v17  ;;  %v1461_v12 = vadd.f32 %v1449_v42, %v5472_v1  ;;  %v1470_v61 = vmul.f32 0.7978846, %v1458_v16  ;;  %v5513_v56 = vmul.f32 0.5, %v1398_v58 }
 0x420   :  { %v2181_v43 = vpack.c.bf16 %v5505_v55, %v5503_v46  ;;  %4009 = vtanh.f32 %v1472_v21  ;;  %v1258_v18 = vmul.f32 %v4930_v0, %v7245_v27  ;;  %v1295_v50 = vmul.f32 0.044715, %v5501_v24 }
 0x421   :  { %v4004_v40 = vpop.eup %4003  ;;  %v1473_v52 = vmul.f32 0.7978846, %v1461_v12  ;;  %4011 = vtanh.f32 %v1470_v61  ;;  %v1298_v37 = vmul.f32 0.044715, %v5508_v13  ;;  %v1412_v35 = vmul.f32 0.5, %v5468_v34 }
 0x422   :  { %v4006_v47 = vpop.eup %4005  ;;  %2187 = vst [vmem:[#allocation2 + $0x1e8] sm:$0xff] %v2181_v43  ;;  %v1236_v30 = vadd.f32 1.0, %v4004_v40  ;;  %v1261_v17 = vmul.f32 %v4940_v59, %v7246_v11  ;;  %v5523_v58 = vadd.f32 %v1258_v18, %v4948_v36  ;;  %v1307_v16 = vmul.f32 %v1295_v50, %v5501_v24 }
 0x423   :  { %v1239_v42 = vadd.f32 1.0, %v4006_v47  ;;  %4013 = vtanh.f32 %v1473_v52  ;;  %v1310_v21 = vmul.f32 %v1298_v37, %v5508_v13  ;;  %v1413_v61 = vmul.f32 0.5, %v5472_v1 }
 0x424   :  { %v5527_v12 = vmul.f32 %v1236_v30, %v1152_v63  ;;  %v5531_v43 = vadd.f32 %v1261_v17, %v4968_v14  ;;  %v1294_v34 = vmul.f32 0.044715, %v5523_v58  ;;  %v1319_v40 = vmul.f32 %v1307_v16, %v5501_v24 }
 0x425   :  { %v1251_v27 = vmul.f32 %v1239_v42, %v1155_v15  ;;  %v1322_v18 = vmul.f32 %v1310_v21, %v5508_v13  ;;  %v5538_v52 = vmul.f32 %v4986_v62, %v5411_v9  ;;  %v5546_v37 = vmul.f32 %v4986_v62, %v5403_v51 }
 0x426   :  { %v1683_v63 = vmul.f32 %v5022_v2, %v5527_v12  ;;  %v1297_v50 = vmul.f32 0.044715, %v5531_v43  ;;  %v1306_v1 = vmul.f32 %v1294_v34, %v5523_v58  ;;  %v1331_v30 = vadd.f32 %v1319_v40, %v5501_v24 }
 0x427   :  { %v1653_v15 = vpack.c.bf16 %v1251_v27, %v5527_v12  ;;  %v1686_v47 = vmul.f32 %v5022_v2, %v1251_v27  ;;  %v1334_v11 = vadd.f32 %v1322_v18, %v5508_v13  ;;  %v5558_v21 = vmul.f32 %v5107_v19, %v5274_v10 }
 0x428   :  { %v1309_v17 = vmul.f32 %v1297_v50, %v5531_v43  ;;  %v1318_v42 = vmul.f32 %v1306_v1, %v5523_v58  ;;  %v1343_v4 = vmul.f32 0.7978846, %v1331_v30  ;;  %v5563_v40 = vmul.f32 %v5107_v19, %v5283_v28 }
 0x429   :  { %v4008_v34 = vpop.eup %4007  ;;  %1659 = vst.msk [vmem:[#allocation2 + $0x28] sm:$0xff] %vm645_vm0, %v1653_v15  ;;  %v1692_v49 = vpack.c.bf16 %v1686_v47, %v1683_v63  ;;  %v1346_v62 = vmul.f32 0.7978846, %v1334_v11  ;;  %v5569_v41 = vmul.f32 %v5110_v8, %v5527_v12  ;;  %v5575_v47 = vmul.f32 %v5110_v8, %v1251_v27 }
 0x42a   :  { %v4010_v18 = vpop.eup %4009  ;;  %v1493_v50 = vadd.f32 1.0, %v4008_v34  ;;  %v1321_v1 = vmul.f32 %v1309_v17, %v5531_v43  ;;  %v1330_v16 = vadd.f32 %v1318_v42, %v5523_v58  ;;  %4015 = vtanh.f32 %v1343_v4 }
 0x42b   :  { %v4012_v9 = vpop.eup %4011  ;;  %1709 = vrot.lane.b32.xlu1 %v1692_v49, %s4191_s0  ;;  %v1496_v63 = vadd.f32 1.0, %v4010_v18  ;;  %4017 = vtanh.f32 %v1346_v62  ;;  %v5586_v4 = vmul.f32 %v5039_v22, %v5333_v48  ;;  %vm2111_vm10 = vcmask 261288  }
 0x42c   :  { %v5577_v30 = vmul.f32 %v1493_v50, %v1409_v31  ;;  %v1494_v11 = vadd.f32 1.0, %v4012_v9  ;;  %v1333_v17 = vadd.f32 %v1321_v1, %v5531_v43  ;;  %v1342_v32 = vmul.f32 0.7978846, %v1330_v16 }
 0x42d   :  { %v4014_v42 = vpop.eup %4013  ;;  %v5580_v34 = vmul.f32 %v1496_v63, %v1412_v35  ;;  %v7247_v35 = vpack.c.bf16 %v5425_v54, %v5419_v3  ;;  %v5603_v1 = vmul.f32 %v5039_v22, %v5339_v5  ;;  %v5611_v3 = vmul.f32 %v5132_v39, %v5274_v10 }
 0x42e   :  { %v2127_v18 = vmul.f32 %v5019_v45, %v5577_v30  ;;  %v1497_v31 = vadd.f32 1.0, %v4014_v42  ;;  %v5591_v9 = vmul.f32 %v1494_v11, %v5513_v56  ;;  %v1345_v62 = vmul.f32 0.7978846, %v1333_v17 }
 0x42f   :  { %2083 = vrot.lane.b32.xlu1 %v7247_v35, %s4198_s27  ;;  %v2115_v16 = vpack.c.bf16 %v5580_v34, %v5577_v30  ;;  %v2130_v50 = vmul.f32 %v5019_v45, %v5580_v34  ;;  %4019 = vtanh.f32 %v1342_v32  ;;  %v5617_v32 = vmul.f32 %v5132_v39, %v5283_v28 }
 0x430   :  { %v5605_v63 = vmul.f32 %v1497_v31, %v1413_v61  ;;  %v2128_v56 = vmul.f32 %v5022_v2, %v5591_v9  ;;  %4021 = vtanh.f32 %v1345_v62  ;;  %v5621_v61 = vmul.f32 %v5154_v44, %v5527_v12 }
 0x431   :  { %2121 = vst [vmem:[#allocation2 + $0x188] sm:$0xff] %v2115_v16  ;;  %v2139_v54 = vpack.c.bf16 %v2130_v50, %v2127_v18  ;;  %v5628_v42 = vmul.f32 %v5154_v44, %v1251_v27  ;;  %v7248_v18 = vld [vmem:[#allocation48_spill] sm:$0xff]  ;;  %v7249_v28 = vpack.c.bf16 %v5447_v23, %v5443_v20  ;;  %v7250_v27 = vld [vmem:[#allocation14_spill] sm:$0xff]  ;;  %v1283_v12 = vmul.f32 0.5, %v5501_v24 }
 0x432   :  { %v2116_v17 = vpack.c.bf16 %v5605_v63, %v5591_v9  ;;  %v2131_v10 = vmul.f32 %v5022_v2, %v5605_v63  ;;  %v5632_v31 = vmul.f32 %v7248_v18, %v5333_v48  ;;  %v5643_v62 = vmul.f32 %v7248_v18, %v5339_v5  ;;  %v7251_v20 = vld [vmem:[#allocation16_spill] sm:$0xff] }
 0x433   :  { %2081 = vrot.lane.b32.xlu1 %v7249_v28, %s4198_s27  ;;  %2152 = vrot.lane.b32.xlu0 %v2139_v54, %s4191_s0  ;;  %v1260_v35 = vmul.f32 %v7250_v27, %v4930_v0  ;;  %v1263_v23 = vmul.f32 %v7251_v20, %v4940_v59  ;;  %v7252_v50 = vld [vmem:[#allocation44_spill] sm:$0xff]  ;;  %v1286_v16 = vmul.f32 0.5, %v5508_v13 }
 0x434   :  { %2122 = vst.msk [vmem:[#allocation2 + $0x190] sm:$0xff] %vm645_vm0, %v2116_v17  ;;  %v2140_v48 = vpack.c.bf16 %v2131_v10, %v2128_v56  ;;  %v1519_v54 = vmul.f32 %v4904_v53, %v7252_v50  ;;  %v4016_v28 = vpop.eup %4015  ;;  %v7253_v56 = vld [vmem:[#allocation43_spill] sm:$0xff]  ;;  %v1285_v50 = vmul.f32 0.5, %v5531_v43 }
 0x435   :  { %v5658_v27 = vadd.f32 %v1260_v35, %v4948_v36  ;;  %v5662_v17 = vadd.f32 %v7253_v56, %v4902_v6  ;;  %v4018_v10 = vpop.eup %4017  ;;  %v1367_v20 = vadd.f32 1.0, %v4016_v28  ;;  %v5666_v11 = vadd.f32 %v1263_v23, %v4968_v14  ;;  %v7255_v28 = vld [vmem:[#allocation30_spill] sm:$0xff] }
 0x436   :  { %v5669_v53 = vadd.f32 %v1519_v54, %v4918_v38  ;;  %v1370_v24 = vadd.f32 1.0, %v4018_v10  ;;  %v1282_v35 = vmul.f32 0.5, %v5523_v58  ;;  %v5680_v23 = vmul.f32 %v7255_v28, %v5312_v25 }
 0x437   :  { %2154 = vrot.lane.b32.xlu1 %v2140_v48, %s4191_s0  ;;  %v1296_v6 = vmul.f32 0.044715, %v5658_v27  ;;  %v5675_v56 = vmul.f32 %v1367_v20, %v1283_v12  ;;  %v1299_v13 = vmul.f32 0.044715, %v5666_v11  ;;  %v5684_v38 = vmul.f32 %v7255_v28, %v5318_v29  ;;  %v7257_v20 = vld [vmem:[#allocation27_spill] sm:$0xff] }
 0x438   :  { %v5686_v54 = vmul.f32 %v1370_v24, %v1286_v16  ;;  %v1552_v43 = vmul.f32 0.044715, %v5662_v17  ;;  %v1555_v12 = vmul.f32 0.044715, %v5669_v53 }
 0x439   :  { %7254 = vst [vmem:[#allocation25_spill] sm:$0xff] %v5675_v56  ;;  %v4020_v48 = vpop.eup %4019  ;;  %v1308_v58 = vmul.f32 %v1296_v6, %v5658_v27  ;;  %v1776_v5 = vmul.f32 %v7257_v20, %v5675_v56  ;;  %v1311_v25 = vmul.f32 %v1299_v13, %v5666_v11  ;;  %v5696_v29 = vmul.f32 %v5107_v19, %v5675_v56 }
 0x43a   :  { %7256 = vst [vmem:[#allocation31_spill] sm:$0xff] %v5686_v54  ;;  %v4022_v10 = vpop.eup %4021  ;;  %v1366_v49 = vadd.f32 1.0, %v4020_v48  ;;  %v1779_v24 = vmul.f32 %v7257_v20, %v5686_v54  ;;  %v5708_v13 = vmul.f32 %v5107_v19, %v5686_v54  ;;  %v1564_v48 = vmul.f32 %v1552_v43, %v5662_v17  ;;  %v7276_v19 = vld [vmem:[#allocation12_spill] sm:$0xff] }
 0x43b   :  { %v1369_v6 = vadd.f32 1.0, %v4022_v10  ;;  %v1320_v15 = vmul.f32 %v1308_v58, %v5658_v27  ;;  %v1323_v18 = vmul.f32 %v1311_v25, %v5666_v11  ;;  %v1567_v45 = vmul.f32 %v1555_v12, %v5669_v53  ;;  %v7260_v58 = vld [vmem:[#allocation21_spill] sm:$0xff] }
 0x43c   :  { %v5703_v44 = vmul.f32 %v1366_v49, %v1282_v35  ;;  %v1785_v39 = vpack.c.bf16 %v1779_v24, %v1776_v5  ;;  %v1576_v25 = vmul.f32 %v1564_v48, %v5662_v17  ;;  %v5747_v5 = vmul.f32 %v5394_v7, %v5686_v54 }
 0x43d   :  { %v5711_v2 = vmul.f32 %v1369_v6, %v1285_v50  ;;  %v1332_v16 = vadd.f32 %v1320_v15, %v5658_v27  ;;  %v1335_v35 = vadd.f32 %v1323_v18, %v5666_v11  ;;  %v1579_v43 = vmul.f32 %v1567_v45, %v5669_v53  ;;  %v5741_v45 = vpop.permute.xlu0 %2493 }
 0x43e   :  { %7258 = vst [vmem:[#allocation33_spill] sm:$0xff] %v5703_v44  ;;  %v1775_v49 = vmul.f32 %v7260_v58, %v5703_v44  ;;  %1801 = vrot.lane.b32.xlu0 %v1785_v39, %s4194_s18  ;;  %v1588_v24 = vadd.f32 %v1576_v25, %v5662_v17  ;;  %v5730_v18 = vmul.f32 %v5039_v22, %v5703_v44 }
 0x43f   :  { %7259 = vst [vmem:[#allocation29_spill] sm:$0xff] %v5711_v2  ;;  %v1778_v15 = vmul.f32 %v7260_v58, %v5711_v2  ;;  %v1344_v50 = vmul.f32 0.7978846, %v1332_v16  ;;  %v1347_v12 = vmul.f32 0.7978846, %v1335_v35  ;;  %v5734_v6 = vmul.f32 %v5039_v22, %v5711_v2 }
 0x440   :  { %v1591_v48 = vadd.f32 %v1579_v43, %v5669_v53  ;;  %v5739_v16 = vmul.f32 %v5394_v7, %v5675_v56  ;;  %v1600_v35 = vmul.f32 0.7978846, %v1588_v24  ;;  %v5758_v43 = vmul.f32 %v5371_v26, %v5591_v9  ;;  %v5764_v7 = vpop.permute.xlu1 %2491  ;;  %v7263_v24 = vld [vmem:[#allocation39_spill] sm:$0xff] }
 0x441   :  { %v1784_v39 = vpack.c.bf16 %v1778_v15, %v1775_v49  ;;  %4023 = vtanh.f32 %v1344_v50  ;;  %v7261_v49 = vpack.c.bf16 %v5538_v52, %v5546_v37  ;;  %v5770_v52 = vmul.f32 %v5303_v57, %v5703_v44 }
 0x442   :  { %4025 = vtanh.f32 %v1347_v12  ;;  %v1603_v15 = vmul.f32 0.7978846, %v1591_v48  ;;  %v5762_v12 = vmul.f32 %v5371_v26, %v5605_v63  ;;  %v5774_v37 = vmul.f32 %v5303_v57, %v5711_v2  ;;  %v7264_v57 = vld [vmem:[#allocation41_spill] sm:$0xff]  ;;  %v7280_v26 = vld [vmem:[#allocation24_spill] sm:$0xff] }
 0x443   :  { %1799 = vrot.lane.b32.xlu1 %v1784_v39, %s4194_s18  ;;  %2150 = vrot.lane.b32.xlu0 %v7261_v49, %s4191_s0  ;;  %4027 = vtanh.f32 %v1600_v35  ;;  %7262 = vst [vmem:[#allocation32_spill] sm:$0xff] %v5770_v52  ;;  %v5780_v48 = vmul.f32 %v7257_v20, %v5503_v46  ;;  %v5784_v35 = vmul.f32 %v7257_v20, %v5505_v55  ;;  %v1284_v20 = vmul.f32 0.5, %v5658_v27 }
 0x444   :  { %4029 = vtanh.f32 %v1603_v15  ;;  %v1391_v50 = vmul.f32 %v4930_v0, %v7263_v24  ;;  %v1394_v15 = vmul.f32 %v4940_v59, %v7264_v57  ;;  %v5794_v39 = vmul.f32 %v5432_v33, %v5577_v30  ;;  %v7274_v24 = vld [vmem:[#allocation36_spill] sm:$0xff] }
 0x445   :  { %v7266_v10 = vpack.c.bf16 %v5563_v40, %v5558_v21  ;;  %v7267_v49 = vpack.c.bf16 %v5575_v47, %v5569_v41  ;;  %v5810_v57 = vmul.f32 %v5432_v33, %v5580_v34  ;;  %v5814_v22 = vmul.f32 %v5400_v60, %v5591_v9  ;;  %v7271_v47 = vld [vmem:[#allocation42_spill] sm:$0xff] }
 0x446   :  { %7265 = vst [vmem:[#allocation14_spill] sm:$0xff] %v5794_v39  ;;  %v5819_v21 = vadd.f32 %v1391_v50, %v4948_v36  ;;  %v5822_v41 = vadd.f32 %v1394_v15, %v4968_v14  ;;  %v5826_v40 = vmul.f32 %v5400_v60, %v5605_v63  ;;  %v7273_v9 = vmov 0  }
 0x447   :  { %v5796_v25 = vpop.permute.xlu0 %1703  ;;  %1872 = vrot.lane.b32.xlu1 %v7266_v10, %s4192_s5  ;;  %1874 = vrot.lane.b32.xlu0 %v7267_v49, %s4192_s5  ;;  %7268 = vst [vmem:[#allocation16_spill] sm:$0xff] %v5810_v57  ;;  %7269 = vst [vmem:[#allocation44_spill] sm:$0xff] %v5814_v22  ;;  %v5830_v10 = vmul.f32 %v7271_v47, %v5403_v51  ;;  %v5832_v49 = vpop.permute.xlu1 %1701  ;;  %v5840_v15 = vmul.f32 %v7271_v47, %v7274_v24  ;;  %v1543_v27 = vmul.f32 0.5, %v5669_v53 }
 0x448   :  { %1724 = vst.msk [vmem:[#allocation2 + $0x40] sm:$0xff] %vm496_vm1, %v5796_v25  ;;  %7270 = vst [vmem:[#allocation43_spill] sm:$0xff] %v5826_v40  ;;  %v5844_v63 = vmul.f32 %v7276_v19, %v5403_v51  ;;  %v1427_v44 = vmul.f32 0.044715, %v5819_v21  ;;  %v1430_v2 = vmul.f32 0.044715, %v5822_v41  ;;  %v7277_v54 = vpack.c.bf16 %v5603_v1, %v5586_v4 }
 0x449   :  { %7272 = vst [vmem:[#allocation30_spill] sm:$0xff] %v5830_v10  ;;  %1729 = vst.msk [vmem:[#allocation2 + $0x40] sm:$0xff] %vm1728_vm12, %v7273_v9  ;;  %v7278_v50 = vpack.c.bf16 %v5617_v32, %v5611_v3  ;;  %v1540_v51 = vmul.f32 0.5, %v5662_v17  ;;  %v1287_v4 = vmul.f32 0.5, %v5666_v11  ;;  %v7279_v17 = vld [vmem:[#allocation22_spill] sm:$0xff]  ;;  %v1395_v22 = vmul.f32 %v7280_v26, %v4940_v59 }
 0x44a   :  { %7275 = vst [vmem:[#allocation21_spill] sm:$0xff] %v5840_v15  ;;  %v1442_v3 = vmul.f32 %v1430_v2, %v5822_v41  ;;  %v7281_v2 = vpack.c.bf16 %v5628_v42, %v5621_v61  ;;  %v7282_v53 = vpack.c.bf16 %v5643_v62, %v5632_v31 }
 0x44b   :  { %v4024_v56 = vpop.eup %4023  ;;  %1870 = vrot.lane.b32.xlu1 %v7277_v54, %s4192_s5  ;;  %1943 = vrot.lane.b32.xlu0 %v7278_v50, %s4193_s17  ;;  %v1439_v54 = vmul.f32 %v1427_v44, %v5819_v21  ;;  %v1392_v50 = vmul.f32 %v7279_v17, %v4930_v0  ;;  %v7283_v17 = vld [vmem:[#allocation23_spill] sm:$0xff] }
 0x44c   :  { %v5862_v57 = vpop.permute.xlu0 %1795  ;;  %v4026_v52 = vpop.eup %4025  ;;  %v1368_v1 = vadd.f32 1.0, %v4024_v56  ;;  %v1454_v11 = vmul.f32 %v1442_v3, %v5822_v41 }
 0x44d   :  { %v1371_v32 = vadd.f32 1.0, %v4026_v52  ;;  %v4028_v39 = vpop.eup %4027  ;;  %v1451_v10 = vmul.f32 %v1439_v54, %v5819_v21  ;;  %v5874_v56 = vpop.permute.xlu1 %1699  ;;  %v5885_v52 = vadd.f32 %v1392_v50, %v4948_v36 }
 0x44e   :  { %v1380_v40 = vmul.f32 %v1368_v1, %v1284_v20  ;;  %v4030_v44 = vpop.eup %4029  ;;  %v1624_v20 = vadd.f32 1.0, %v4028_v39  ;;  %v5888_v1 = vadd.f32 %v1395_v22, %v4968_v14 }
 0x44f   :  { %1945 = vrot.lane.b32.xlu1 %v7281_v2, %s4193_s17  ;;  %1941 = vrot.lane.b32.xlu0 %v7282_v53, %s4193_s17  ;;  %v1383_v26 = vmul.f32 %v1371_v32, %v1287_v4  ;;  %v1627_v3 = vadd.f32 1.0, %v4030_v44  ;;  %v1463_v61 = vadd.f32 %v1451_v10, %v5819_v21  ;;  %v1466_v32 = vadd.f32 %v1454_v11, %v5822_v41  ;;  %v7297_v2 = vld [vmem:[#allocation14_spill] sm:$0xff] }
 0x450   :  { %v1975_v54 = vmul.f32 %v5110_v8, %v1380_v40  ;;  %v5892_v15 = vmul.f32 %v7283_v17, %v1380_v40  ;;  %v5895_v42 = vpop.permute.xlu0 %1868  ;;  %v5898_v39 = vmul.f32 %v1624_v20, %v1540_v51  ;;  %v5912_v10 = vmul.f32 %v7276_v19, %v7274_v24 }
 0x451   :  { %v1736_v31 = vpack.c.bf16 %v1383_v26, %v1380_v40  ;;  %v1978_v62 = vmul.f32 %v5110_v8, %v1383_v26  ;;  %v5901_v4 = vmul.f32 %v7283_v17, %v1383_v26  ;;  %1889 = vst.msk [vmem:[#allocation2 + $0xd0] sm:$0xff] %vm525_vm4, %v5895_v42  ;;  %v5905_v22 = vmul.f32 %v1627_v3, %v1543_v27 }
 0x452   :  { %v1475_v50 = vmul.f32 0.7978846, %v1463_v61  ;;  %1894 = vst.msk [vmem:[#allocation2 + $0xd0] sm:$0xff] %vm1893_vm13, %v7273_v9  ;;  %v7284_v44 = vpack.c.bf16 %v5708_v13, %v5696_v29  ;;  %v2192_v27 = vmul.f32 %v7260_v58, %v5898_v39  ;;  %v1478_v53 = vmul.f32 0.7978846, %v1466_v32 }
 0x453   :  { %1742 = vst.msk [vmem:[#allocation2 + $0x88] sm:$0xff] %vm645_vm0, %v1736_v31  ;;  %v1984_v51 = vpack.c.bf16 %v1978_v62, %v1975_v54  ;;  %v2074_v11 = vpack.c.bf16 %v5901_v4, %v5892_v15  ;;  %v2195_v24 = vmul.f32 %v7260_v58, %v5905_v22  ;;  %v1428_v29 = vmul.f32 0.044715, %v5885_v52  ;;  %v7285_v54 = vld [vmem:[#allocation11_spill] sm:$0xff] }
 0x454   :  { %1999 = vrot.lane.b32.xlu0 %v7284_v44, %s4192_s5  ;;  %4031 = vtanh.f32 %v1475_v50  ;;  %v5927_v20 = vpop.permute.xlu1 %1793  ;;  %v1431_v13 = vmul.f32 0.044715, %v5888_v1  ;;  %v5935_v15 = vsel %vm2093_vm11, %v7285_v54, %v5400_v60  ;;  %v5938_v3 = vmul.f32 %v7255_v28, %v1380_v40 }
 0x455   :  { %2001 = vrot.lane.b32.xlu1 %v1984_v51, %s4192_s5  ;;  %1817 = vst.msk [vmem:[#allocation2 + $0x90] sm:$0xff] %vm1816_vm14, %v5927_v20  ;;  %v2204_v17 = vpack.c.bf16 %v2195_v24, %v2192_v27  ;;  %4033 = vtanh.f32 %v1478_v53  ;;  %v5944_v61 = vmul.f32 %v5935_v15, %v5577_v30  ;;  %v5948_v31 = vmul.f32 %v5935_v15, %v5580_v34  ;;  %v7287_v24 = vld [vmem:[#allocation45_spill] sm:$0xff] }
 0x456   :  { %1823 = vst.msk [vmem:[#allocation2 + $0x90] sm:$0xff] %vm1669_vm7, %v7273_v9  ;;  %v7286_v40 = vpack.c.bf16 %v5734_v6, %v5730_v18  ;;  %v1440_v62 = vmul.f32 %v1428_v29, %v5885_v52  ;;  %v1443_v4 = vmul.f32 %v1431_v13, %v5888_v1  ;;  %v5959_v32 = vmul.f32 %v7255_v28, %v1383_v26  ;;  %v7288_v29 = vld [vmem:[#allocation46_spill] sm:$0xff] }
 0x457   :  { %v5967_v50 = vmul.f32 %v5432_v33, %v5503_v46  ;;  %v5978_v44 = vmul.f32 %v5432_v33, %v5505_v55  ;;  %v1522_v53 = vmul.f32 %v4930_v0, %v7287_v24  ;;  %v1525_v13 = vmul.f32 %v4940_v59, %v7288_v29 }
 0x458   :  { %1997 = vrot.lane.b32.xlu0 %v7286_v40, %s4192_s5  ;;  %v5969_v51 = vpop.permute.xlu1 %1866  ;;  %v1452_v18 = vmul.f32 %v1440_v62, %v5885_v52  ;;  %v1455_v6 = vmul.f32 %v1443_v4, %v5888_v1  ;;  %v5987_v54 = vsel %vm7155_vm5, %v5764_v7, %v5741_v45  ;;  %v2574_v4 = vld [vmem:[#allocation2 + $0x10] sm:$0xff]  ;;  %v1713_v24 = vsel %vm490_vm2, %v5832_v49, %v5796_v25 }
 0x459   :  { %2216 = vrot.lane.b32.xlu1 %v2204_v17, %s4194_s18  ;;  %v2598_v27 = vld [vmem:[#allocation2 + $0xd0] sm:$0xff]  ;;  %v7289_v17 = vpack.c.bf16 %v5684_v38, %v5680_v23  ;;  %v5998_v59 = vadd.f32 %v1522_v53, %v4948_v36  ;;  %v1712_v23 = vsel %vm490_vm2, %v5874_v56, %v5832_v49  ;;  %2752 = vmatprep.subr.bf16.mxu0 %v1713_v24 }
 0x45a   :  { %3765 = vmatprep.subr.bf16.mxu1 %v2598_v27  ;;  %v1464_v40 = vadd.f32 %v1452_v18, %v5885_v52  ;;  %v1467_v62 = vadd.f32 %v1455_v6, %v5888_v1  ;;  %v6001_v27 = vadd.f32 %v1525_v13, %v4968_v14  ;;  %v7290_v18 = vpack.c.bf16 %v5747_v5, %v5739_v16 }
 0x45b   :  { %3766 = vmatpush3.bf16.msra.mxu1 %v2574_v4  ;;  %v6015_v14 = vmul.f32 %v7271_v47, %v5898_v39  ;;  %v6019_v25 = vmul.f32 %v5987_v54, %v5503_v46  ;;  %v6023_v49 = vmul.f32 %v5987_v54, %v5505_v55  ;;  %v1558_v56 = vmul.f32 0.044715, %v5998_v59  ;;  %2753 = vmatpush1.bf16.msra.mxu0 %v1712_v23  ;;  %v1938_v46 = vpop.permute.xlu0 %1937 }
 0x45c   :  { %1797 = vrot.lane.b32.xlu0 %v7289_v17, %s4194_s18  ;;  %v1865_v38 = vpop.permute.xlu1 %1864  ;;  %v1476_v36 = vmul.f32 0.7978846, %v1464_v40  ;;  %v1479_v6 = vmul.f32 0.7978846, %v1467_v62  ;;  %v1561_v5 = vmul.f32 0.044715, %v6001_v27  ;;  %v6031_v13 = vmul.f32 %v7271_v47, %v5905_v22 }
 0x45d   :  { %2089 = vrot.lane.b32.xlu1 %v7290_v18, %s4198_s27  ;;  %v1415_v16 = vmul.f32 0.5, %v5819_v21  ;;  %v1570_v55 = vmul.f32 %v1558_v56, %v5998_v59  ;;  %v6038_v62 = vsel %vm1669_vm7, %v5927_v20, %v5862_v57  ;;  %v7291_v21 = vpack.c.bf16 %v5762_v12, %v5758_v43  ;;  %v7302_v43 = vld [vmem:[#allocation21_spill] sm:$0xff] }
 0x45e   :  { %v4032_v53 = vpop.eup %4031  ;;  %4035 = vtanh.f32 %v1476_v36  ;;  %v1573_v40 = vmul.f32 %v1561_v5, %v6001_v27  ;;  %v1418_v4 = vmul.f32 0.5, %v5822_v41  ;;  %v7292_v12 = vpack.c.bf16 %v5784_v35, %v5780_v48  ;;  %v7293_v5 = vld [vmem:[#allocation26_spill] sm:$0xff]  ;;  %v7294_v48 = vld [vmem:[#allocation32_spill] sm:$0xff] }
 0x45f   :  { %v1499_v29 = vadd.f32 1.0, %v4032_v53  ;;  %v4034_v17 = vpop.eup %4033  ;;  %4037 = vtanh.f32 %v1479_v6  ;;  %v1582_v36 = vmul.f32 %v1570_v55, %v5998_v59  ;;  %v6055_v6 = vsel %vm519_vm3, %v5969_v51, %v5895_v42  ;;  %v3916_v42 = vld [vmem:[#allocation6 + $0x4] ss:$16 sps:$4 sm:$0xff]  }
 0x460   :  { %2091 = vrot.lane.b32.xlu0 %v2074_v11, %s4198_s27  ;;  %v1940_v11 = vpop.permute.xlu1 %1939  ;;  %v1502_v24 = vadd.f32 1.0, %v4034_v17  ;;  %v1585_v20 = vmul.f32 %v1573_v40, %v6001_v27  ;;  %v7295_v35 = vpack.c.bf16 %v5774_v37, %v7294_v48  ;;  %v6095_v37 = vsel %vm519_vm3, %v1865_v38, %v5969_v51  ;;  %2780 = vmatprep.mubr.bf16.mxu0 %v3916_v42  ;;  %v7299_v38 = vld [vmem:[#allocation20_spill] sm:$0xff] }
 0x461   :  { %2300 = vrot.lane.b32.xlu1 %v7291_v21, %s4195_s22  ;;  %v6045_v23 = vmul.f32 %v1499_v29, %v1415_v16  ;;  %1960 = vst.msk [vmem:[#allocation2 + $0x100] sm:$0xff] %vm566_vm6, %v1940_v11  ;;  %v1594_v29 = vadd.f32 %v1582_v36, %v5998_v59  ;;  %2926 = vmatprep.mubr.bf16.mxu1 %v3916_v42  ;;  %v7300_v42 = vld [vmem:[#allocation35_spill] sm:$0xff] }
 0x462   :  { %v6063_v41 = vmul.f32 %v1502_v24, %v1418_v4  ;;  %v1597_v17 = vadd.f32 %v1585_v20, %v6001_v27  ;;  %v1936_v24 = vpop.permute.xlu0 %1935  ;;  %1965 = vst.msk [vmem:[#allocation2 + $0x100] sm:$0xff] %vm1964_vm15, %v7273_v9 }
 0x463   :  { %v6067_v53 = vmul.f32 %v5432_v33, %v6045_v23  ;;  %v6071_v56 = vmul.f32 %v5935_v15, %v6045_v23  ;;  %v2133_v16 = vmul.f32 %v7293_v5, %v6045_v23  ;;  %v1606_v36 = vmul.f32 0.7978846, %v1594_v29 }
 0x464   :  { %2218 = vrot.lane.b32.xlu0 %v7292_v12, %s4194_s18  ;;  %v2136_v40 = vmul.f32 %v7293_v5, %v6063_v41  ;;  %v6087_v21 = vmul.f32 %v5432_v33, %v6063_v41  ;;  %v6091_v4 = vmul.f32 %v5935_v15, %v6063_v41  ;;  %v1609_v20 = vmul.f32 0.7978846, %v1597_v17  ;;  %v1994_v12 = vpop.permute.xlu1 %1993  ;;  %v7309_v5 = vld [vmem:[#allocation40_spill] sm:$0xff] }
 0x465   :  { %2087 = vrot.lane.b32.xlu1 %v7295_v35, %s4198_s27  ;;  %v7296_v35 = vld [vmem:[#allocation16_spill] sm:$0xff]  ;;  %4039 = vtanh.f32 %v1606_v36  ;;  %v6106_v17 = vsel %vm7155_vm5, %v1936_v24, %v1938_v46  ;;  %v1416_v24 = vmul.f32 0.5, %v5885_v52  ;;  %v1419_v29 = vmul.f32 0.5, %v5888_v1 }
 0x466   :  { %v2142_v48 = vpack.c.bf16 %v2136_v40, %v2133_v16  ;;  %v7298_v55 = vpack.c.bf16 %v7296_v35, %v7297_v2  ;;  %v2422_v16 = vmul.f32 %v7300_v42, %v7299_v38  ;;  %v7301_v40 = vld [vmem:[#allocation50_spill] sm:$0xff]  ;;  %4041 = vtanh.f32 %v1609_v20 }
 0x467   :  { %v2425_v2 = vmul.f32 %v7300_v42, %v7301_v40 }
 0x468   :  { %2298 = vrot.lane.b32.xlu0 %v7298_v55, %s4195_s22  ;;  %v4036_v51 = vpop.eup %4035  ;;  %v6114_v55 = vsel %vm7155_vm5, %v1938_v46, %v1940_v11  ;;  %v7305_v46 = vld [vmem:[#allocation43_spill] sm:$0xff]  ;;  %v7306_v11 = vld [vmem:[#allocation44_spill] sm:$0xff] }
 0x469   :  { %2158 = vrot.lane.b32.xlu1 %v2142_v48, %s4191_s0  ;;  %v4038_v36 = vpop.eup %4037  ;;  %v1500_v35 = vadd.f32 1.0, %v4036_v51  ;;  %v7303_v48 = vld [vmem:[#allocation30_spill] sm:$0xff]  ;;  %v7307_v30 = vpack.c.bf16 %v7305_v46, %v7306_v11  ;;  %v2434_v26 = vpack.c.bf16 %v2425_v2, %v2422_v16  ;;  %v7308_v51 = vld [vmem:[#allocation17_spill] sm:$0xff] }
 0x46a   :  { %v7304_v18 = vpack.c.bf16 %v7302_v43, %v7303_v48  ;;  %v1503_v15 = vadd.f32 1.0, %v4038_v36  ;;  %v7310_v43 = vld [vmem:[#allocation15_spill] sm:$0xff]  ;;  %v7311_v16 = vld [vmem:[#allocation38_spill] sm:$0xff] }
 0x46b   :  { %v1512_v0 = vmul.f32 %v1500_v35, %v1416_v24  ;;  %v2132_v2 = vmul.f32 %v7310_v43, %v7311_v16 }
 0x46c   :  { %2296 = vrot.lane.b32.xlu0 %v7304_v18, %s4195_s22  ;;  %v1992_v20 = vpop.permute.xlu1 %1991  ;;  %v1515_v34 = vmul.f32 %v1503_v15, %v1419_v29  ;;  %v2135_v18 = vmul.f32 %v7310_v43, %v7309_v5 }
 0x46d   :  { %2392 = vrot.lane.b32.xlu1 %v7307_v30, %s4197_s26  ;;  %v6129_v52 = vsel %vm519_vm3, %v1992_v20, %v1994_v12  ;;  %v2134_v8 = vmul.f32 %v7308_v51, %v1512_v0  ;;  %v2280_v1 = vmul.f32 %v7300_v42, %v1512_v0  ;;  %v6136_v36 = vmul.f32 %v5400_v60, %v1512_v0 }
 0x46e   :  { %v2119_v24 = vpack.c.bf16 %v1515_v34, %v1512_v0  ;;  %v2137_v35 = vmul.f32 %v7308_v51, %v1515_v34  ;;  %v2283_v30 = vmul.f32 %v7300_v42, %v1515_v34  ;;  %v6141_v15 = vmul.f32 %v5400_v60, %v1515_v34 }
 0x46f   :  { %v4040_v0 = vpop.eup %4039  ;;  %v2141_v11 = vpack.c.bf16 %v2135_v18, %v2132_v2  ;;  %v1546_v60 = vmul.f32 0.5, %v5998_v59  ;;  %v7314_v18 = vld [vmem:[#allocation27_spill] sm:$0xff] }
 0x470   :  { %2125 = vst.msk [vmem:[#allocation2 + $0x1a8] sm:$0xff] %vm645_vm0, %v2119_v24  ;;  %v2143_v29 = vpack.c.bf16 %v2137_v35, %v2134_v8  ;;  %v2289_v48 = vpack.c.bf16 %v2283_v30, %v2280_v1  ;;  %v2381_v20 = vpack.c.bf16 %v6141_v15, %v6136_v36  ;;  %v4042_v46 = vpop.eup %4041  ;;  %v1630_v34 = vadd.f32 1.0, %v4040_v0  ;;  %v7313_v35 = vld [vmem:[#allocation37_spill] sm:$0xff] }
 0x471   :  { %2448 = vrot.lane.b32.xlu1 %v2434_v26, %s4195_s22  ;;  %v1549_v26 = vmul.f32 0.5, %v6001_v27  ;;  %v1633_v51 = vadd.f32 1.0, %v4042_v46  ;;  %v7312_v36 = vpack.c.bf16 %v5948_v31, %v5944_v61  ;;  %v2202_v30 = vmul.f32 %v7314_v18, %v7313_v35 }
 0x472   :  { %2160 = vrot.lane.b32.xlu0 %v2143_v29, %s4191_s0  ;;  %v6153_v8 = vmul.f32 %v1630_v34, %v1546_v60  ;;  %v7316_v29 = vld [vmem:[#allocation13_spill] sm:$0xff] }
 0x473   :  { %v6155_v24 = vmul.f32 %v1633_v51, %v1549_v26  ;;  %v2199_v2 = vmul.f32 %v7314_v18, %v7316_v29  ;;  %v2281_v26 = vmul.f32 %v7271_v47, %v7309_v5 }
 0x474   :  { %v6169_v27 = vmul.f32 %v7271_v47, %v6153_v8  ;;  %v2198_v15 = vmul.f32 %v7260_v58, %v6153_v8 }
 0x475   :  { %2156 = vrot.lane.b32.xlu1 %v2141_v11, %s4191_s0  ;;  %v2183_v51 = vpack.c.bf16 %v6155_v24, %v6153_v8  ;;  %v2201_v61 = vmul.f32 %v7260_v58, %v6155_v24  ;;  %v6181_v31 = vmul.f32 %v7271_v47, %v6155_v24  ;;  %v7317_v11 = vpack.c.bf16 %v5912_v10, %v5844_v63 }
 0x476   :  { %v1996_v1 = vpop.permute.xlu0 %1995  ;;  %2390 = vrot.lane.b32.xlu0 %v7312_v36, %s4197_s26  ;;  %v2208_v60 = vpack.c.bf16 %v2202_v30, %v2199_v2  ;;  %v7319_v63 = vpack.c.bf16 %v6087_v21, %v6067_v53  ;;  %v7320_v21 = vpack.c.bf16 %v6091_v4, %v6071_v56  ;;  %v7321_v56 = vpack.c.bf16 %v6031_v13, %v6015_v14 }
 0x477   :  { %2015 = vst.msk [vmem:[#allocation2 + $0x130] sm:$0xff] %vm525_vm4, %v1996_v1  ;;  %v6165_v59 = vsel %vm519_vm3, %v1994_v12, %v1996_v1  ;;  %v7315_v12 = vpack.c.bf16 %v5959_v32, %v5938_v3  ;;  %v2207_v0 = vpack.c.bf16 %v2201_v61, %v2198_v15  ;;  %v2435_v58 = vpack.c.bf16 %v6181_v31, %v6169_v27 }
 0x478   :  { %2019 = vst.msk [vmem:[#allocation2 + $0x130] sm:$0xff] %vm1893_vm13, %v7273_v9  ;;  %v7318_v3 = vpack.c.bf16 %v5978_v44, %v5967_v50  ;;  %v2278_v32 = vmul.f32 %v7271_v47, %v7311_v16  ;;  %v2502_v47 = vmul.f32 %v5741_v45, %v7299_v38  ;;  %v2505_v44 = vmul.f32 %v5741_v45, %v7301_v40 }
 0x479   :  { %1803 = vrot.lane.b32.xlu1 %v7315_v12, %s4194_s18  ;;  %v2373_v61 = vmul.f32 %v7276_v19, %v7309_v5  ;;  %v2427_v2 = vmul.f32 %v5432_v33, %v7316_v29  ;;  %v7323_v13 = vpack.c.bf16 %v6023_v49, %v6019_v25  ;;  %v2510_v25 = vmul.f32 %v5987_v54, %v7313_v35 }
 0x47a   :  { %v1708_v46 = vpop.permute.xlu0 %1707  ;;  %2388 = vrot.lane.b32.xlu0 %v7317_v11, %s4197_s26  ;;  %v2287_v10 = vpack.c.bf16 %v2281_v26, %v2278_v32 }
 0x47d   :  { %2224 = vrot.lane.b32.xlu1 %v2208_v60, %s4194_s18  ;;  %v2197_v60 = vmul.f32 %v7255_v28, %v7301_v40 }
 0x47e   :  { %v1706_v34 = vpop.permute.xlu0 %1705  ;;  %2446 = vrot.lane.b32.xlu0 %v7318_v3, %s4195_s22 }
 0x47f   :  { %v1714_v1 = vsel %vm490_vm2, %v1706_v34, %v1708_v46  ;;  %v2507_v34 = vmul.f32 %v5987_v54, %v7316_v29  ;;  %v2585_v29 = vld [vmem:[#allocation2 + $0x68] sm:$0xff] }
 0x481   :  { %2304 = vrot.lane.b32.xlu1 %v7319_v63, %s4195_s22  ;;  %v2516_v40 = vpack.c.bf16 %v2510_v25, %v2507_v34 }
 0x482   :  { %2222 = vrot.lane.b32.xlu0 %v2207_v0, %s4194_s18  ;;  %v7324_v0 = vld [vmem:[#allocation34_spill] sm:$0xff] }
 0x484   :  { %v2086_v50 = vpop.permute.xlu0 %2085 }
 0x485   :  { %2302 = vrot.lane.b32.xlu1 %v2287_v10, %s4195_s22  ;;  %2107 = vst.msk [vmem:[#allocation2 + $0x160] sm:$0xff] %vm2106_vm9, %v2086_v50  ;;  %v7325_v10 = vld [vmem:[#allocation31_spill] sm:$0xff] }
 0x486   :  { %2112 = vst.msk [vmem:[#allocation2 + $0x160] sm:$0xff] %vm2111_vm10, %v7273_v9  ;;  %2306 = vrot.lane.b32.xlu0 %v2289_v48, %s4195_s22  ;;  %v2370_v48 = vmul.f32 %v7276_v19, %v7311_v16  ;;  %v2430_v16 = vmul.f32 %v5432_v33, %v7313_v35  ;;  %v7322_v19 = vld [vmem:[#allocation51_spill] sm:$0xff]  ;;  %v2194_v33 = vmul.f32 %v7255_v28, %v7299_v38 }
 0x487   :  { %v2431_v14 = vmul.f32 %v7300_v42, %v7322_v19  ;;  %v2508_v38 = vmul.f32 %v5741_v45, %v7324_v0  ;;  %v2203_v3 = vmul.f32 %v7255_v28, %v7322_v19  ;;  %v2200_v35 = vmul.f32 %v7255_v28, %v7324_v0 }
 0x488   :  { %v2379_v12 = vpack.c.bf16 %v2373_v61, %v2370_v48  ;;  %v2436_v5 = vpack.c.bf16 %v2430_v16, %v2427_v2  ;;  %v2206_v49 = vpack.c.bf16 %v2197_v60, %v2194_v33  ;;  %v2577_v33 = vld [vmem:[#allocation2 + $0x28] sm:$0xff]  ;;  %v2580_v60 = vld [vmem:[#allocation2 + $0x40] sm:$0xff] }
 0x489   :  { %2396 = vrot.lane.b32.xlu1 %v7320_v21, %s4197_s26  ;;  %v2209_v26 = vpack.c.bf16 %v2203_v3, %v2200_v35  ;;  %v7329_v21 = vld [vmem:[#allocation33_spill] sm:$0xff]  ;;  %v2586_v35 = vld [vmem:[#allocation2 + $0x70] sm:$0xff] }
 0x48a   :  { %v2490_v53 = vpop.permute.xlu0 %2489  ;;  %2444 = vrot.lane.b32.xlu0 %v7321_v56, %s4195_s22 }
 0x48b   :  { %v2495_v36 = vsel %vm7155_vm5, %v2490_v53, %v5764_v7  ;;  %v2514_v7 = vpack.c.bf16 %v2505_v44, %v2502_v47  ;;  %v7326_v47 = vld [vmem:[#allocation25_spill] sm:$0xff] }
 0x48c   :  { %v2500_v18 = vmul.f32 %v2495_v36, %v5898_v39  ;;  %v2503_v30 = vmul.f32 %v2495_v36, %v5905_v22  ;;  %v2506_v27 = vmul.f32 %v2495_v36, %v6153_v8  ;;  %v2509_v15 = vmul.f32 %v2495_v36, %v6155_v24  ;;  %v7328_v53 = vld [vmem:[#allocation29_spill] sm:$0xff]  ;;  %v6421_v8 = vld [vmem:[#allocation6 + $0xc] ss:$16 sps:$4 sm:$0xff]  }
 0x48d   :  { %2528 = vrot.lane.b32.xlu1 %v2514_v7, %s4196_s25  ;;  %v7327_v44 = vpack.c.bf16 %v7325_v10, %v7326_v47  ;;  %v7330_v36 = vpack.c.bf16 %v7328_v53, %v7329_v21 }
 0x48e   :  { %v2512_v4 = vpack.c.bf16 %v2503_v30, %v2500_v18  ;;  %v2515_v31 = vpack.c.bf16 %v2509_v15, %v2506_v27  ;;  %2398 = vrot.lane.b32.xlu0 %v2381_v20, %s4197_s26  ;;  %v2428_v20 = vmul.f32 %v7300_v42, %v7324_v0  ;;  %v2511_v42 = vmul.f32 %v5741_v45, %v7322_v19  ;;  %v2590_v30 = vld [vmem:[#allocation2 + $0x90] sm:$0xff] }
 0x490   :  { %v2437_v11 = vpack.c.bf16 %v2431_v14, %v2428_v20  ;;  %v2517_v45 = vpack.c.bf16 %v2511_v42, %v2508_v38 }
 0x491   :  { %2394 = vrot.lane.b32.xlu1 %v2379_v12, %s4197_s26 }
 0x492   :  { %2526 = vrot.lane.b32.xlu0 %v7323_v13, %s4196_s25 }
 0x495   :  { %2452 = vrot.lane.b32.xlu1 %v2436_v5, %s4195_s22 }
 0x496   :  { %2454 = vrot.lane.b32.xlu0 %v2437_v11, %s4195_s22  ;;  %v2604_v11 = vld [vmem:[#allocation2 + $0x100] sm:$0xff] }
 0x499   :  { %2524 = vrot.lane.b32.xlu1 %v2512_v4, %s4196_s25 }
 0x49a   :  { %2220 = vrot.lane.b32.xlu0 %v2206_v49, %s4194_s18 }
 0x49d   :  { %v1710_v32 = vpop.permute.xlu1 %1709  ;;  %2450 = vrot.lane.b32.xlu1 %v2435_v58, %s4195_s22  ;;  %v2584_v58 = vld [vmem:[#allocation2 + $0x60] sm:$0xff] }
 0x49e   :  { %v1715_v54 = vsel %vm490_vm2, %v1708_v46, %v1710_v32  ;;  %1727 = vst.msk [vmem:[#allocation2 + $0x58] sm:$0xff] %vm496_vm1, %v1710_v32  ;;  %2532 = vrot.lane.b32.xlu0 %v2516_v40, %s4196_s25  ;;  %v2610_v40 = vld [vmem:[#allocation2 + $0x130] sm:$0xff] }
 0x49f   :  { %1730 = vst.msk [vmem:[#allocation2 + $0x58] sm:$0xff] %vm1728_vm12, %v7273_v9  ;;  %2754 = vmatprep.subr.bf16.mxu0 %v1715_v54 }
 0x4a0   :  { %2755 = vmatpush1.bf16.msra.mxu0 %v1714_v1 }
 0x4a1   :  { %v2084_v63 = vpop.permute.xlu1 %2083  ;;  %2756 = vmatprep.subr.bf16.mxu0 %v2585_v29  ;;  %2534 = vrot.lane.b32.xlu1 %v2517_v45, %s4196_s25 }
 0x4a2   :  { %v6280_v46 = vsel %vm2093_vm11, %v2084_v63, %v2086_v50  ;;  %2226 = vrot.lane.b32.xlu0 %v2209_v26, %s4194_s18  ;;  %v2616_v26 = vld [vmem:[#allocation2 + $0x160] sm:$0xff] }
 0x4a4   :  { %2757 = vmatpush1.bf16.msra.mxu0 %v2584_v58 }
 0x4a5   :  { %v2082_v28 = vpop.permute.xlu1 %2081  ;;  %2758 = vmatprep.subr.bf16.mxu0 %v7327_v44  ;;  %2530 = vrot.lane.b32.xlu1 %v2515_v31, %s4196_s25  ;;  %v2153_v50 = vpop.permute.xlu0 %2152 }
 0x4a6   :  { %v6288_v1 = vsel %vm2093_vm11, %v2082_v28, %v2084_v63  ;;  %v2583_v49 = vld [vmem:[#allocation2 + $0x58] sm:$0xff] }
 0x4a8   :  { %2759 = vmatpush1.bf16.msra.mxu0 %v7330_v36 }
 0x4a9   :  { %v2155_v18 = vpop.permute.xlu1 %2154  ;;  %2760 = vmatprep.subr.bf16.mxu0 %v6038_v62 }
 0x4aa   :  { %v6295_v27 = vsel %vm490_vm2, %v2153_v50, %v2155_v18  ;;  %2174 = vst.msk [vmem:[#allocation2 + $0x1c0] sm:$0xff] %vm496_vm1, %v2155_v18 }
 0x4ab   :  { %2178 = vst.msk [vmem:[#allocation2 + $0x1c0] sm:$0xff] %vm1728_vm12, %v7273_v9 }
 0x4ac   :  { %2761 = vmatpush1.bf16.msra.mxu0 %v2590_v30  ;;  %v2621_v30 = vld [vmem:[#allocation2 + $0x188] sm:$0xff] }
 0x4b0   :  { %v6300_v15 = vpop.permute.xlu0 %1801 }
 0x4b5   :  { %v1800_v48 = vpop.permute.xlu1 %1799  ;;  %v2151_v61 = vpop.permute.xlu0 %2150 }
 0x4b6   :  { %v1808_v56 = vsel %vm1669_vm7, %v1800_v48, %v6300_v15  ;;  %1820 = vst.msk [vmem:[#allocation2 + $0xa8] sm:$0xff] %vm1816_vm14, %v1800_v48  ;;  %v6306_v62 = vsel %vm490_vm2, %v2151_v61, %v2153_v50  ;;  %v6360_v48 = vld [vmem:[#allocation6 + $0x24] ss:$16 sps:$4 sm:$0xff]  }
 0x4b7   :  { %1824 = vst.msk [vmem:[#allocation2 + $0xa8] sm:$0xff] %vm1669_vm7, %v7273_v9  ;;  %2762 = vmatprep.subr.bf16.mxu0 %v1808_v56  ;;  %v7331_v56 = vpack.c.bf16 %v6063_v41, %v6045_v23  ;;  %v6375_v23 = vld [vmem:[#allocation6 + $0x44] ss:$16 sps:$4 sm:$0xff]  }
 0x4b9   :  { %v1873_v7 = vpop.permute.xlu1 %1872  ;;  %v1875_v4 = vpop.permute.xlu0 %1874 }
 0x4ba   :  { %v1880_v31 = vsel %vm519_vm3, %v1873_v7, %v1875_v4  ;;  %1892 = vst.msk [vmem:[#allocation2 + $0xe8] sm:$0xff] %vm525_vm4, %v1875_v4 }
 0x4bb   :  { %1895 = vst.msk [vmem:[#allocation2 + $0xe8] sm:$0xff] %vm1893_vm13, %v7273_v9 }
 0x4bd   :  { %v1871_v12 = vpop.permute.xlu1 %1870  ;;  %v1944_v2 = vpop.permute.xlu0 %1943 }
 0x4be   :  { %v1879_v16 = vsel %vm519_vm3, %v1871_v12, %v1873_v7  ;;  %v2593_v19 = vld [vmem:[#allocation2 + $0xa8] sm:$0xff] }
 0x4bf   :  { %2763 = vmatpush1.bf16.msra.mxu0 %v2593_v19 }
 0x4c0   :  { %2764 = vmatprep.subr.bf16.mxu0 %v6055_v6 }
 0x4c1   :  { %v1946_v14 = vpop.permute.xlu1 %1945  ;;  %v1942_v13 = vpop.permute.xlu0 %1941 }
 0x4c2   :  { %v1951_v5 = vsel %vm7155_vm5, %v1944_v2, %v1946_v14  ;;  %1963 = vst.msk [vmem:[#allocation2 + $0x118] sm:$0xff] %vm566_vm6, %v1946_v14  ;;  %v1950_v0 = vsel %vm7155_vm5, %v1942_v13, %v1944_v2  ;;  %v2601_v20 = vld [vmem:[#allocation2 + $0xe8] sm:$0xff] }
 0x4c3   :  { %1966 = vst.msk [vmem:[#allocation2 + $0x118] sm:$0xff] %vm1964_vm15, %v7273_v9  ;;  %2765 = vmatpush1.bf16.msra.mxu0 %v6095_v37  ;;  %3767 = vmatprep.subr.bf16.mxu1 %v2601_v20 }
 0x4c4   :  { %2766 = vmatprep.subr.bf16.mxu0 %v1880_v31  ;;  %3768 = vmatpush3.bf16.msra.mxu1 %v2577_v33  ;;  %v2623_v31 = vld [vmem:[#allocation2 + $0x198] sm:$0xff] }
 0x4c5   :  { %3769 = vmatprep.subr.bf16.mxu1 %v2604_v11  ;;  %v2633_v11 = vld [vmem:[#allocation2 + $0x1e8] sm:$0xff] }
 0x4c6   :  { %v2000_v6 = vpop.permute.xlu0 %1999 }
 0x4c7   :  { %v2002_v34 = vpop.permute.xlu1 %2001  ;;  %2767 = vmatpush1.bf16.msra.mxu0 %v1879_v16  ;;  %v6373_v16 = vld [vmem:[#allocation6 + $0x20] ss:$16 sps:$4 sm:$0xff]  }
 0x4c8   :  { %2018 = vst.msk [vmem:[#allocation2 + $0x148] sm:$0xff] %vm525_vm4, %v2002_v34  ;;  %v2006_v25 = vsel %vm519_vm3, %v2000_v6, %v2002_v34  ;;  %2768 = vmatprep.subr.bf16.mxu0 %v6114_v55  ;;  %3770 = vmatpush3.bf16.msra.mxu1 %v2580_v60 }
 0x4c9   :  { %2020 = vst.msk [vmem:[#allocation2 + $0x148] sm:$0xff] %vm1893_vm13, %v7273_v9 }
 0x4ca   :  { %v1998_v37 = vpop.permute.xlu0 %1997  ;;  %v2607_v38 = vld [vmem:[#allocation2 + $0x118] sm:$0xff] }
 0x4cb   :  { %v2005_v42 = vsel %vm519_vm3, %v1998_v37, %v2000_v6  ;;  %v2217_v3 = vpop.permute.xlu1 %2216  ;;  %2769 = vmatpush1.bf16.msra.mxu0 %v6106_v17  ;;  %3771 = vmatprep.subr.bf16.mxu1 %v2607_v38  ;;  %v6395_v6 = vld [vmem:[#allocation6 + $0x64] ss:$16 sps:$4 sm:$0xff]   ;;  %v2636_v37 = vld [vmem:[#allocation2 + $0x200] sm:$0xff] }
 0x4cc   :  { %2238 = vst.msk [vmem:[#allocation2 + $0x210] sm:$0xff] %vm1816_vm14, %v2217_v3  ;;  %2770 = vmatprep.subr.bf16.mxu0 %v1951_v5  ;;  %3772 = vmatpush3.bf16.msra.mxu1 %v2583_v49  ;;  %v2564_v5 = vld [vmem:[#allocation6 + $0x40] sm:$0xff] }
 0x4cd   :  { %2244 = vst.msk [vmem:[#allocation2 + $0x210] sm:$0xff] %vm1669_vm7, %v7273_v9  ;;  %3773 = vmatprep.subr.bf16.mxu1 %v2610_v40  ;;  %v2568_v40 = vld [vmem:[#allocation6 + $0x60] sm:$0xff] }
 0x4ce   :  { %v1798_v55 = vpop.permute.xlu0 %1797 }
 0x4cf   :  { %v1807_v32 = vsel %vm1669_vm7, %v5862_v57, %v1798_v55  ;;  %v2090_v54 = vpop.permute.xlu1 %2089  ;;  %2771 = vmatpush1.bf16.msra.mxu0 %v1950_v0  ;;  %v2589_v57 = vld [vmem:[#allocation2 + $0x88] sm:$0xff]  ;;  %v2566_v0 = vld [vmem:[#allocation6 + $0x50] sm:$0xff] }
 0x4d0   :  { %1819 = vst.msk [vmem:[#allocation2 + $0xa0] sm:$0xff] %vm645_vm0, %v1807_v32  ;;  %2772 = vmatprep.subr.bf16.mxu0 %v6165_v59  ;;  %3774 = vmatpush3.bf16.msra.mxu1 %v2586_v35  ;;  %v2613_v17 = vld [vmem:[#allocation2 + $0x148] sm:$0xff]  ;;  %v2622_v32 = vld [vmem:[#allocation2 + $0x190] sm:$0xff] }
 0x4d1   :  { %3775 = vmatprep.subr.bf16.mxu1 %v2613_v17 }
 0x4d2   :  { %v2092_v45 = vpop.permute.xlu0 %2091 }
 0x4d3   :  { %v2097_v29 = vsel %vm2093_vm11, %v2090_v54, %v2092_v45  ;;  %2110 = vst.msk [vmem:[#allocation2 + $0x178] sm:$0xff] %vm2106_vm9, %v2092_v45  ;;  %v2301_v63 = vpop.permute.xlu1 %2300  ;;  %2773 = vmatpush1.bf16.msra.mxu0 %v6129_v52  ;;  %vm2319_vm9 = vcmask 1047648  }
 0x4d4   :  { %2113 = vst.msk [vmem:[#allocation2 + $0x178] sm:$0xff] %vm2111_vm10, %v7273_v9  ;;  %2774 = vmatprep.subr.bf16.mxu0 %v2006_v25  ;;  %3776 = vmatpush3.bf16.msra.mxu1 %v2589_v57  ;;  %vm7332_vm10 = vcmask 89088   ;;  %v7334_v25 = vpack.c.bf16 %v5905_v22, %v5898_v39 }
 0x4d5   :  { %3777 = vmatprep.subr.bf16.mxu1 %v2616_v26  ;;  %vm7333_vm5 = vmmov %vm7332_vm10 }
 0x4d6   :  { %v6341_v58 = vpop.permute.xlu0 %2218 }
 0x4d7   :  { %v6345_v59 = vsel %vm1669_vm7, %v2217_v3, %v6341_v58  ;;  %v2592_v28 = vld [vmem:[#allocation2 + $0xa0] sm:$0xff]  ;;  %v2088_v10 = vpop.permute.xlu1 %2087  ;;  %2775 = vmatpush1.bf16.msra.mxu0 %v2005_v42  ;;  %v2570_v3 = vld [vmem:[#allocation6 + $0x70] sm:$0xff] }
 0x4d8   :  { %v2096_v47 = vsel %vm2093_vm11, %v2088_v10, %v2090_v54  ;;  %2776 = vmatprep.subr.bf16.mxu0 %v6280_v46  ;;  %3778 = vmatpush3.bf16.msra.mxu1 %v2592_v28  ;;  %v6356_v46 = vld [vmem:[#allocation6] ss:$16 sps:$4 sm:$0xff]   ;;  %vm2411_vm11 = vcmask 1047640   ;;  %v2638_v54 = vld [vmem:[#allocation2 + $0x210] sm:$0xff]  ;;  %v6416_v35 = vcombine.low %v2568_v40, %v2570_v3 }
 0x4d9   :  { %v3929_v40 = vld [vmem:[#allocation6 + $0x28] ss:$16 sps:$4 sm:$0xff]   ;;  %v3930_v3 = vld [vmem:[#allocation6 + $0x4c] ss:$16 sps:$4 sm:$0xff]  }
 0x4da   :  { %v2299_v44 = vpop.permute.xlu0 %2298 }
 0x4db   :  { %v2310_v52 = vsel %vm1834_vm8, %v2299_v44, %v2301_v63  ;;  %v2619_v53 = vld [vmem:[#allocation2 + $0x178] sm:$0xff]  ;;  %v2159_v21 = vpop.permute.xlu1 %2158  ;;  %2777 = vmatpush1.bf16.msra.mxu0 %v6288_v1  ;;  %v2620_v1 = vld [vmem:[#allocation2 + $0x180] sm:$0xff] }
 0x4dc   :  { %2322 = vst.msk [vmem:[#allocation2 + $0x250] sm:$0xff] %vm645_vm0, %v2310_v52  ;;  %3779 = vmatprep.subr.bf16.mxu1 %v2619_v53  ;;  %2778 = vmatprep.subr.bf16.mxu0 %v2097_v29 }
 0x4de   :  { %v2297_v36 = vpop.permute.xlu0 %2296 }
 0x4df   :  { %v6353_v50 = vsel %vm1834_vm8, %v2297_v36, %v2299_v44  ;;  %2320 = vst.msk [vmem:[#allocation2 + $0x240] sm:$0xff] %vm2319_vm9, %v2297_v36  ;;  %v2393_v18 = vpop.permute.xlu1 %2392  ;;  %2779 = vmatpush1.bf16.msra.mxu0 %v2096_v47  ;;  %v2625_v44 = vld [vmem:[#allocation2 + $0x1a8] sm:$0xff] }
 0x4e0   :  { %2326 = vst.msk [vmem:[#allocation2 + $0x240] sm:$0xff] %vm1834_vm8, %v7273_v9  ;;  %2821 = vmatprep.subr.bf16.mxu0 %v2621_v30 }
 0x4e2   :  { %2781 = vmatmul.mubr.bf16.vlgmr.msra.gmra.mrb[32].mxu0 %v6356_v46 }
 0x4e3   :  { %v2449_v61 = vpop.permute.xlu1 %2448  ;;  %2822 = vmatpush1.bf16.msra.mxu0 %v2620_v1  ;;  %2790 = vmatprep.mubr.bf16.mxu0 %v6360_v48  ;;  %v2646_v38 = vld [vmem:[#allocation2 + $0x250] sm:$0xff] }
 0x4e4   :  { %2823 = vmatprep.subr.bf16.mxu0 %v7331_v56  ;;  %v2161_v7 = vpop.permute.xlu0 %2160 }
 0x4e5   :  { %v2165_v4 = vsel %vm490_vm2, %v2159_v21, %v2161_v7  ;;  %2177 = vst.msk [vmem:[#allocation2 + $0x1d8] sm:$0xff] %vm496_vm1, %v2161_v7 }
 0x4e6   :  { %2179 = vst.msk [vmem:[#allocation2 + $0x1d8] sm:$0xff] %vm1728_vm12, %v7273_v9 }
 0x4e7   :  { %v2157_v12 = vpop.permute.xlu1 %2156  ;;  %2824 = vmatpush1.bf16.msra.mxu0 %v2623_v31  ;;  %v2644_v57 = vld [vmem:[#allocation2 + $0x240] sm:$0xff] }
 0x4e8   :  { %v2164_v2 = vsel %vm490_vm2, %v2157_v12, %v2159_v21  ;;  %2825 = vmatprep.subr.bf16.mxu0 %v6295_v27  ;;  %v2391_v19 = vpop.permute.xlu0 %2390 }
 0x4e9   :  { %v2402_v41 = vsel %vm7332_vm10, %v2391_v19, %v2393_v18 }
 0x4ea   :  { %2791 = vmatmul.mubr.bf16.gmra.mrb[36].mxu0 %v6373_v16  ;;  %2414 = vst.msk [vmem:[#allocation2 + $0x280] sm:$0xff] %vm645_vm0, %v2402_v41 }
 0x4eb   :  { %v1804_v14 = vpop.permute.xlu1 %1803  ;;  %2826 = vmatpush1.bf16.msra.mxu0 %v6306_v62  ;;  %2800 = vmatprep.mubr.bf16.mxu0 %v6375_v23 }
 0x4ec   :  { %v1809_v27 = vsel %vm1669_vm7, %v6300_v15, %v1804_v14  ;;  %2827 = vmatprep.subr.bf16.mxu0 %v2165_v4  ;;  %v2389_v13 = vpop.permute.xlu0 %2388  ;;  %v6393_v15 = vcombine.low %v2564_v5, %v2566_v0 }
 0x4ed   :  { %1822 = vst.msk [vmem:[#allocation2 + $0xb8] sm:$0xff] %vm645_vm0, %v1809_v27  ;;  %v6386_v20 = vsel %vm7332_vm10, %v2389_v13, %v2391_v19  ;;  %vm7336_vm10 = vmmov %vm7333_vm5  ;;  %v2631_v1 = vld [vmem:[#allocation2 + $0x1d8] sm:$0xff]  ;;  %v2634_v19 = vld [vmem:[#allocation2 + $0x1f0] sm:$0xff] }
 0x4ee   :  { %2412 = vst.msk [vmem:[#allocation2 + $0x270] sm:$0xff] %vm2411_vm11, %v2389_v13 }
 0x4ef   :  { %2418 = vst.msk [vmem:[#allocation2 + $0x270] sm:$0xff] %vm7333_vm5, %v7273_v9  ;;  %v6391_v62 = vpop.permute.xlu1 %2224  ;;  %2828 = vmatpush1.bf16.msra.mxu0 %v2164_v2 }
 0x4f0   :  { %2829 = vmatprep.subr.bf16.mxu0 %v2633_v11  ;;  %v2447_v33 = vpop.permute.xlu0 %2446 }
 0x4f1   :  { %v2457_v60 = vsel %vm1834_vm8, %v2447_v33, %v2449_v61  ;;  %v2652_v53 = vld [vmem:[#allocation2 + $0x280] sm:$0xff] }
 0x4f2   :  { %2801 = vmatmul.mubr.bf16.gmra.mrb[40].mxu0 %v6393_v15  ;;  %2468 = vst.msk [vmem:[#allocation2 + $0x2b0] sm:$0xff] %vm645_vm0, %v2457_v60 }
 0x4f3   :  { %v2305_v34 = vpop.permute.xlu1 %2304  ;;  %2830 = vmatpush1.bf16.msra.mxu0 %v7334_v25  ;;  %2810 = vmatprep.mubr.bf16.mxu0 %v6395_v6 }
 0x4f4   :  { %v2595_v49 = vld [vmem:[#allocation2 + $0xb8] sm:$0xff]  ;;  %2831 = vmatprep.subr.bf16.mxu0 %v2636_v37  ;;  %v2223_v42 = vpop.permute.xlu0 %2222 }
 0x4f5   :  { %3780 = vmatpush3.bf16.msra.mxu1 %v2595_v49  ;;  %v2230_v55 = vsel %vm1669_vm7, %v2223_v42, %v6391_v62  ;;  %2241 = vst.msk [vmem:[#allocation2 + $0x228] sm:$0xff] %vm1816_vm14, %v2223_v42  ;;  %vm7335_vm14 = vmmov %vm7333_vm5  ;;  %v3924_v49 = vld [vmem:[#allocation6 + $0x8] ss:$16 sps:$4 sm:$0xff]   ;;  %v3927_v42 = vld [vmem:[#allocation6 + $0x2c] ss:$16 sps:$4 sm:$0xff]  }
 0x4f6   :  { %3805 = vmatprep.subr.bf16.mxu1 %v2646_v38  ;;  %2245 = vst.msk [vmem:[#allocation2 + $0x228] sm:$0xff] %vm1669_vm7, %v7273_v9  ;;  %v2650_v30 = vld [vmem:[#allocation2 + $0x270] sm:$0xff] }
 0x4f7   :  { %v2303_v39 = vpop.permute.xlu1 %2302  ;;  %2832 = vmatpush1.bf16.msra.mxu0 %v2183_v51 }
 0x4f8   :  { %v2311_v22 = vsel %vm1834_vm8, %v2303_v39, %v2305_v34  ;;  %2323 = vst.msk [vmem:[#allocation2 + $0x258] sm:$0xff] %vm2319_vm9, %v2303_v39  ;;  %2927 = vmatmul.mubr.bf16.vlgmr.msra.gmra.mrb[16].mxu1 %v6356_v46  ;;  %2833 = vmatprep.subr.bf16.mxu0 %v6345_v59  ;;  %v2307_v17 = vpop.permute.xlu0 %2306  ;;  %v3933_v39 = vld [vmem:[#allocation6 + $0x6c] ss:$16 sps:$4 sm:$0xff]  }
 0x4f9   :  { %2327 = vst.msk [vmem:[#allocation2 + $0x258] sm:$0xff] %vm1834_vm8, %v7273_v9  ;;  %3806 = vmatpush3.bf16.msra.mxu1 %v2622_v32  ;;  %2934 = vmatprep.mubr.bf16.mxu1 %v6360_v48  ;;  %v2312_v24 = vsel %vm1834_vm8, %v2305_v34, %v2307_v17  ;;  %v2658_v4 = vld [vmem:[#allocation2 + $0x2b0] sm:$0xff] }
 0x4fa   :  { %2811 = vmatmul.mubr.bf16.gmra.mrb[44].mxu0 %v6416_v35  ;;  %2325 = vst.msk [vmem:[#allocation2 + $0x268] sm:$0xff] %vm645_vm0, %v2312_v24 }
 0x4fb   :  { %v2397_v51 = vpop.permute.xlu1 %2396  ;;  %2834 = vmatpush1.bf16.msra.mxu0 %v2638_v54  ;;  %2853 = vmatprep.mubr.bf16.mxu0 %v6421_v8 }
 0x4fc   :  { %2835 = vmatprep.subr.bf16.mxu0 %v2230_v55  ;;  %v2445_v45 = vpop.permute.xlu0 %2444  ;;  %v3932_v55 = vld [vmem:[#allocation6 + $0x48] ss:$16 sps:$4 sm:$0xff]  }
 0x4fd   :  { %v2456_v29 = vsel %vm1834_vm8, %v2445_v45, %v2447_v33  ;;  %2466 = vst.msk [vmem:[#allocation2 + $0x2a0] sm:$0xff] %vm2319_vm9, %v2445_v45  ;;  %v2641_v26 = vld [vmem:[#allocation2 + $0x228] sm:$0xff] }
 0x4fe   :  { %2472 = vst.msk [vmem:[#allocation2 + $0x2a0] sm:$0xff] %vm1834_vm8, %v7273_v9 }
 0x4ff   :  { %v2529_v63 = vpop.permute.xlu1 %2528  ;;  %2836 = vmatpush1.bf16.msra.mxu0 %v2641_v26 }
 0x500   :  { %2837 = vmatprep.subr.bf16.mxu0 %v6353_v50  ;;  %2935 = vmatmul.mubr.bf16.gmra.mrb[20].mxu1 %v6373_v16  ;;  %v2399_v59 = vpop.permute.xlu0 %2398  ;;  %v2647_v21 = vld [vmem:[#allocation2 + $0x258] sm:$0xff]  ;;  %v2628_v50 = vld [vmem:[#allocation2 + $0x1c0] sm:$0xff] }
 0x501   :  { %2942 = vmatprep.mubr.bf16.mxu1 %v6375_v23  ;;  %v2404_v28 = vsel %vm7333_vm5, %v2397_v51, %v2399_v59  ;;  %v2649_v10 = vld [vmem:[#allocation2 + $0x268] sm:$0xff]  ;;  %vm7337_vm5 = vcmask 105472  }
 0x502   :  { %2417 = vst.msk [vmem:[#allocation2 + $0x298] sm:$0xff] %vm645_vm0, %v2404_v28  ;;  %3807 = vmatprep.subr.bf16.mxu1 %v2649_v10 }
 0x503   :  { %v2395_v47 = vpop.permute.xlu1 %2394  ;;  %2838 = vmatpush1.bf16.msra.mxu0 %v2644_v57  ;;  %3808 = vmatpush3.bf16.msra.mxu1 %v2625_v44 }
 0x504   :  { %v2403_v52 = vsel %vm7335_vm14, %v2395_v47, %v2397_v51  ;;  %2415 = vst.msk [vmem:[#allocation2 + $0x288] sm:$0xff] %vm2411_vm11, %v2395_v47  ;;  %2839 = vmatprep.subr.bf16.mxu0 %v2311_v22  ;;  %3809 = vmatprep.subr.bf16.mxu1 %v2652_v53  ;;  %v2527_v36 = vpop.permute.xlu0 %2526  ;;  %vm2547_vm11 = vcmask 1047656   ;;  %vm7338_vm14 = vmmov %vm7337_vm5  ;;  %v3935_v22 = vld [vmem:[#allocation6 + $0x68] ss:$16 sps:$4 sm:$0xff]  }
 0x505   :  { %2419 = vst.msk [vmem:[#allocation2 + $0x288] sm:$0xff] %vm7336_vm10, %v7273_v9  ;;  %v2538_v46 = vsel %vm7337_vm5, %v2527_v36, %v2529_v63  ;;  %vm7339_vm10 = vmmov %vm7337_vm5  ;;  %v2656_v14 = vld [vmem:[#allocation2 + $0x2a0] sm:$0xff] }
 0x506   :  { %2550 = vst.msk [vmem:[#allocation2 + $0x2e0] sm:$0xff] %vm645_vm0, %v2538_v46 }
 0x507   :  { %v2453_v18 = vpop.permute.xlu1 %2452  ;;  %2840 = vmatpush1.bf16.msra.mxu0 %v2647_v21  ;;  %3810 = vmatpush3.bf16.msra.mxu1 %v2628_v50 }
 0x508   :  { %2841 = vmatprep.subr.bf16.mxu0 %v6386_v20  ;;  %v2455_v48 = vpop.permute.xlu0 %2454  ;;  %2943 = vmatmul.mubr.bf16.gmra.mrb[24].mxu1 %v6393_v15 }
 0x509   :  { %v2459_v61 = vsel %vm1834_vm8, %v2453_v18, %v2455_v48  ;;  %v2655_v56 = vld [vmem:[#allocation2 + $0x298] sm:$0xff]  ;;  %2950 = vmatprep.mubr.bf16.mxu1 %v6395_v6 }
 0x50a   :  { %2471 = vst.msk [vmem:[#allocation2 + $0x2c8] sm:$0xff] %vm645_vm0, %v2459_v61  ;;  %3811 = vmatprep.subr.bf16.mxu1 %v2655_v56 }
 0x50b   :  { %2842 = vmatpush1.bf16.msra.mxu0 %v2650_v30  ;;  %v2525_v7 = vpop.permute.xlu1 %2524  ;;  %3812 = vmatpush3.bf16.msra.mxu1 %v2631_v1 }
 0x50c   :  { %2843 = vmatprep.subr.bf16.mxu0 %v2403_v52  ;;  %v2653_v31 = vld [vmem:[#allocation2 + $0x288] sm:$0xff]  ;;  %v2537_v12 = vsel %vm7338_vm14, %v2525_v7, %v2527_v36  ;;  %2548 = vst.msk [vmem:[#allocation2 + $0x2d0] sm:$0xff] %vm2547_vm11, %v2525_v7  ;;  %3813 = vmatprep.subr.bf16.mxu1 %v2658_v4  ;;  %v2221_v2 = vpop.permute.xlu0 %2220 }
 0x50d   :  { %2554 = vst.msk [vmem:[#allocation2 + $0x2d0] sm:$0xff] %vm7339_vm10, %v7273_v9  ;;  %v2229_v16 = vsel %vm1669_vm7, %v6341_v58, %v2221_v2  ;;  %v2637_v58 = vld [vmem:[#allocation2 + $0x208] sm:$0xff]  ;;  %v2664_v0 = vld [vmem:[#allocation2 + $0x2e0] sm:$0xff] }
 0x50e   :  { %2240 = vst.msk [vmem:[#allocation2 + $0x220] sm:$0xff] %vm645_vm0, %v2229_v16 }
 0x50f   :  { %2844 = vmatpush1.bf16.msra.mxu0 %v2653_v31  ;;  %v2451_v23 = vpop.permute.xlu1 %2450  ;;  %3814 = vmatpush3.bf16.msra.mxu1 %v2634_v19 }
 0x510   :  { %2845 = vmatprep.subr.bf16.mxu0 %v2456_v29  ;;  %v2458_v41 = vsel %vm1834_vm8, %v2451_v23, %v2453_v18  ;;  %2469 = vst.msk [vmem:[#allocation2 + $0x2b8] sm:$0xff] %vm2319_vm9, %v2451_v23  ;;  %v2533_v27 = vpop.permute.xlu0 %2532  ;;  %2951 = vmatmul.mubr.bf16.gmra.mrb[28].mxu1 %v6416_v35  ;;  %vm7341_vm9 = vmmov %vm7337_vm5 }
 0x511   :  { %2473 = vst.msk [vmem:[#allocation2 + $0x2b8] sm:$0xff] %vm1834_vm8, %v7273_v9  ;;  %v2661_v13 = vld [vmem:[#allocation2 + $0x2c8] sm:$0xff]  ;;  %2991 = vmatprep.mubr.bf16.mxu1 %v6421_v8  ;;  %vm7340_vm8 = vmmov %vm7337_vm5 }
 0x512   :  { %3815 = vmatprep.subr.bf16.mxu1 %v2661_v13 }
 0x513   :  { %v2535_v5 = vpop.permute.xlu1 %2534  ;;  %2846 = vmatpush1.bf16.msra.mxu0 %v2656_v14  ;;  %3816 = vmatpush3.bf16.msra.mxu1 %v2637_v58 }
 0x514   :  { %v2540_v20 = vsel %vm7337_vm5, %v2533_v27, %v2535_v5  ;;  %2847 = vmatprep.subr.bf16.mxu0 %v2458_v41  ;;  %3817 = vmatprep.subr.bf16.mxu1 %v2664_v0  ;;  %v2227_v11 = vpop.permute.xlu0 %2226  ;;  %v2662_v25 = vld [vmem:[#allocation2 + $0x2d0] sm:$0xff] }
 0x515   :  { %2553 = vst.msk [vmem:[#allocation2 + $0x2f8] sm:$0xff] %vm645_vm0, %v2540_v20  ;;  %v2231_v15 = vsel %vm1669_vm7, %v6391_v62, %v2227_v11  ;;  %v2640_v33 = vld [vmem:[#allocation2 + $0x220] sm:$0xff]  ;;  %vm3605_vm7 = vcmask 130048  }
 0x516   :  { %2243 = vst.msk [vmem:[#allocation2 + $0x238] sm:$0xff] %vm645_vm0, %v2231_v15 }
 0x517   :  { %v2531_v6 = vpop.permute.xlu1 %2530  ;;  %3818 = vmatpush3.bf16.msra.mxu1 %v2640_v33 }
 0x518   :  { %v2539_v60 = vsel %vm7340_vm8, %v2531_v6, %v2533_v27  ;;  %2551 = vst.msk [vmem:[#allocation2 + $0x2e8] sm:$0xff] %vm2547_vm11, %v2531_v6  ;;  %v2659_v34 = vld [vmem:[#allocation2 + $0x2b8] sm:$0xff] }
 0x519   :  { %2555 = vst.msk [vmem:[#allocation2 + $0x2e8] sm:$0xff] %vm7341_vm9, %v7273_v9  ;;  %2848 = vmatpush1.bf16.msra.mxu0 %v2659_v34 }
 0x51a   :  { %2849 = vmatprep.subr.bf16.mxu0 %v2537_v12 }
 0x51c   :  { %v2667_v37 = vld [vmem:[#allocation2 + $0x2f8] sm:$0xff] }
 0x51d   :  { %3819 = vmatprep.subr.bf16.mxu1 %v2667_v37  ;;  %2850 = vmatpush1.bf16.msra.mxu0 %v2662_v25  ;;  %v2643_v62 = vld [vmem:[#allocation2 + $0x238] sm:$0xff] }
 0x51e   :  { %2851 = vmatprep.subr.bf16.mxu0 %v2539_v60  ;;  %3820 = vmatpush3.bf16.msra.mxu1 %v2643_v62 }
 0x520   :  { %v2665_v38 = vld [vmem:[#allocation2 + $0x2e8] sm:$0xff] }
 0x521   :  { %2852 = vmatpush1.bf16.msra.mxu0 %v2665_v38  ;;  %2992 = vmatmul.mubr.bf16.vlgmr.msra.gmra.mrb[32].mxu1 %v3924_v49 }
 0x522   :  { %2999 = vmatprep.mubr.bf16.mxu1 %v3927_v42 }
 0x524   :  { %2854 = vmatmul.mubr.bf16.vlgmr.msra.gmra.mrb[32].mxu0 %v3924_v49 }
 0x525   :  { %2863 = vmatprep.mubr.bf16.mxu0 %v3927_v42 }
 0x529   :  { %3000 = vmatmul.mubr.bf16.gmra.mrb[36].mxu1 %v3929_v40 }
 0x52a   :  { %3007 = vmatprep.mubr.bf16.mxu1 %v3930_v3 }
 0x52c   :  { %2864 = vmatmul.mubr.bf16.gmra.mrb[36].mxu0 %v3929_v40 }
 0x52d   :  { %2873 = vmatprep.mubr.bf16.mxu0 %v3930_v3 }
 0x531   :  { %3008 = vmatmul.mubr.bf16.gmra.mrb[40].mxu1 %v3932_v55 }
 0x532   :  { %3015 = vmatprep.mubr.bf16.mxu1 %v3933_v39 }
 0x534   :  { %2874 = vmatmul.mubr.bf16.gmra.mrb[40].mxu0 %v3932_v55 }
 0x535   :  { %2883 = vmatprep.mubr.bf16.mxu0 %v3933_v39 }
 0x539   :  { %3016 = vmatmul.mubr.bf16.gmra.mrb[44].mxu1 %v3935_v22 }
 0x53c   :  { %2884 = vmatmul.mubr.bf16.gmra.mrb[44].mxu0 %v3935_v22 }
 0x5cb   :  { %v3781_v32 = vpop.f32.mrb[16].mxu1 }
 0x5cc   :  { %v3782_v54 = vpop.f32.mrb[17].mxu1 }
 0x5cd   :  { %v3783_v35 = vadd.f32 %v3782_v54, %v3781_v32  ;;  %v3784_v17 = vpop.f32.mrb[18].mxu1 }
 0x5ce   :  { %v3785_v8 = vpop.f32.mrb[19].mxu1 }
 0x5cf   :  { %v3786_v24 = vadd.f32 %v3785_v8, %v3784_v17 }
 0x5d3   :  { %v3787_v51 = vpop.f32.mrb[20].mxu1 }
 0x5d4   :  { %v3788_v45 = vpop.f32.mrb[21].mxu1 }
 0x5d5   :  { %v3789_v29 = vadd.f32 %v3788_v45, %v3787_v51  ;;  %v3790_v26 = vpop.f32.mrb[22].mxu1 }
 0x5d6   :  { %v3791_v63 = vpop.f32.mrb[23].mxu1 }
 0x5d7   :  { %v3792_v57 = vadd.f32 %v3791_v63, %v3790_v26 }
 0x5db   :  { %v3793_v59 = vpop.f32.mrb[24].mxu1 }
 0x5dc   :  { %v3794_v28 = vpop.f32.mrb[25].mxu1 }
 0x5dd   :  { %v3795_v10 = vadd.f32 %v3794_v28, %v3793_v59  ;;  %v3796_v47 = vpop.f32.mrb[26].mxu1 }
 0x5de   :  { %v3797_v44 = vpop.f32.mrb[27].mxu1 }
 0x5df   :  { %v6469_v52 = vadd.f32 %v3797_v44, %v3796_v47 }
 0x5e3   :  { %v3799_v53 = vpop.f32.mrb[28].mxu1 }
 0x5e4   :  { %v3800_v21 = vpop.f32.mrb[29].mxu1 }
 0x5e5   :  { %v6471_v36 = vadd.f32 %v3800_v21, %v3799_v53  ;;  %v3802_v50 = vpop.f32.mrb[30].mxu1 }
 0x5e6   :  { %v3803_v46 = vpop.f32.mrb[31].mxu1 }
 0x5e7   :  { %v6473_v18 = vadd.f32 %v3803_v46, %v3802_v50 }
 0x5f4   :  { %v3821_v30 = vpop.f32.mrb[32].mxu1 }
 0x5f5   :  { %v3822_v48 = vpop.f32.mrb[33].mxu1 }
 0x5f6   :  { %v3823_v1 = vadd.f32 %v3822_v48, %v3821_v30  ;;  %v3824_v61 = vpop.f32.mrb[34].mxu1 }
 0x5f7   :  { %v6475_v56 = vpop.f32.mrb[32].mxu0  ;;  %v3825_v7 = vpop.f32.mrb[35].mxu1 }
 0x5f8   :  { %v6477_v4 = vpop.f32.mrb[33].mxu0  ;;  %v6479_v31 = vadd.f32 %v3823_v1, %v3783_v35  ;;  %v3826_v12 = vadd.f32 %v3825_v7, %v3824_v61  ;;  %v3024_v58 = vmul.f32 %v6475_v56, %v6475_v56 }
 0x5f9   :  { %v6481_v2 = vpop.f32.mrb[34].mxu0  ;;  %v3025_v5 = vmul.f32 %v6477_v4, %v6477_v4 }
 0x5fa   :  { %v6483_v16 = vpop.f32.mrb[35].mxu0  ;;  %v6485_v19 = vadd.f32 %v3826_v12, %v3786_v24  ;;  %v3027_v37 = vmul.f32 %v6481_v2, %v6481_v2 }
 0x5fb   :  { %v3028_v55 = vmul.f32 %v6483_v16, %v6483_v16 }
 0x5fc   :  { %v3827_v23 = vpop.f32.mrb[36].mxu1 }
 0x5fd   :  { %v3828_v41 = vpop.f32.mrb[37].mxu1 }
 0x5fe   :  { %v3829_v14 = vadd.f32 %v3828_v41, %v3827_v23  ;;  %v3830_v27 = vpop.f32.mrb[38].mxu1  ;;  %v3026_v23 = vmul.f32 %v6479_v31, %v6479_v31  ;;  %v3029_v41 = vmul.f32 %v6485_v19, %v6485_v19 }
 0x5ff   :  { %v6487_v13 = vpop.f32.mrb[36].mxu0  ;;  %v3831_v0 = vpop.f32.mrb[39].mxu1 }
 0x600   :  { %v3030_v20 = vadd.f32 %v6487_v13, %v6475_v56  ;;  %v3036_v11 = vmul.f32 %v6487_v13, %v6487_v13  ;;  %v6497_v15 = vpop.f32.mrb[37].mxu0  ;;  %v6499_v33 = vadd.f32 %v3829_v14, %v3789_v29  ;;  %v3832_v6 = vadd.f32 %v3831_v0, %v3830_v27 }
 0x601   :  { %v3031_v60 = vadd.f32 %v6497_v15, %v6477_v4  ;;  %v3037_v34 = vmul.f32 %v6497_v15, %v6497_v15  ;;  %v6505_v25 = vpop.f32.mrb[38].mxu0 }
 0x602   :  { %v3042_v62 = vadd.f32 %v3036_v11, %v3024_v58  ;;  %v3033_v49 = vadd.f32 %v6505_v25, %v6481_v2  ;;  %v3039_v42 = vmul.f32 %v6505_v25, %v6505_v25  ;;  %v6513_v38 = vpop.f32.mrb[39].mxu0  ;;  %v6515_v40 = vadd.f32 %v3832_v6, %v3792_v57 }
 0x603   :  { %v3043_v3 = vadd.f32 %v3037_v34, %v3025_v5  ;;  %v3034_v22 = vadd.f32 %v6513_v38, %v6483_v16  ;;  %v3040_v32 = vmul.f32 %v6513_v38, %v6513_v38  ;;  %v3032_v14 = vadd.f32 %v6499_v33, %v6479_v31 }
 0x604   :  { %v3045_v39 = vadd.f32 %v3039_v42, %v3027_v37  ;;  %v3833_v54 = vpop.f32.mrb[40].mxu1  ;;  %v3041_v30 = vmul.f32 %v6515_v40, %v6515_v40 }
 0x605   :  { %v3046_v35 = vadd.f32 %v3040_v32, %v3028_v55  ;;  %v3834_v17 = vpop.f32.mrb[41].mxu1 }
 0x606   :  { %v3835_v8 = vadd.f32 %v3834_v17, %v3833_v54  ;;  %v3836_v24 = vpop.f32.mrb[42].mxu1  ;;  %v3047_v11 = vadd.f32 %v3041_v30, %v3029_v41 }
 0x607   :  { %v6523_v51 = vpop.f32.mrb[40].mxu0  ;;  %v3837_v45 = vpop.f32.mrb[43].mxu1 }
 0x608   :  { %v3048_v29 = vadd.f32 %v3030_v20, %v6523_v51  ;;  %v3054_v26 = vmul.f32 %v6523_v51, %v6523_v51  ;;  %v6528_v63 = vpop.f32.mrb[41].mxu0  ;;  %v6530_v57 = vadd.f32 %v3835_v8, %v3795_v10  ;;  %v3838_v59 = vadd.f32 %v3837_v45, %v3836_v24 }
 0x609   :  { %v3049_v28 = vadd.f32 %v3031_v60, %v6528_v63  ;;  %v3055_v47 = vmul.f32 %v6528_v63, %v6528_v63  ;;  %v6535_v44 = vpop.f32.mrb[42].mxu0  ;;  %v3038_v10 = vmul.f32 %v6499_v33, %v6499_v33 }
 0x60a   :  { %v3060_v53 = vadd.f32 %v3054_v26, %v3042_v62  ;;  %v3051_v21 = vadd.f32 %v3033_v49, %v6535_v44  ;;  %v3057_v50 = vmul.f32 %v6535_v44, %v6535_v44  ;;  %v6540_v46 = vpop.f32.mrb[43].mxu0  ;;  %v6547_v48 = vadd.f32 %v3838_v59, %v6469_v52 }
 0x60b   :  { %v3061_v1 = vadd.f32 %v3055_v47, %v3043_v3  ;;  %v3052_v7 = vadd.f32 %v3034_v22, %v6540_v46  ;;  %v3058_v12 = vmul.f32 %v6540_v46, %v6540_v46  ;;  %v3035_v52 = vadd.f32 %v6515_v40, %v6485_v19 }
 0x60c   :  { %v3063_v61 = vadd.f32 %v3057_v50, %v3045_v39  ;;  %v3839_v27 = vpop.f32.mrb[44].mxu1  ;;  %v3056_v58 = vmul.f32 %v6530_v57, %v6530_v57  ;;  %v3044_v20 = vadd.f32 %v3038_v10, %v3026_v23  ;;  %v3050_v6 = vadd.f32 %v3032_v14, %v6530_v57 }
 0x60d   :  { %v3064_v5 = vadd.f32 %v3058_v12, %v3046_v35  ;;  %v3840_v0 = vpop.f32.mrb[45].mxu1  ;;  %v3053_v62 = vadd.f32 %v3035_v52, %v6547_v48  ;;  %v3059_v49 = vmul.f32 %v6547_v48, %v6547_v48 }
 0x60e   :  { %v3841_v60 = vadd.f32 %v3840_v0, %v3839_v27  ;;  %v3842_v34 = vpop.f32.mrb[46].mxu1  ;;  %v3062_v26 = vadd.f32 %v3056_v58, %v3044_v20 }
 0x60f   :  { %v6563_v37 = vpop.f32.mrb[44].mxu0  ;;  %v3843_v42 = vpop.f32.mrb[47].mxu1  ;;  %v3065_v27 = vadd.f32 %v3059_v49, %v3047_v11 }
 0x610   :  { %v3066_v3 = vadd.f32 %v3048_v29, %v6563_v37  ;;  %v3072_v55 = vmul.f32 %v6563_v37, %v6563_v37  ;;  %v6571_v39 = vpop.f32.mrb[45].mxu0  ;;  %v6574_v22 = vadd.f32 %v3841_v60, %v6471_v36  ;;  %v3844_v32 = vadd.f32 %v3843_v42, %v3842_v34 }
 0x611   :  { %v3067_v54 = vadd.f32 %v3049_v28, %v6571_v39  ;;  %v3073_v35 = vmul.f32 %v6571_v39, %v6571_v39  ;;  %v6579_v17 = vpop.f32.mrb[46].mxu0 }
 0x612   :  { %v3078_v8 = vadd.f32 %v3072_v55, %v3060_v53  ;;  %v3069_v24 = vadd.f32 %v3051_v21, %v6579_v17  ;;  %v3075_v45 = vmul.f32 %v6579_v17, %v6579_v17  ;;  %v6584_v29 = vpop.f32.mrb[47].mxu0  ;;  %v3074_v36 = vmul.f32 %v6574_v22, %v6574_v22 }
 0x613   :  { %v6589_v59 = vadd.f32 %v3844_v32, %v6473_v18  ;;  %v3079_v28 = vadd.f32 %v3073_v35, %v3061_v1  ;;  %v3084_v47 = vadd.f32 %v3067_v54, %v3066_v3  ;;  %v3070_v10 = vadd.f32 %v3052_v7, %v6584_v29 }
 0x614   :  { %v3081_v50 = vadd.f32 %v3075_v45, %v3063_v61  ;;  %v3076_v53 = vmul.f32 %v6584_v29, %v6584_v29  ;;  %v3068_v21 = vadd.f32 %v3050_v6, %v6574_v22  ;;  %v3080_v23 = vadd.f32 %v3074_v36, %v3062_v26 }
 0x615   :  { %v3077_v30 = vmul.f32 %v6589_v59, %v6589_v59  ;;  %v3071_v12 = vadd.f32 %v3053_v62, %v6589_v59  ;;  %v3096_v41 = vadd.f32 %v3079_v28, %v3078_v8  ;;  %v3089_v18 = vadd.f32 %v3070_v10, %v3069_v24 }
 0x616   :  { %v3082_v14 = vadd.f32 %v3076_v53, %v3064_v5  ;;  %v3085_v1 = vsel %vm645_vm0, %v3068_v21, 0.0  ;;  %v3097_v0 = vsel %vm645_vm0, %v3080_v23, 0.0  ;;  %v83_v53 = vld [vmem:[%s7045_s2 + $0x50] sm:$0xff]  ;;  %v82_v21 = vld [vmem:[%s7045_s2 + $0x48] sm:$0xff] }
 0x617   :  { %v3086_v61 = vadd.f32 %v3085_v1, %v3084_v47  ;;  %v3090_v7 = vsel %vm645_vm0, %v3071_v12, 0.0  ;;  %v3083_v20 = vadd.f32 %v3077_v30, %v3065_v27  ;;  %v3098_v6 = vadd.f32 %v3097_v0, %v3096_v41  ;;  %v81_v47 = vld [vmem:[%s7045_s2 + $0x40] sm:$0xff] }
 0x618   :  { %v3101_v52 = vadd.f32 %v3082_v14, %v3081_v50  ;;  %v3091_v58 = vadd.f32 %v3090_v7, %v3089_v18  ;;  %v84_v14 = vld [vmem:[%s7045_s2 + $0x58] sm:$0xff] }
 0x619   :  { %3087 = vadd.xlane.f32.xlu0 %v3086_v61  ;;  %v3102_v60 = vsel %vm645_vm0, %v3083_v20, 0.0 }
 0x61a   :  { %3092 = vadd.xlane.f32.xlu1 %v3091_v58  ;;  %v3103_v34 = vadd.f32 %v3102_v60, %v3101_v52 }
 0x61d   :  { %3099 = vadd.xlane.f32.xlu0 %v3098_v6 }
 0x621   :  { %3104 = vadd.xlane.f32.xlu0 %v3103_v34 }
 0x6a6   :  { %v3088_v5 = vpop.xlane.xlu0 %3087 }
 0x6a7   :  { %v3094_v62 = vmul.f32 0.00086805556, %v3088_v5  ;;  %v3093_v42 = vpop.xlane.xlu1 %3092 }
 0x6a8   :  { %v3095_v3 = vmul.f32 0.00086805556, %v3093_v42 }
 0x6a9   :  { %v3108_v49 = vmul.f32 %v3094_v62, %v3094_v62 }
 0x6aa   :  { %v3100_v11 = vpop.xlane.xlu0 %3099  ;;  %v3109_v35 = vmul.f32 %v3095_v3, %v3095_v3 }
 0x6ab   :  { %v3106_v55 = vmul.f32 0.00086805556, %v3100_v11 }
 0x6ad   :  { %v3110_v32 = vsub.f32 %v3106_v55, %v3108_v49 }
 0x6ae   :  { %v3105_v54 = vpop.xlane.xlu0 %3104 }
 0x6af   :  { %v3112_v8 = vmax.f32 %v3110_v32, 0.0  ;;  %v3107_v24 = vmul.f32 0.00086805556, %v3105_v54 }
 0x6b1   :  { %v3114_v45 = vadd.f32 1e-05, %v3112_v8  ;;  %v3111_v26 = vsub.f32 %v3107_v24, %v3109_v35 }
 0x6b3   :  { %4043 = vrsqrt.f32 %v3114_v45  ;;  %v3113_v36 = vmax.f32 %v3111_v26, 0.0 }
 0x6b5   :  { %v3115_v28 = vadd.f32 1e-05, %v3113_v36 }
 0x6b7   :  { %4045 = vrsqrt.f32 %v3115_v28 }
 0x6bd   :  { %v4044_v50 = vpop.eup %4043 }
 0x6be   :  { %v3118_v10 = vmul.f32 %v4044_v50, %v81_v47 }
 0x6c0   :  { %3126 = vperm.xlu1 %3904, %v3118_v10   ;;  %v3120_v30 = vmul.f32 %v3118_v10, %v3094_v62 }
 0x6c1   :  { %v4046_v12 = vpop.eup %4045 }
 0x6c2   :  { %v3122_v23 = vsub.f32 %v83_v53, %v3120_v30  ;;  %v3119_v41 = vmul.f32 %v4046_v12, %v82_v21 }
 0x6c4   :  { %3142 = vperm.xlu1 %3904, %v3122_v23   ;;  %3131 = vperm.xlu0 %3905, %v3119_v41   ;;  %v3121_v18 = vmul.f32 %v3119_v41, %v3095_v3 }
 0x6c6   :  { %v3123_v1 = vsub.f32 %v84_v14, %v3121_v18 }
 0x6c8   :  { %3147 = vperm.xlu1 %3904, %v3123_v1  }
 0x73f   :  { %v3127_v27 = vpop.permute.xlu1 %3126 }
 0x740   :  { %v3210_v61 = vmul.f32 %v3127_v27, %v6487_v13  ;;  %v3211_v7 = vmul.f32 %v3127_v27, %v6497_v15  ;;  %v3342_v52 = vmul.f32 %v3127_v27, %v6563_v37  ;;  %v3343_v0 = vmul.f32 %v3127_v27, %v6571_v39 }
 0x741   :  { %v3344_v20 = vmul.f32 %v3127_v27, %v6574_v22  ;;  %v3136_v60 = vmul.f32 %v3127_v27, %v6479_v31  ;;  %v3135_v34 = vmul.f32 %v3127_v27, %v6477_v4  ;;  %v3134_v5 = vmul.f32 %v3127_v27, %v6475_v56 }
 0x742   :  { %v3277_v13 = vmul.f32 %v3127_v27, %v6528_v63  ;;  %v6628_v15 = vmul.f32 %v3127_v27, %v6530_v57  ;;  %v6631_v37 = vmul.f32 %v3127_v27, %v6523_v51  ;;  %v6641_v4 = vmul.f32 %v3127_v27, %v6499_v33 }
 0x743   :  { %v6617_v58 = vpop.permute.xlu1 %3142  ;;  %v6621_v6 = vpop.permute.xlu0 %3131 }
 0x744   :  { %v6634_v39 = vadd.f32 %v3210_v61, %v6617_v58  ;;  %v6637_v22 = vadd.f32 %v3211_v7, %v6617_v58  ;;  %v3152_v31 = vadd.f32 %v6617_v58, %v3136_v60  ;;  %v6644_v56 = vadd.f32 %v3342_v52, %v6617_v58 }
 0x745   :  { %v6647_v63 = vadd.f32 %v3343_v0, %v6617_v58  ;;  %v3139_v51 = vmul.f32 %v6621_v6, %v6485_v19  ;;  %v6654_v62 = vadd.f32 %v6617_v58, %v3135_v34  ;;  %v6657_v42 = vadd.f32 %v3344_v20, %v6617_v58 }
 0x746   :  { %v3213_v33 = vmul.f32 %v6621_v6, %v6505_v25  ;;  %v3138_v11 = vmul.f32 %v6621_v6, %v6483_v16  ;;  %v3137_v49 = vmul.f32 %v6621_v6, %v6481_v2  ;;  %v3214_v3 = vmul.f32 %v6621_v6, %v6513_v38 }
 0x747   :  { %v6649_v57 = vpop.permute.xlu1 %3147  ;;  %v3164_v55 = vmul.f32 0.044715, %v3152_v31  ;;  %v6671_v32 = vadd.f32 %v6617_v58, %v3134_v5  ;;  %v3345_v54 = vmul.f32 %v6621_v6, %v6579_v17  ;;  %v3163_v16 = vmul.f32 0.044715, %v6654_v62 }
 0x748   :  { %v6668_v19 = vadd.f32 %v6649_v57, %v3139_v51  ;;  %v6676_v25 = vadd.f32 %v6649_v57, %v3138_v11  ;;  %v6680_v2 = vadd.f32 %v6649_v57, %v3137_v49  ;;  %v6684_v38 = vmul.f32 %v6621_v6, %v6584_v29 }
 0x749   :  { %v6688_v35 = vmul.f32 %v6621_v6, %v6589_v59  ;;  %v3170_v24 = vmul.f32 %v3164_v55, %v3152_v31  ;;  %v6692_v17 = vadd.f32 %v3213_v33, %v6649_v57  ;;  %v6695_v45 = vadd.f32 %v3214_v3, %v6649_v57 }
 0x74a   :  { %v3167_v8 = vmul.f32 0.044715, %v6668_v19  ;;  %v3166_v26 = vmul.f32 0.044715, %v6676_v25  ;;  %v3169_v36 = vmul.f32 %v3163_v16, %v6654_v62  ;;  %v3162_v47 = vmul.f32 0.044715, %v6671_v32 }
 0x74b   :  { %v3176_v28 = vmul.f32 %v3170_v24, %v3152_v31  ;;  %v3165_v59 = vmul.f32 0.044715, %v6680_v2  ;;  %v3280_v53 = vmul.f32 %v6621_v6, %v6540_v46  ;;  %v3283_v21 = vadd.f32 %v3277_v13, %v6617_v58 }
 0x74c   :  { %v3173_v29 = vmul.f32 %v3167_v8, %v6668_v19  ;;  %v3172_v50 = vmul.f32 %v3166_v26, %v6676_v25  ;;  %v3175_v10 = vmul.f32 %v3169_v36, %v6654_v62  ;;  %v3168_v23 = vmul.f32 %v3162_v47, %v6671_v32 }
 0x74d   :  { %v3182_v12 = vadd.f32 %v3176_v28, %v3152_v31  ;;  %v3171_v41 = vmul.f32 %v3165_v59, %v6680_v2  ;;  %v6711_v14 = vadd.f32 %v3345_v54, %v6649_v57  ;;  %v6716_v27 = vadd.f32 %v3280_v53, %v6649_v57 }
 0x74e   :  { %v3179_v30 = vmul.f32 %v3173_v29, %v6668_v19  ;;  %v3178_v18 = vmul.f32 %v3172_v50, %v6676_v25  ;;  %v3181_v1 = vadd.f32 %v3175_v10, %v6654_v62  ;;  %v3174_v7 = vmul.f32 %v3168_v23, %v6671_v32 }
 0x74f   :  { %v3188_v61 = vmul.f32 0.7978846, %v3182_v12  ;;  %v3177_v52 = vmul.f32 %v3171_v41, %v6680_v2  ;;  %v3158_v0 = vmul.f32 0.5, %v3152_v31  ;;  %v3295_v34 = vmul.f32 0.044715, %v3283_v21 }
 0x750   :  { %v3185_v46 = vadd.f32 %v3179_v30, %v6668_v19  ;;  %v3184_v20 = vadd.f32 %v3178_v18, %v6676_v25  ;;  %v3187_v60 = vmul.f32 0.7978846, %v3181_v1  ;;  %v3180_v13 = vadd.f32 %v3174_v7, %v6671_v32 }
 0x751   :  { %4047 = vtanh.f32 %v3188_v61  ;;  %v3183_v51 = vadd.f32 %v3177_v52, %v6680_v2  ;;  %v3298_v11 = vmul.f32 0.044715, %v6716_v27  ;;  %v3301_v49 = vmul.f32 %v3295_v34, %v3283_v21 }
 0x752   :  { %v3191_v5 = vmul.f32 0.7978846, %v3185_v46  ;;  %v3190_v33 = vmul.f32 0.7978846, %v3184_v20  ;;  %4049 = vtanh.f32 %v3187_v60  ;;  %v3186_v3 = vmul.f32 0.7978846, %v3180_v13 }
 0x753   :  { %v3189_v55 = vmul.f32 0.7978846, %v3183_v51  ;;  %v3281_v31 = vmul.f32 %v6621_v6, %v6547_v48  ;;  %v3304_v54 = vmul.f32 %v3298_v11, %v6716_v27  ;;  %v3307_v16 = vmul.f32 %v3301_v49, %v3283_v21 }
 0x754   :  { %4051 = vtanh.f32 %v3191_v5  ;;  %v6730_v8 = vadd.f32 %v6628_v15, %v6617_v58  ;;  %v3279_v26 = vmul.f32 %v6621_v6, %v6535_v44  ;;  %v6739_v36 = vadd.f32 %v6631_v37, %v6617_v58 }
 0x755   :  { %4053 = vtanh.f32 %v3190_v33  ;;  %v6733_v24 = vadd.f32 %v3281_v31, %v6649_v57  ;;  %v3157_v48 = vmul.f32 0.5, %v6654_v62  ;;  %v3310_v29 = vmul.f32 %v3304_v54, %v6716_v27 }
 0x756   :  { %4055 = vtanh.f32 %v3186_v3  ;;  %v3313_v28 = vadd.f32 %v3307_v16, %v3283_v21  ;;  %v3161_v15 = vmul.f32 0.5, %v6668_v19  ;;  %v3296_v47 = vmul.f32 0.044715, %v6730_v8 }
 0x757   :  { %4057 = vtanh.f32 %v3189_v55  ;;  %v3299_v59 = vmul.f32 0.044715, %v6733_v24  ;;  %v6747_v50 = vadd.f32 %v3279_v26, %v6649_v57  ;;  %v3156_v44 = vmul.f32 0.5, %v6671_v32 }
 0x758   :  { %v3316_v37 = vadd.f32 %v3310_v29, %v6716_v27  ;;  %v3319_v10 = vmul.f32 0.7978846, %v3313_v28  ;;  %v3294_v62 = vmul.f32 0.044715, %v6739_v36  ;;  %v3160_v53 = vmul.f32 0.5, %v6676_v25 }
 0x759   :  { %v3302_v30 = vmul.f32 %v3296_v47, %v6730_v8  ;;  %v3305_v19 = vmul.f32 %v3299_v59, %v6733_v24  ;;  %v3297_v12 = vmul.f32 0.044715, %v6747_v50  ;;  %v3159_v23 = vmul.f32 0.5, %v6680_v2  ;;  %v7342_v47 = vld [vmem:[#allocation17_spill] sm:$0xff] }
 0x75a   :  { %v3322_v41 = vmul.f32 0.7978846, %v3316_v37  ;;  %4059 = vtanh.f32 %v3319_v10  ;;  %v3300_v18 = vmul.f32 %v3294_v62, %v6739_v36  ;;  %v3289_v1 = vmul.f32 0.5, %v3283_v21  ;;  %v7343_v62 = vld [vmem:[#allocation26_spill] sm:$0xff] }
 0x75b   :  { %v4048_v32 = vpop.eup %4047  ;;  %v3308_v46 = vmul.f32 %v3302_v30, %v6730_v8  ;;  %v3311_v61 = vmul.f32 %v3305_v19, %v6733_v24  ;;  %v3303_v25 = vmul.f32 %v3297_v12, %v6747_v50  ;;  %v3229_v60 = vmul.f32 0.044715, %v6637_v22 }
 0x75c   :  { %v4050_v7 = vpop.eup %4049  ;;  %v3200_v52 = vadd.f32 1.0, %v4048_v32  ;;  %4061 = vtanh.f32 %v3322_v41  ;;  %v3306_v20 = vmul.f32 %v3300_v18, %v6739_v36  ;;  %v3232_v3 = vmul.f32 0.044715, %v6695_v45 }
 0x75d   :  { %v3199_v34 = vadd.f32 1.0, %v4050_v7  ;;  %v3314_v5 = vadd.f32 %v3308_v46, %v6730_v8  ;;  %v3317_v13 = vadd.f32 %v3311_v61, %v6733_v24  ;;  %v3309_v21 = vmul.f32 %v3303_v25, %v6747_v50 }
 0x75e   :  { %v4052_v2 = vpop.eup %4051  ;;  %v6766_v11 = vmul.f32 %v3200_v52, %v3158_v0  ;;  %v3312_v49 = vadd.f32 %v3306_v20, %v6739_v36 }
 0x75f   :  { %v4054_v51 = vpop.eup %4053  ;;  %v3203_v33 = vadd.f32 1.0, %v4052_v2  ;;  %v6770_v54 = vmul.f32 %v3199_v34, %v3157_v48  ;;  %v3320_v16 = vmul.f32 0.7978846, %v3314_v5  ;;  %v3323_v26 = vmul.f32 0.7978846, %v3317_v13 }
 0x760   :  { %v4056_v55 = vpop.eup %4055  ;;  %v3202_v31 = vadd.f32 1.0, %v4054_v51  ;;  %v3422_v59 = vmul.f32 %v6766_v11, %v7342_v47  ;;  %v3315_v0 = vadd.f32 %v3309_v21, %v6747_v50  ;;  %v3318_v32 = vmul.f32 0.7978846, %v3312_v49 }
 0x761   :  { %v4058_v29 = vpop.eup %4057  ;;  %v6772_v28 = vmul.f32 %v3203_v33, %v3161_v15  ;;  %v3198_v37 = vadd.f32 1.0, %v4056_v55  ;;  %v3421_v30 = vmul.f32 %v6770_v54, %v7343_v62  ;;  %4063 = vtanh.f32 %v3320_v16 }
 0x762   :  { %v6777_v10 = vmul.f32 %v3202_v31, %v3160_v53  ;;  %v3201_v19 = vadd.f32 1.0, %v4058_v29  ;;  %4065 = vtanh.f32 %v3323_v26  ;;  %v3321_v7 = vmul.f32 0.7978846, %v3315_v0 }
 0x763   :  { %v3425_v48 = vmul.f32 %v6772_v28, %v7342_v47  ;;  %v3410_v15 = vpack.c.bf16 %v6772_v28, %v6766_v11  ;;  %v6785_v12 = vmul.f32 %v3198_v37, %v3156_v44  ;;  %v3235_v44 = vmul.f32 %v3229_v60, %v6637_v22  ;;  %v7344_v37 = vld [vmem:[#allocation28_spill] sm:$0xff] }
 0x764   :  { %v3424_v41 = vmul.f32 %v6777_v10, %v7343_v62  ;;  %v3409_v53 = vpack.c.bf16 %v6777_v10, %v6770_v54  ;;  %v6791_v18 = vmul.f32 %v3201_v19, %v3159_v23  ;;  %v4060_v46 = vpop.eup %4059  ;;  %v3292_v5 = vmul.f32 0.5, %v6716_v27 }
 0x765   :  { %v3428_v61 = vpack.c.bf16 %v3425_v48, %v3422_v59  ;;  %3413 = vst.msk [vmem:[#allocation3 + $0x10] sm:$0xff] %vm645_vm0, %v3410_v15  ;;  %v3420_v25 = vmul.f32 %v6785_v12, %v7310_v43  ;;  %v3331_v23 = vadd.f32 1.0, %v4060_v46  ;;  %4067 = vtanh.f32 %v3318_v32 }
 0x766   :  { %v3427_v52 = vpack.c.bf16 %v3424_v41, %v3421_v30  ;;  %v3423_v20 = vmul.f32 %v6791_v18, %v7310_v43  ;;  %v3408_v2 = vpack.c.bf16 %v6791_v18, %v6785_v12  ;;  %3609 = vmatprep.subr.bf16.mxu1 %v3409_v53  ;;  %v4062_v34 = vpop.eup %4061  ;;  %v3238_v13 = vmul.f32 %v3232_v3, %v6695_v45 }
 0x767   :  { %3436 = vrot.lane.b32.xlu1 %v3428_v61, %s4191_s0  ;;  %v3241_v21 = vmul.f32 %v3235_v44, %v6637_v22  ;;  %v3334_v51 = vadd.f32 1.0, %v4062_v34  ;;  %v6806_v33 = vmul.f32 %v3331_v23, %v3289_v1  ;;  %4069 = vtanh.f32 %v3321_v7 }
 0x768   :  { %3434 = vrot.lane.b32.xlu0 %v3427_v52, %s4191_s0  ;;  %v3426_v60 = vpack.c.bf16 %v3423_v20, %v3420_v25  ;;  %3610 = vmatpush1.bf16.msra.mxu1 %v3408_v2  ;;  %v3290_v49 = vmul.f32 0.5, %v6730_v8  ;;  %v3244_v55 = vmul.f32 %v3238_v13, %v6695_v45  ;;  %v3228_v27 = vmul.f32 0.044715, %v6634_v39 }
 0x769   :  { %v3247_v31 = vadd.f32 %v3241_v21, %v6637_v22  ;;  %v6812_v16 = vmul.f32 %v3334_v51, %v3292_v5  ;;  %v3460_v3 = vmul.f32 %v6806_v33, %v7343_v62  ;;  %v3293_v26 = vmul.f32 0.5, %v6733_v24  ;;  %v7345_v5 = vld [vmem:[#allocation19_spill] sm:$0xff] }
 0x76a   :  { %v3231_v1 = vmul.f32 0.044715, %v6692_v17  ;;  %v3250_v29 = vadd.f32 %v3244_v55, %v6695_v45  ;;  %v3234_v8 = vmul.f32 %v3228_v27, %v6634_v39  ;;  %v6822_v0 = vmul.f32 %v6777_v10, %v7344_v37 }
 0x76b   :  { %v3253_v59 = vmul.f32 0.7978846, %v3247_v31  ;;  %v4064_v30 = vpop.eup %4063  ;;  %v3463_v19 = vmul.f32 %v6812_v16, %v7343_v62  ;;  %v3448_v24 = vpack.c.bf16 %v6812_v16, %v6806_v33  ;;  %v6832_v15 = vmul.f32 %v6770_v54, %v7344_v37 }
 0x76c   :  { %3432 = vrot.lane.b32.xlu0 %v3426_v60, %s4191_s0  ;;  %v3237_v48 = vmul.f32 %v3231_v1, %v6692_v17  ;;  %v4066_v41 = vpop.eup %4065  ;;  %v3332_v53 = vadd.f32 1.0, %v4064_v30  ;;  %v3256_v32 = vmul.f32 0.7978846, %v3250_v29  ;;  %v3240_v46 = vmul.f32 %v3234_v8, %v6634_v39 }
 0x76d   :  { %4071 = vtanh.f32 %v3253_v59  ;;  %v3466_v61 = vpack.c.bf16 %v3463_v19, %v3460_v3  ;;  %v3335_v25 = vadd.f32 1.0, %v4066_v41  ;;  %v3493_v62 = vpack.c.bf16 %v6822_v0, %v6832_v15  ;;  %v7346_v19 = vld [vmem:[#allocation49_spill] sm:$0xff] }
 0x76e   :  { %v3243_v7 = vmul.f32 %v3237_v48, %v6692_v17  ;;  %v3338_v44 = vmul.f32 %v3332_v53, %v3290_v49  ;;  %v3288_v52 = vmul.f32 0.5, %v6739_v36  ;;  %4073 = vtanh.f32 %v3256_v32  ;;  %v7347_v32 = vld [vmem:[#allocation47_spill] sm:$0xff] }
 0x76f   :  { %v3246_v20 = vadd.f32 %v3240_v46, %v6634_v39  ;;  %3473 = vrot.lane.b32.xlu1 %v3466_v61, %s4191_s0  ;;  %v3341_v2 = vmul.f32 %v3335_v25, %v3293_v26  ;;  %v3291_v23 = vmul.f32 0.5, %v6747_v50  ;;  %v6845_v13 = vmul.f32 %v6791_v18, %v7345_v5  ;;  %v4068_v21 = vpop.eup %4067 }
 0x770   :  { %v3249_v34 = vadd.f32 %v3243_v7, %v6692_v17  ;;  %v3461_v60 = vmul.f32 %v3338_v44, %v7342_v47  ;;  %v3486_v36 = vmul.f32 %v6785_v12, %v7345_v5  ;;  %v3215_v49 = vmul.f32 %v6621_v6, %v6515_v40 }
 0x771   :  { %v3252_v51 = vmul.f32 0.7978846, %v3246_v20  ;;  %v4070_v55 = vpop.eup %4069  ;;  %v3464_v31 = vmul.f32 %v3341_v2, %v7342_v47  ;;  %v3449_v50 = vpack.c.bf16 %v3341_v2, %v3338_v44  ;;  %v3330_v27 = vadd.f32 1.0, %v4068_v21  ;;  %v7348_v44 = vld [vmem:[#allocation48_spill] sm:$0xff] }
 0x772   :  { %v3255_v3 = vmul.f32 0.7978846, %v3249_v34  ;;  %v3333_v26 = vadd.f32 1.0, %v4070_v55  ;;  %v3492_v1 = vpack.c.bf16 %v6845_v13, %v3486_v36  ;;  %v6856_v29 = vadd.f32 %v6641_v4, %v6617_v58 }
 0x773   :  { %4075 = vtanh.f32 %v3252_v51  ;;  %v3467_v59 = vpack.c.bf16 %v3464_v31, %v3461_v60  ;;  %3452 = vst.msk [vmem:[#allocation3 + $0x58] sm:$0xff] %vm645_vm0, %v3449_v50  ;;  %v6859_v8 = vmul.f32 %v3330_v27, %v3288_v52  ;;  %v6862_v40 = vadd.f32 %v3215_v49, %v6649_v57 }
 0x774   :  { %4077 = vtanh.f32 %v3255_v3  ;;  %v6866_v6 = vadd.f32 %v6684_v38, %v6649_v57  ;;  %v6870_v47 = vadd.f32 %v6688_v35, %v6649_v57  ;;  %v6872_v0 = vmul.f32 %v3333_v26, %v3291_v23 }
 0x775   :  { %v3230_v58 = vmul.f32 0.044715, %v6856_v29  ;;  %3475 = vrot.lane.b32.xlu0 %v3467_v59, %s4191_s0  ;;  %v3223_v4 = vmul.f32 0.5, %v6637_v22  ;;  %v3233_v30 = vmul.f32 0.044715, %v6862_v40  ;;  %v6880_v48 = vmul.f32 %v6770_v54, %v7346_v19 }
 0x776   :  { %v6884_v38 = vmul.f32 %v6777_v10, %v7346_v19  ;;  %v3459_v35 = vmul.f32 %v6859_v8, %v7310_v43  ;;  %v3462_v15 = vmul.f32 %v6872_v0, %v7310_v43  ;;  %v3447_v22 = vpack.c.bf16 %v6872_v0, %v6859_v8 }
 0x777   :  { %v4072_v57 = vpop.eup %4071  ;;  %v3236_v41 = vmul.f32 %v3230_v58, %v6856_v29  ;;  %v3491_v54 = vmul.f32 %v6772_v28, %v7347_v32  ;;  %v3239_v46 = vmul.f32 %v3233_v30, %v6862_v40  ;;  %v6901_v43 = vmul.f32 %v6785_v12, %v7348_v44 }
 0x778   :  { %v3265_v53 = vadd.f32 1.0, %v4072_v57  ;;  %v3547_v10 = vpack.c.bf16 %v6884_v38, %v6880_v48  ;;  %v4074_v61 = vpop.eup %4073  ;;  %v3465_v25 = vpack.c.bf16 %v3462_v15, %v3459_v35  ;;  %v6905_v52 = vmul.f32 %v6791_v18, %v7348_v44 }
 0x779   :  { %v3242_v7 = vmul.f32 %v3236_v41, %v6856_v29  ;;  %v3226_v20 = vmul.f32 0.5, %v6695_v45  ;;  %v3268_v2 = vadd.f32 1.0, %v4074_v61  ;;  %3500 = vrot.lane.b32.xlu0 %v3493_v62, %s4192_s5  ;;  %v3245_v34 = vmul.f32 %v3239_v46, %v6862_v40 }
 0x77a   :  { %v3271_v23 = vmul.f32 %v3265_v53, %v3223_v4  ;;  %3471 = vrot.lane.b32.xlu1 %v3465_v25, %s4191_s0  ;;  %v3222_v13 = vmul.f32 0.5, %v6634_v39  ;;  %v3488_v12 = vmul.f32 %v6766_v11, %v7347_v32  ;;  %v3546_v18 = vpack.c.bf16 %v6905_v52, %v6901_v43 }
 0x77b   :  { %v3248_v21 = vadd.f32 %v3242_v7, %v6856_v29  ;;  %v3274_v60 = vmul.f32 %v3268_v2, %v3226_v20  ;;  %v3225_v45 = vmul.f32 0.5, %v6692_v17  ;;  %v3251_v51 = vadd.f32 %v3245_v34, %v6862_v40  ;;  %v7349_v34 = vld [vmem:[#allocation18_spill] sm:$0xff] }
 0x77c   :  { %v3361_v62 = vmul.f32 0.044715, %v6647_v63  ;;  %v3494_v49 = vpack.c.bf16 %v3491_v54, %v3488_v12  ;;  %v3514_v55 = vmul.f32 %v3271_v23, %v7344_v37  ;;  %v3364_v31 = vmul.f32 0.044715, %v6866_v6 }
 0x77d   :  { %v4076_v36 = vpop.eup %4075  ;;  %v3254_v39 = vmul.f32 0.7978846, %v3248_v21  ;;  %v3415_v27 = vpack.c.bf16 %v3274_v60, %v3271_v23  ;;  %3498 = vrot.lane.b32.xlu0 %v3492_v1, %s4192_s5  ;;  %v3517_v26 = vmul.f32 %v3274_v60, %v7344_v37  ;;  %v3257_v59 = vmul.f32 0.7978846, %v3251_v51 }
 0x77e   :  { %v4078_v50 = vpop.eup %4077  ;;  %v3264_v3 = vadd.f32 1.0, %v4076_v36  ;;  %3502 = vrot.lane.b32.xlu1 %v3494_v49, %s4192_s5  ;;  %v3367_v58 = vmul.f32 %v3361_v62, %v6647_v63  ;;  %v3370_v4 = vmul.f32 %v3364_v31, %v6866_v6  ;;  %v3360_v57 = vmul.f32 0.044715, %v6644_v56 }
 0x77f   :  { %v3267_v17 = vadd.f32 1.0, %v4078_v50  ;;  %4079 = vtanh.f32 %v3254_v39  ;;  %3611 = vmatprep.subr.bf16.mxu1 %v3415_v27  ;;  %v3520_v19 = vpack.c.bf16 %v3517_v26, %v3514_v55  ;;  %v3363_v15 = vmul.f32 0.044715, %v6711_v14 }
 0x780   :  { %v3270_v30 = vmul.f32 %v3264_v3, %v3222_v13  ;;  %4081 = vtanh.f32 %v3257_v59  ;;  %v3373_v1 = vmul.f32 %v3367_v58, %v6647_v63  ;;  %v3376_v37 = vmul.f32 %v3370_v4, %v6866_v6 }
 0x781   :  { %v3273_v35 = vmul.f32 %v3267_v17, %v3225_v45  ;;  %v3366_v53 = vmul.f32 %v3360_v57, %v6644_v56  ;;  %v3369_v7 = vmul.f32 %v3363_v15, %v6711_v14  ;;  %v3362_v20 = vmul.f32 0.044715, %v6657_v42 }
 0x782   :  { %v3513_v41 = vmul.f32 %v3270_v30, %v7345_v5  ;;  %3527 = vrot.lane.b32.xlu1 %v3520_v19, %s4192_s5  ;;  %v3379_v61 = vadd.f32 %v3373_v1, %v6647_v63  ;;  %v3382_v25 = vadd.f32 %v3376_v37, %v6866_v6  ;;  %v3365_v2 = vmul.f32 0.044715, %v6870_v47  ;;  %v6960_v37 = vld [vmem:[#allocation8 + $0x4] ss:$8 sps:$4 sm:$0xff]  }
 0x783   :  { %v3414_v54 = vpack.c.bf16 %v3273_v35, %v3270_v30  ;;  %v3516_v46 = vmul.f32 %v3273_v35, %v7345_v5  ;;  %v3372_v44 = vmul.f32 %v3366_v53, %v6644_v56  ;;  %v3545_v13 = vmul.f32 %v6772_v28, %v7349_v34  ;;  %3753 = vmatprep.mubr.msk.bf16.mxu1 %vm3605_vm7, %v6960_v37 }
 0x784   :  { %v3385_v12 = vmul.f32 0.7978846, %v3379_v61  ;;  %v3388_v21 = vmul.f32 0.7978846, %v3382_v25  ;;  %v3375_v5 = vmul.f32 %v3369_v7, %v6711_v14  ;;  %v3368_v45 = vmul.f32 %v3362_v20, %v6657_v42 }
 0x785   :  { %3612 = vmatpush1.bf16.msra.mxu1 %v3414_v54  ;;  %v3519_v23 = vpack.c.bf16 %v3516_v46, %v3513_v41  ;;  %v3378_v60 = vadd.f32 %v3372_v44, %v6644_v56  ;;  %v3371_v51 = vmul.f32 %v3365_v2, %v6870_v47  ;;  %v3542_v62 = vmul.f32 %v6766_v11, %v7349_v34 }
 0x786   :  { %4083 = vtanh.f32 %v3385_v12  ;;  %v3381_v36 = vadd.f32 %v3375_v5, %v6711_v14  ;;  %v3374_v49 = vmul.f32 %v3368_v45, %v6657_v42  ;;  %v3224_v39 = vmul.f32 0.5, %v6856_v29 }
 0x787   :  { %3525 = vrot.lane.b32.xlu1 %v3519_v23, %s4192_s5  ;;  %4085 = vtanh.f32 %v3388_v21  ;;  %v3384_v28 = vmul.f32 0.7978846, %v3378_v60  ;;  %v3548_v31 = vpack.c.bf16 %v3545_v13, %v3542_v62  ;;  %v3377_v50 = vmul.f32 %v3371_v51, %v6870_v47 }
 0x788   :  { %v3387_v26 = vmul.f32 0.7978846, %v3381_v36  ;;  %v3380_v59 = vadd.f32 %v3374_v49, %v6657_v42  ;;  %v3227_v11 = vmul.f32 0.5, %v6862_v40  ;;  %v3355_v54 = vmul.f32 0.5, %v6647_v63 }
 0x789   :  { %v4080_v55 = vpop.eup %4079  ;;  %4087 = vtanh.f32 %v3384_v28  ;;  %v3383_v58 = vadd.f32 %v3377_v50, %v6870_v47  ;;  %v3354_v23 = vmul.f32 0.5, %v6644_v56  ;;  %v3357_v34 = vmul.f32 0.5, %v6711_v14 }
 0x78a   :  { %v4082_v27 = vpop.eup %4081  ;;  %v3266_v3 = vadd.f32 1.0, %v4080_v55  ;;  %4089 = vtanh.f32 %v3387_v26  ;;  %v3386_v30 = vmul.f32 0.7978846, %v3380_v59  ;;  %v3356_v60 = vmul.f32 0.5, %v6657_v42 }
 0x78b   :  { %v3269_v17 = vadd.f32 1.0, %v4082_v27  ;;  %3556 = vrot.lane.b32.xlu1 %v3548_v31, %s4193_s17  ;;  %v3389_v19 = vmul.f32 0.7978846, %v3383_v58  ;;  %v3359_v45 = vmul.f32 0.5, %v6870_v47  ;;  %v3571_v58 = vld [vmem:[#allocation3 + $0x10] sm:$0xff] }
 0x78c   :  { %v3272_v4 = vmul.f32 %v3266_v3, %v3224_v39  ;;  %4091 = vtanh.f32 %v3386_v30 }
 0x78d   :  { %v3275_v29 = vmul.f32 %v3269_v17, %v3227_v11  ;;  %4093 = vtanh.f32 %v3389_v19  ;;  %v3936_v17 = vld [vmem:[#allocation8] ss:$8 sps:$4 sm:$0xff]  }
 0x78e   :  { %v3515_v57 = vmul.f32 %v3272_v4, %v7347_v32 }
 0x78f   :  { %v3518_v35 = vmul.f32 %v3275_v29, %v7347_v32  ;;  %v3416_v1 = vpack.c.bf16 %v3275_v29, %v3272_v4  ;;  %v3358_v32 = vmul.f32 0.5, %v6866_v6  ;;  %v3580_v29 = vld [vmem:[#allocation3 + $0x58] sm:$0xff] }
 0x790   :  { %v4084_v40 = vpop.eup %4083 }
 0x791   :  { %v3521_v15 = vpack.c.bf16 %v3518_v35, %v3515_v57  ;;  %3419 = vst.msk [vmem:[#allocation3 + $0x28] sm:$0xff] %vm645_vm0, %v3416_v1  ;;  %v4086_v41 = vpop.eup %4085  ;;  %v3397_v53 = vadd.f32 1.0, %v4084_v40 }
 0x792   :  { %v3400_v46 = vadd.f32 1.0, %v4086_v41 }
 0x793   :  { %3529 = vrot.lane.b32.xlu0 %v3521_v15, %s4192_s5  ;;  %v4088_v61 = vpop.eup %4087  ;;  %v3403_v25 = vmul.f32 %v3397_v53, %v3355_v54 }
 0x794   :  { %v3406_v7 = vmul.f32 %v3400_v46, %v3358_v32  ;;  %v3396_v44 = vadd.f32 1.0, %v4088_v61  ;;  %v4090_v20 = vpop.eup %4089 }
 0x795   :  { %v3399_v13 = vadd.f32 1.0, %v4090_v20 }
 0x796   :  { %v3454_v2 = vpack.c.bf16 %v3406_v7, %v3403_v25  ;;  %v4092_v63 = vpop.eup %4091  ;;  %v3402_v6 = vmul.f32 %v3396_v44, %v3354_v23 }
 0x797   :  { %3554 = vrot.lane.b32.xlu0 %v3547_v10, %s4193_s17  ;;  %v4094_v12 = vpop.eup %4093  ;;  %v3405_v21 = vmul.f32 %v3399_v13, %v3357_v34  ;;  %v3398_v5 = vadd.f32 1.0, %v4092_v63 }
 0x798   :  { %v3401_v51 = vadd.f32 1.0, %v4094_v12  ;;  %v3574_v4 = vld [vmem:[#allocation3 + $0x28] sm:$0xff] }
 0x799   :  { %v3453_v48 = vpack.c.bf16 %v3405_v21, %v3402_v6  ;;  %v3404_v56 = vmul.f32 %v3398_v5, %v3356_v60 }
 0x79a   :  { %v3407_v38 = vmul.f32 %v3401_v51, %v3359_v45 }
 0x79b   :  { %3552 = vrot.lane.b32.xlu0 %v3546_v18, %s4193_s17 }
 0x79c   :  { %v3455_v14 = vpack.c.bf16 %v3407_v38, %v3404_v56 }
 0x79e   :  { %3458 = vst.msk [vmem:[#allocation3 + $0x70] sm:$0xff] %vm645_vm0, %v3455_v14 }
 0x7a5   :  { %v3583_v19 = vld [vmem:[#allocation3 + $0x70] sm:$0xff] }
 0x7d9   :  { %v3437_v10 = vpop.permute.xlu1 %3436 }
 0x7da   :  { %3445 = vst.msk [vmem:[#allocation3 + $0x40] sm:$0xff] %vm496_vm1, %v3437_v10  ;;  %v3435_v62 = vpop.permute.xlu0 %3434 }
 0x7db   :  { %3446 = vst.msk [vmem:[#allocation3 + $0x40] sm:$0xff] %vm1728_vm12, %v7273_v9  ;;  %v3439_v42 = vsel %vm490_vm2, %v3435_v62, %v3437_v10 }
 0x7dc   :  { %3613 = vmatprep.subr.bf16.mxu1 %v3439_v42 }
 0x7de   :  { %v3433_v47 = vpop.permute.xlu0 %3432 }
 0x7df   :  { %v3438_v43 = vsel %vm490_vm2, %v3433_v47, %v3435_v62 }
 0x7e0   :  { %3614 = vmatpush1.bf16.msra.mxu1 %v3438_v43 }
 0x7e1   :  { %3615 = vmatprep.subr.bf16.mxu1 %v3448_v24  ;;  %v3474_v52 = vpop.permute.xlu1 %3473 }
 0x7e2   :  { %v3577_v30 = vld [vmem:[#allocation3 + $0x40] sm:$0xff] }
 0x7e4   :  { %3616 = vmatpush1.bf16.msra.mxu1 %v3447_v22 }
 0x7e5   :  { %3617 = vmatprep.subr.bf16.mxu1 %v3454_v2 }
 0x7e7   :  { %v3476_v18 = vpop.permute.xlu0 %3475 }
 0x7e8   :  { %3618 = vmatpush1.bf16.msra.mxu1 %v3453_v48  ;;  %v3478_v36 = vsel %vm490_vm2, %v3474_v52, %v3476_v18  ;;  %3484 = vst.msk [vmem:[#allocation3 + $0x88] sm:$0xff] %vm496_vm1, %v3476_v18  ;;  %vm7350_vm1 = vcmask 941056  }
 0x7e9   :  { %3485 = vst.msk [vmem:[#allocation3 + $0x88] sm:$0xff] %vm1728_vm12, %v7273_v9  ;;  %3619 = vmatprep.subr.bf16.mxu1 %v3478_v36 }
 0x7eb   :  { %v3501_v28 = vpop.permute.xlu0 %3500 }
 0x7ec   :  { %v3472_v49 = vpop.permute.xlu1 %3471 }
 0x7ed   :  { %v3477_v33 = vsel %vm490_vm2, %v3472_v49, %v3474_v52  ;;  %vm7351_vm2 = vmmov %vm7350_vm1 }
 0x7ee   :  { %3620 = vmatpush1.bf16.msra.mxu1 %v3477_v33 }
 0x7ef   :  { %v3499_v16 = vpop.permute.xlu0 %3498 }
 0x7f0   :  { %v3503_v24 = vpop.permute.xlu1 %3502  ;;  %v3504_v8 = vsel %vm519_vm3, %v3499_v16, %v3501_v28  ;;  %v3586_v57 = vld [vmem:[#allocation3 + $0x88] sm:$0xff] }
 0x7f1   :  { %v3505_v0 = vsel %vm519_vm3, %v3501_v28, %v3503_v24  ;;  %3511 = vst.msk [vmem:[#allocation3 + $0xa0] sm:$0xff] %vm525_vm4, %v3503_v24 }
 0x7f2   :  { %3512 = vst.msk [vmem:[#allocation3 + $0xa0] sm:$0xff] %vm1893_vm13, %v7273_v9  ;;  %3621 = vmatprep.subr.bf16.mxu1 %v3505_v0 }
 0x7f3   :  { %3622 = vmatpush1.bf16.msra.mxu1 %v3504_v8 }
 0x7f4   :  { %v3528_v22 = vpop.permute.xlu1 %3527 }
 0x7f9   :  { %v3526_v55 = vpop.permute.xlu1 %3525  ;;  %v3589_v35 = vld [vmem:[#allocation3 + $0xa0] sm:$0xff] }
 0x7fa   :  { %v3531_v39 = vsel %vm519_vm3, %v3526_v55, %v3528_v22 }
 0x7fd   :  { %v3557_v31 = vpop.permute.xlu1 %3556 }
 0x7fe   :  { %3565 = vst.msk [vmem:[#allocation3 + $0xd0] sm:$0xff] %vm566_vm6, %v3557_v31 }
 0x7ff   :  { %3566 = vst.msk [vmem:[#allocation3 + $0xd0] sm:$0xff] %vm1964_vm15, %v7273_v9 }
 0x805   :  { %v3530_v50 = vpop.permute.xlu0 %3529 }
 0x806   :  { %v3532_v27 = vsel %vm519_vm3, %v3528_v22, %v3530_v50  ;;  %3538 = vst.msk [vmem:[#allocation3 + $0xb8] sm:$0xff] %vm525_vm4, %v3530_v50 }
 0x807   :  { %3539 = vst.msk [vmem:[#allocation3 + $0xb8] sm:$0xff] %vm1893_vm13, %v7273_v9  ;;  %3623 = vmatprep.subr.bf16.mxu1 %v3532_v27 }
 0x808   :  { %3624 = vmatpush1.bf16.msra.mxu1 %v3531_v39 }
 0x809   :  { %v3555_v3 = vpop.permute.xlu0 %3554 }
 0x80a   :  { %v3559_v26 = vsel %vm7350_vm1, %v3555_v3, %v3557_v31 }
 0x80b   :  { %3625 = vmatprep.subr.bf16.mxu1 %v3559_v26 }
 0x80d   :  { %v3553_v59 = vpop.permute.xlu0 %3552 }
 0x80e   :  { %v3558_v11 = vsel %vm7351_vm2, %v3553_v59, %v3555_v3  ;;  %v3592_v1 = vld [vmem:[#allocation3 + $0xb8] sm:$0xff] }
 0x80f   :  { %3626 = vmatpush1.bf16.msra.mxu1 %v3558_v11 }
 0x810   :  { %3652 = vmatprep.subr.bf16.mxu1 %v7273_v9 }
 0x812   :  { %3642 = vmatmul.mubr.bf16.vlgmr.msra.gmra.mrb[48].mxu1 %v3936_v17 }
 0x813   :  { %3653 = vmatpush1.bf16.msra.mxu1 %v3571_v58  ;;  %3754 = vmatprep.mubr.msk.bf16.mxu1 %vm3605_vm7, %v6960_v37  ;;  %v3595_v37 = vld [vmem:[#allocation3 + $0xd0] sm:$0xff] }
 0x814   :  { %3654 = vmatprep.subr.bf16.mxu1 %v7273_v9 }
 0x817   :  { %3655 = vmatpush1.bf16.msra.mxu1 %v3574_v4 }
 0x818   :  { %3656 = vmatprep.subr.bf16.mxu1 %v7273_v9 }
 0x81b   :  { %3657 = vmatpush1.bf16.msra.mxu1 %v3577_v30 }
 0x81c   :  { %3658 = vmatprep.subr.bf16.mxu1 %v7273_v9 }
 0x81f   :  { %3659 = vmatpush1.bf16.msra.mxu1 %v3580_v29 }
 0x820   :  { %3660 = vmatprep.subr.bf16.mxu1 %v7273_v9 }
 0x823   :  { %3661 = vmatpush1.bf16.msra.mxu1 %v3583_v19 }
 0x824   :  { %3662 = vmatprep.subr.bf16.mxu1 %v7273_v9 }
 0x827   :  { %3663 = vmatpush1.bf16.msra.mxu1 %v3586_v57 }
 0x828   :  { %3664 = vmatprep.subr.bf16.mxu1 %v7273_v9 }
 0x82b   :  { %3665 = vmatpush1.bf16.msra.mxu1 %v3589_v35 }
 0x82c   :  { %3666 = vmatprep.subr.bf16.mxu1 %v7273_v9 }
 0x82f   :  { %3667 = vmatpush1.bf16.msra.mxu1 %v3592_v1 }
 0x830   :  { %3668 = vmatprep.subr.bf16.mxu1 %v7273_v9 }
 0x833   :  { %3669 = vmatpush1.bf16.msra.mxu1 %v3595_v37 }
 0x836   :  { %3685 = vmatmul.mubr.bf16.vlgmr.msra.gmra.mrb[52].mxu1 %v3936_v17 }
 0x8e5   :  { %v3643_v40 = vpop.f32.mrb[48].mxu1 }
 0x8e6   :  { %4095 = vtanh.f32 %v3643_v40  ;;  %v3645_v15 = vpop.f32.mrb[49].mxu1 }
 0x8e7   :  { %4097 = vtanh.f32 %v3645_v15  ;;  %v3647_v41 = vpop.f32.mrb[50].mxu1 }
 0x8e8   :  { %4099 = vtanh.f32 %v3647_v41  ;;  %v3649_v53 = vpop.f32.mrb[51].mxu1 }
 0x8e9   :  { %4101 = vtanh.f32 %v3649_v53 }
 0x8f0   :  { %v4096_v54 = vpop.eup %4095 }
 0x8f1   :  { %v4098_v32 = vpop.eup %4097  ;;  %3699 = vst [vmem:[%s7049_s6] sm:$0xff] %v4096_v54 }
 0x8f2   :  { %v4100_v46 = vpop.eup %4099  ;;  %3700 = vst [vmem:[%s7049_s6 + $0x8] sm:$0xff] %v4098_v32 }
 0x8f3   :  { %v4102_v9 = vpop.eup %4101  ;;  %3702 = vst [vmem:[%s7049_s6 + $0x18] sm:$0xff] %v4100_v46 }
 0x8f4   :  { %3703 = vst [vmem:[%s7049_s6 + $0x20] sm:$0xff] %v4102_v9 }
 0x909   :  { %v3686_v61 = vpop.f32.mrb[52].mxu1 }
 0x90a   :  { %4103 = vtanh.f32 %v3686_v61  ;;  %v3688_v25 = vpop.f32.mrb[53].mxu1 }
 0x90b   :  { %v3689_v7 = vpop.f32.mrb[54].mxu1 }
 0x90c   :  { %4105 = vtanh.f32 %v3689_v7  ;;  %v3691_v44 = vpop.f32.mrb[55].mxu1 }
 0x914   :  { %v4104_v20 = vpop.eup %4103 }
 0x915   :  { %3701 = vst.msk [vmem:[%s7049_s6 + $0x10] sm:$0xff] %vm645_vm0, %v4104_v20 }
 0x916   :  { %v4106_v2 = vpop.eup %4105 }
 0x917   :  { %3704 = vst.msk [vmem:[%s7049_s6 + $0x28] sm:$0xff] %vm645_vm0, %v4106_v2 }
 0x918   :  { %3709 = vsyncpa [#allocation5], 1 }
 0x919   :  { %3710 = vsyncpa [#allocation7], 1 }

</bundles_post_ra>
